<compile_context>
chip_gen: v6e
topology: v6e:2x2x1
jax: 0.10.0
libtpu: 0.0.40
codegen_flags: <defaults>
</compile_context>

<pallas_src>
import math

import jax
import jax.numpy as jnp
from jax import lax
from jax.experimental import pallas as pl
from jax.experimental.pallas import tpu as pltpu

# ---- hyper-parameters mirroring the nn.Module __init__ (small synthetic scale) ----
NUM_EVENT = 5                     # args.num_event
TYPE_DIM = 4                      # args.type_dim   (args.weekhour = False)
SPATIAL_D = 2                     # dim = 2
TPP_HIDDEN_DIMS = [8, 20]
HDIM = TPP_HIDDEN_DIMS[0] // 2    # hdim = tpp_hidden_dims[0] // 2 = 4
MLP_H = 64                        # first of hidden_dims = [64, 64, 64]
IN_DIM = 1 + SPATIAL_D + TYPE_DIM # GRU input: [dt, x, y, type_emb]
LOG_EPS = math.log(1e-8)
SLAB_W = 128                      # lane-dense output slab width


def _slab_offsets(T, H, E):
    off_space = 0
    off_tll = 1
    off_mark = 2
    off_state = 3
    off_int = off_state + H
    off_lam = off_int + T
    off_prob = off_lam + T
    total = off_prob + T * E
    return off_space, off_tll, off_mark, off_state, off_int, off_lam, off_prob, total


def _stm_kernel(aux_ref, times_ref, locs_ref, types_ref, mask_ref,
                emb_ref, wih_ref, whh_ref, bih_ref, bhh_ref,
                wint_ref, bint_ref, wcls_ref, bcls_ref,
                w1_ref, b1_ref, w2_ref, b2_ref,
                out_ref,
                hs_scr):
    N, T = times_ref.shape
    E, Dt = emb_ref.shape
    H = whh_ref.shape[0]
    D = locs_ref.shape[2]

    times = times_ref[...]                 # (N, T)
    mask = mask_ref[...]                   # (N, T) in {0, 1}
    locs = locs_ref[...]                   # (N, T, D)
    types = types_ref[...]                 # (N, T) int32
    init_t = aux_ref[:, 0:1]               # (N, 1)
    t1 = aux_ref[:, 1:2]                   # (N, 1)

    emb_tbl = emb_ref[...]
    w_ih, b_ih = wih_ref[...], bih_ref[...]
    w_hh, b_hh = whh_ref[...], bhh_ref[...]
    w_int, b_int = wint_ref[...], bint_ref[...]   # w_int stored as a (1, H) row
    w_cls, b_cls = wcls_ref[...], bcls_ref[...]
    w1, b1 = w1_ref[...], b1_ref[...]
    w2, b2 = w2_ref[...], b2_ref[...]

    # ---- type embedding: one-hot kept for the mark gather, embedding itself is a
    #      cheap E-term VPU weighted sum (no padded MXU push, no MRF pop) ----
    iota_e = lax.broadcasted_iota(jnp.int32, (N, T, E), 2)
    onehot = (iota_e == types[:, :, None]).astype(jnp.float32)           # (N, T, E)
    emb_ntd = jnp.zeros((N, T, Dt), jnp.float32)
    for e in range(E):                                                   # E = 5 FMAs
        emb_ntd = emb_ntd + onehot[:, :, e:e + 1] * emb_tbl[e:e + 1, :]

    # ---- prev-event-time carry kept in registers (no scratch round trip) ----
    prev_cols = []
    prev = init_t
    for t in range(T):                       # static T -> unrolled, VPU-only
        prev_cols.append(prev)
        tcol = times[:, t:t + 1]
        m = mask[:, t:t + 1]
        prev = prev + m * (tcol - prev)      # carry last valid event time
    prev_final = prev                        # (N, 1)
    dt_all = times - jnp.concatenate(prev_cols, axis=1)                  # (N, T)

    # ---- input-side GRU matmul hoisted: one (N*T, IN_DIM) @ (IN_DIM, 3H) ----
    x_nt = jnp.concatenate([dt_all[:, :, None], locs, emb_ntd], axis=-1)  # (N,T,IN)
    in_dim = 1 + D + Dt
    gi = (jnp.dot(x_nt.reshape(N * T, in_dim), w_ih,
                  preferred_element_type=jnp.float32) + b_ih).reshape(N, T, 3 * H)

    # ---- GRU recurrence: pure VALU+EUP on the serial chain ----
    #      gh = b_hh + sum_k h[:,k] * W_hh[k,:]  (H-term unrolled FMA, no XLU reduce)
    #      r,z sigmoids fused into a single EUP push on an (N, 2H) slab
    h = jnp.zeros((N, H), jnp.float32)
    for t in range(T):                       # static T -> unrolled
        hs_scr[:, t, :] = h                  # pre-event hidden state for step t
        gh = b_hh
        for k in range(H):
            gh = gh + h[:, k:k + 1] * w_hh[k:k + 1, :]
        rz = jax.nn.sigmoid(gi[:, t, 0:2 * H] + gh[:, 0:2 * H])
        r = rz[:, 0:H]
        z = rz[:, H:2 * H]
        n = jnp.tanh(gi[:, t, 2 * H:3 * H] + r * gh[:, 2 * H:3 * H])
        h_new = (1.0 - z) * n + z * h
        m_t = mask[:, t:t + 1]
        h = h + m_t * (h_new - h)            # padded events: no update

    hs = hs_scr[...]                         # (N, T, H)  (== hidden_states[:, 1:-1])
    hs_flat = hs.reshape(N * T, H)

    # ---- batched intensity / mark heads (hoisted out of the loop) ----
    lam_nt = jax.nn.softplus(jnp.sum(hs * w_int, axis=-1) + b_int)       # (N, T)
    logits = (jnp.dot(hs_flat, w_cls, preferred_element_type=jnp.float32)
              + b_cls).reshape(N, T, E)
    logp = jax.nn.log_softmax(logits, axis=-1)                           # (N, T, E)
    prob = jnp.exp(logp)                                                 # prob_event
    lp_k = jnp.sum(logp * onehot, axis=-1)                               # gathered logit
    mark_nt = jnp.logaddexp(lp_k, LOG_EPS) * mask                        # log(p+1e-8)*mask
    mark_row = jnp.sum(mark_nt, axis=1, keepdims=True)                   # (N, 1)

    # ---- compensator (left-Riemann) and time log-likelihood ----
    contrib = lam_nt * dt_all * mask                                     # (N, T)
    rr = lax.broadcasted_iota(jnp.int32, (T, T), 0)
    cc = lax.broadcasted_iota(jnp.int32, (T, T), 1)
    tri = (rr <= cc).astype(jnp.float32)                                 # inclusive cumsum
    lambdas_nt = jnp.dot(contrib, tri, preferred_element_type=jnp.float32)  # (N, T)
    cum_final = jnp.sum(contrib, axis=1, keepdims=True)                  # (N, 1)
    lam_final = jax.nn.softplus(jnp.sum(h * w_int, axis=-1, keepdims=True) + b_int)
    Lambda = cum_final + lam_final * jnp.maximum(t1 - prev_final, 0.0)   # tail up to t1
    time_ll = jnp.sum(jnp.log(lam_nt + 1e-8) * mask,
                      axis=1, keepdims=True) - Lambda                    # (N, 1)

    # ---- spatial log-likelihood: conditional Gaussian head from hidden state ----
    ctx = jnp.concatenate([hs, emb_ntd], axis=-1).reshape(N * T, H + Dt)
    hid = jax.nn.softplus(jnp.dot(ctx, w1, preferred_element_type=jnp.float32) + b1)
    mlp_out = (jnp.dot(hid, w2, preferred_element_type=jnp.float32)
               + b2).reshape(N, T, 2 * D)
    mu = mlp_out[..., :D]
    logsig = mlp_out[..., D:]
    lp_sp = -0.5 * jnp.sum(((locs - mu) * jnp.exp(-logsig)) ** 2
                           + 2.0 * logsig + math.log(2.0 * math.pi), axis=-1)  # (N, T)
    space_row = jnp.sum(lp_sp * mask, axis=1, keepdims=True)             # (N, 1)

    # ---- one lane-dense (N, 128) slab, built in registers, ONE unmasked store ----
    *_, used = _slab_offsets(T, H, E)
    prob_flat = jnp.concatenate([prob[:, t, :] for t in range(T)], axis=1)  # (N, T*E)
    parts = [space_row, time_ll, mark_row, h, lam_nt, lambdas_nt, prob_flat]
    pad = out_ref.shape[1] - used
    if pad > 0:
        parts.append(jnp.zeros((N, pad), jnp.float32))
    out_ref[...] = jnp.concatenate(parts, axis=1)


def _pick_block_n(N):
    # batch-grid block: multiple of 8 when possible (sublane-aligned), else single block
    for c in (128, 64, 32, 16, 8):
        if N % c == 0:
            return c
    return N


def shared_hidden_state_forward(init_time, event_times, spatial_locations,
                                event_types, input_mask, t0, t1, params):
    del t0  # unused (see TODO(synk) above) — dropping it removes a dead input DMA
    N, T = event_times.shape
    E, Dt = params["type_emb"].shape
    H = HDIM
    D = spatial_locations.shape[2]
    offs = _slab_offsets(T, H, E)
    assert offs[-1] <= SLAB_W, "output slab too narrow for this (T, H, E)"

    aux = jnp.concatenate(
        [jnp.asarray(init_time, jnp.float32).reshape(N, 1),
         jnp.broadcast_to(jnp.asarray(t1, jnp.float32), (N,)).reshape(N, 1)], axis=1)

    weights = (params["type_emb"], params["w_ih"], params["w_hh"],
               params["b_ih"], params["b_hh"], params["w_int"], params["b_int"],
               params["w_cls"], params["b_cls"], params["w1"], params["b1"],
               params["w2"], params["b2"])
    inputs = (aux,
              event_times.astype(jnp.float32),
              spatial_locations.astype(jnp.float32),
              event_types.astype(jnp.int32),
              input_mask.astype(jnp.float32)) + weights

    bn = _pick_block_n(N)
    grid = (N // bn,)
    data_specs = [
        pl.BlockSpec((bn, 2), lambda i: (i, 0)),            # aux (init_time, t1)
        pl.BlockSpec((bn, T), lambda i: (i, 0)),            # event_times
        pl.BlockSpec((bn, T, D), lambda i: (i, 0, 0)),      # spatial_locations
        pl.BlockSpec((bn, T), lambda i: (i, 0)),            # event_types
        pl.BlockSpec((bn, T), lambda i: (i, 0)),            # input_mask
    ]
    weight_specs = [pl.BlockSpec(w.shape, lambda i: (0, 0)) for w in weights]
    out_spec = pl.BlockSpec((bn, SLAB_W), lambda i: (i, 0))

    flops = int(N * T * (2 * (1 + D + Dt) * 3 * H + 2 * H * 3 * H + 2 * H * E
                         + 2 * (H + Dt) * MLP_H + 2 * MLP_H * 2 * D + 2 * T) + 64 * N * T)
    transc = int(N * T * (3 * H + 2 * E + 8))
    bytes_acc = int(sum(int(x.size) * x.dtype.itemsize for x in inputs) + N * SLAB_W * 4)

    slab = pl.pallas_call(
        _stm_kernel,
        out_shape=jax.ShapeDtypeStruct((N, SLAB_W), jnp.float32),
        grid_spec=pltpu.PrefetchScalarGridSpec(
            num_scalar_prefetch=0, grid=grid,
            in_specs=data_specs + weight_specs,
            out_specs=out_spec,
            scratch_shapes=[pltpu.VMEM((bn, T, H), jnp.float32)]),   # pre-event h
        compiler_params=pltpu.CompilerParams(
            dimension_semantics=("parallel",)),                      # v7x: 2nd TC used
        cost_estimate=pl.CostEstimate(flops=flops, transcendentals=transc,
                                      bytes_accessed=bytes_acc),
    )(*inputs)

    o_sp, o_tll, o_mk, o_st, o_int, o_lam, o_prob, _ = offs
    space_loglik = slab[:, o_sp]
    time_loglik_NT = slab[:, o_tll]
    time_loglik = jnp.sum(slab[:, o_tll] + slab[:, o_mk])      # adds mark log-probs
    tpp_state = slab[:, o_st:o_st + H]
    intens = slab[:, o_int:o_int + T]
    lambdas = slab[:, o_lam:o_lam + T]
    prob_event = slab[:, o_prob:o_prob + T * E].reshape(N, T, E)
    return (space_loglik, time_loglik, time_loglik_NT, prob_event, tpp_state,
            (intens, lambdas))


def init_params(key):
    def u(k, shape, scale):
        return jax.random.uniform(k, shape, jnp.float32, -1.0, 1.0) * scale

    ks = jax.random.split(key, 8)
    return dict(
        type_emb=u(ks[0], (NUM_EVENT, TYPE_DIM), 1.0),
        w_ih=u(ks[1], (IN_DIM, 3 * HDIM), 1.0 / math.sqrt(IN_DIM)),
        w_hh=u(ks[2], (HDIM, 3 * HDIM), 1.0 / math.sqrt(HDIM)),
        b_ih=u(ks[3], (1, 3 * HDIM), 0.1),
        b_hh=u(ks[4], (1, 3 * HDIM), 0.1),
        # intensity head stored as a (1, H) row so the kernel can use a VPU
        # multiply-reduce instead of a latency-bound (N, H) x (H, 1) MXU op.
        w_int=u(ks[5], (1, HDIM), 1.0 / math.sqrt(HDIM)),
        b_int=jnp.zeros((1, 1), jnp.float32),
        w_cls=u(ks[6], (HDIM, NUM_EVENT), 1.0 / math.sqrt(HDIM)),
        b_cls=jnp.zeros((1, NUM_EVENT), jnp.float32),
        w1=u(ks[7], (HDIM + TYPE_DIM, MLP_H), 1.0 / math.sqrt(HDIM + TYPE_DIM)),
        b1=jnp.zeros((1, MLP_H), jnp.float32),
        # zero_init=True -> final spatial layer zero-initialized (std-normal base)
        w2=jnp.zeros((MLP_H, 2 * SPATIAL_D), jnp.float32),
        b2=jnp.zeros((1, 2 * SPATIAL_D), jnp.float32),
    )


if __name__ == "__main__":
    key = jax.random.PRNGKey(0)
    k_in, k_loc, k_type, k_par = jax.random.split(key, 4)

    N, T = 2, 8
    dts = jax.random.uniform(k_in, (N, T), jnp.float32, 0.05, 0.5)
    event_times = jnp.cumsum(dts, axis=1)
    init_time = jnp.zeros((N,), jnp.float32)
    spatial_locations = jax.random.normal(k_loc, (N, T, SPATIAL_D), jnp.float32)
    event_types = jax.random.randint(k_type, (N, T), 0, NUM_EVENT)
    lengths = jnp.array([T, T - 2])
    input_mask = (jnp.arange(T)[None, :] < lengths[:, None]).astype(jnp.float32)
    t0 = jnp.zeros((N,), jnp.float32)
    t1 = event_times[:, -1] + 0.5

    params = init_params(k_par)

    result = shared_hidden_state_forward(init_time, event_times, spatial_locations,
                                         event_types, input_mask, t0, t1, params)
    jax.block_until_ready(result)

    space_loglik, time_loglik, time_loglik_NT, prob_event, tpp_state, (intens, lams) = result
    assert space_loglik.shape == (N,)
    assert time_loglik.shape == ()
    assert time_loglik_NT.shape == (N,)
    assert prob_event.shape == (N, T, NUM_EVENT)
    assert tpp_state.shape == (N, HDIM)
    assert intens.shape == (N, T) and lams.shape == (N, T)
    assert bool(jnp.all(jnp.isfinite(space_loglik))) and bool(jnp.isfinite(time_loglik))
    assert bool(jnp.all(jnp.isfinite(prob_event)))
    print("KERNEL_OK")
</pallas_src>

<mosaic_0001>
module attributes {stable_mosaic.version = 11 : i64} {
  func.func @_stm_kernel(%arg0: i32, %arg1: memref<2x2xf32, #tpu.memory_space<vmem>>, %arg2: memref<2x8xf32, #tpu.memory_space<vmem>>, %arg3: memref<2x8x2xf32, #tpu.memory_space<vmem>>, %arg4: memref<2x8xi32, #tpu.memory_space<vmem>>, %arg5: memref<2x8xf32, #tpu.memory_space<vmem>>, %arg6: memref<5x4xf32, #tpu.memory_space<vmem>>, %arg7: memref<7x12xf32, #tpu.memory_space<vmem>>, %arg8: memref<4x12xf32, #tpu.memory_space<vmem>>, %arg9: memref<1x12xf32, #tpu.memory_space<vmem>>, %arg10: memref<1x12xf32, #tpu.memory_space<vmem>>, %arg11: memref<1x4xf32, #tpu.memory_space<vmem>>, %arg12: memref<1x1xf32, #tpu.memory_space<vmem>>, %arg13: memref<4x5xf32, #tpu.memory_space<vmem>>, %arg14: memref<1x5xf32, #tpu.memory_space<vmem>>, %arg15: memref<8x64xf32, #tpu.memory_space<vmem>>, %arg16: memref<1x64xf32, #tpu.memory_space<vmem>>, %arg17: memref<64x4xf32, #tpu.memory_space<vmem>>, %arg18: memref<1x4xf32, #tpu.memory_space<vmem>>, %arg19: memref<2x128xf32, #tpu.memory_space<vmem>>, %arg20: memref<2x8x4xf32, #tpu.memory_space<vmem>>) attributes {dimension_semantics = [#tpu.dimension_semantics<parallel>], iteration_bounds = array<i64: 1>, scalar_prefetch = 0 : i64, scratch_operands = 1 : i64, tpu.core_type = #tpu.core_type<tc>, window_params = [{transform_indices = @transform_0, window_bounds = array<i64: 2, 2>}, {transform_indices = @transform_1, window_bounds = array<i64: 2, 8>}, {transform_indices = @transform_2, window_bounds = array<i64: 2, 8, 2>}, {transform_indices = @transform_3, window_bounds = array<i64: 2, 8>}, {transform_indices = @transform_4, window_bounds = array<i64: 2, 8>}, {pipeline_mode = #tpu.pipeline_mode<synchronous>, transform_indices = @transform_5, window_bounds = array<i64: 5, 4>}, {pipeline_mode = #tpu.pipeline_mode<synchronous>, transform_indices = @transform_6, window_bounds = array<i64: 7, 12>}, {pipeline_mode = #tpu.pipeline_mode<synchronous>, transform_indices = @transform_7, window_bounds = array<i64: 4, 12>}, {pipeline_mode = #tpu.pipeline_mode<synchronous>, transform_indices = @transform_8, window_bounds = array<i64: 1, 12>}, {pipeline_mode = #tpu.pipeline_mode<synchronous>, transform_indices = @transform_9, window_bounds = array<i64: 1, 12>}, {pipeline_mode = #tpu.pipeline_mode<synchronous>, transform_indices = @transform_10, window_bounds = array<i64: 1, 4>}, {pipeline_mode = #tpu.pipeline_mode<synchronous>, transform_indices = @transform_11, window_bounds = array<i64: 1, 1>}, {pipeline_mode = #tpu.pipeline_mode<synchronous>, transform_indices = @transform_12, window_bounds = array<i64: 4, 5>}, {pipeline_mode = #tpu.pipeline_mode<synchronous>, transform_indices = @transform_13, window_bounds = array<i64: 1, 5>}, {pipeline_mode = #tpu.pipeline_mode<synchronous>, transform_indices = @transform_14, window_bounds = array<i64: 8, 64>}, {pipeline_mode = #tpu.pipeline_mode<synchronous>, transform_indices = @transform_15, window_bounds = array<i64: 1, 64>}, {pipeline_mode = #tpu.pipeline_mode<synchronous>, transform_indices = @transform_16, window_bounds = array<i64: 64, 4>}, {pipeline_mode = #tpu.pipeline_mode<synchronous>, transform_indices = @transform_17, window_bounds = array<i64: 1, 4>}, {transform_indices = @transform_18, window_bounds = array<i64: 2, 128>}]} {
    %c0 = arith.constant 0 : index
    %c0_0 = arith.constant 0 : index
    %0 = vector.load %arg2[%c0, %c0_0] : memref<2x8xf32, #tpu.memory_space<vmem>>, vector<2x8xf32>
    %c0_1 = arith.constant 0 : index
    %c0_2 = arith.constant 0 : index
    %1 = vector.load %arg5[%c0_1, %c0_2] : memref<2x8xf32, #tpu.memory_space<vmem>>, vector<2x8xf32>
    %c0_3 = arith.constant 0 : index
    %c0_4 = arith.constant 0 : index
    %c0_5 = arith.constant 0 : index
    %2 = vector.load %arg3[%c0_3, %c0_4, %c0_5] : memref<2x8x2xf32, #tpu.memory_space<vmem>>, vector<2x8x2xf32>
    %c0_6 = arith.constant 0 : index
    %c0_7 = arith.constant 0 : index
    %3 = vector.load %arg4[%c0_6, %c0_7] : memref<2x8xi32, #tpu.memory_space<vmem>>, vector<2x8xi32>
    %c0_8 = arith.constant 0 : index
    %c0_9 = arith.constant 0 : index
    %4 = vector.load %arg1[%c0_8, %c0_9] : memref<2x2xf32, #tpu.memory_space<vmem>>, vector<2x1xf32>
    %c0_10 = arith.constant 0 : index
    %c1 = arith.constant 1 : index
    %5 = vector.load %arg1[%c0_10, %c1] : memref<2x2xf32, #tpu.memory_space<vmem>>, vector<2x1xf32>
    %c0_11 = arith.constant 0 : index
    %c0_12 = arith.constant 0 : index
    %6 = vector.load %arg6[%c0_11, %c0_12] : memref<5x4xf32, #tpu.memory_space<vmem>>, vector<5x4xf32>
    %c0_13 = arith.constant 0 : index
    %c0_14 = arith.constant 0 : index
    %7 = vector.load %arg7[%c0_13, %c0_14] : memref<7x12xf32, #tpu.memory_space<vmem>>, vector<7x12xf32>
    %c0_15 = arith.constant 0 : index
    %c0_16 = arith.constant 0 : index
    %8 = vector.load %arg9[%c0_15, %c0_16] : memref<1x12xf32, #tpu.memory_space<vmem>>, vector<1x12xf32>
    %c0_17 = arith.constant 0 : index
    %c0_18 = arith.constant 0 : index
    %9 = vector.load %arg8[%c0_17, %c0_18] : memref<4x12xf32, #tpu.memory_space<vmem>>, vector<4x12xf32>
    %c0_19 = arith.constant 0 : index
    %c0_20 = arith.constant 0 : index
    %10 = vector.load %arg10[%c0_19, %c0_20] : memref<1x12xf32, #tpu.memory_space<vmem>>, vector<1x12xf32>
    %c0_21 = arith.constant 0 : index
    %c0_22 = arith.constant 0 : index
    %11 = vector.load %arg11[%c0_21, %c0_22] : memref<1x4xf32, #tpu.memory_space<vmem>>, vector<1x4xf32>
    %c0_23 = arith.constant 0 : index
    %c0_24 = arith.constant 0 : index
    %12 = vector.load %arg12[%c0_23, %c0_24] : memref<1x1xf32, #tpu.memory_space<vmem>>, vector<1x1xf32>
    %c0_25 = arith.constant 0 : index
    %c0_26 = arith.constant 0 : index
    %13 = vector.load %arg13[%c0_25, %c0_26] : memref<4x5xf32, #tpu.memory_space<vmem>>, vector<4x5xf32>
    %c0_27 = arith.constant 0 : index
    %c0_28 = arith.constant 0 : index
    %14 = vector.load %arg14[%c0_27, %c0_28] : memref<1x5xf32, #tpu.memory_space<vmem>>, vector<1x5xf32>
    %c0_29 = arith.constant 0 : index
    %c0_30 = arith.constant 0 : index
    %15 = vector.load %arg15[%c0_29, %c0_30] : memref<8x64xf32, #tpu.memory_space<vmem>>, vector<8x64xf32>
    %c0_31 = arith.constant 0 : index
    %c0_32 = arith.constant 0 : index
    %16 = vector.load %arg16[%c0_31, %c0_32] : memref<1x64xf32, #tpu.memory_space<vmem>>, vector<1x64xf32>
    %c0_33 = arith.constant 0 : index
    %c0_34 = arith.constant 0 : index
    %17 = vector.load %arg17[%c0_33, %c0_34] : memref<64x4xf32, #tpu.memory_space<vmem>>, vector<64x4xf32>
    %c0_35 = arith.constant 0 : index
    %c0_36 = arith.constant 0 : index
    %18 = vector.load %arg18[%c0_35, %c0_36] : memref<1x4xf32, #tpu.memory_space<vmem>>, vector<1x4xf32>
    %19 = tpu.iota {dimensions = array<i32: 2>} : vector<2x8x5xi32>
    %20 = vector.shape_cast %3 : vector<2x8xi32> to vector<2x8x1xi32>
    %21 = vector.broadcast %20 : vector<2x8x1xi32> to vector<2x8x5xi32>
    %22 = arith.cmpi eq, %19, %21 : vector<2x8x5xi32>
    %23 = arith.extui %22 : vector<2x8x5xi1> to vector<2x8x5xi32>
    %24 = arith.sitofp %23 : vector<2x8x5xi32> to vector<2x8x5xf32>
    %cst = arith.constant 0.000000e+00 : f32
    %25 = vector.broadcast %cst : f32 to vector<2x8x4xf32>
    %26 = vector.extract_strided_slice %24 {offsets = [0, 0, 0], sizes = [2, 8, 1], strides = [1, 1, 1]} : vector<2x8x5xf32> to vector<2x8x1xf32>
    %27 = vector.extract_strided_slice %6 {offsets = [0, 0], sizes = [1, 4], strides = [1, 1]} : vector<5x4xf32> to vector<1x4xf32>
    %28 = vector.shape_cast %27 : vector<1x4xf32> to vector<1x1x4xf32>
    %29 = vector.broadcast %26 : vector<2x8x1xf32> to vector<2x8x4xf32>
    %30 = vector.broadcast %28 : vector<1x1x4xf32> to vector<2x8x4xf32>
    %31 = arith.mulf %29, %30 : vector<2x8x4xf32>
    %32 = arith.addf %25, %31 : vector<2x8x4xf32>
    %33 = vector.extract_strided_slice %24 {offsets = [0, 0, 1], sizes = [2, 8, 1], strides = [1, 1, 1]} : vector<2x8x5xf32> to vector<2x8x1xf32>
    %34 = vector.extract_strided_slice %6 {offsets = [1, 0], sizes = [1, 4], strides = [1, 1]} : vector<5x4xf32> to vector<1x4xf32>
    %35 = vector.shape_cast %34 : vector<1x4xf32> to vector<1x1x4xf32>
    %36 = vector.broadcast %33 : vector<2x8x1xf32> to vector<2x8x4xf32>
    %37 = vector.broadcast %35 : vector<1x1x4xf32> to vector<2x8x4xf32>
    %38 = arith.mulf %36, %37 : vector<2x8x4xf32>
    %39 = arith.addf %32, %38 : vector<2x8x4xf32>
    %40 = vector.extract_strided_slice %24 {offsets = [0, 0, 2], sizes = [2, 8, 1], strides = [1, 1, 1]} : vector<2x8x5xf32> to vector<2x8x1xf32>
    %41 = vector.extract_strided_slice %6 {offsets = [2, 0], sizes = [1, 4], strides = [1, 1]} : vector<5x4xf32> to vector<1x4xf32>
    %42 = vector.shape_cast %41 : vector<1x4xf32> to vector<1x1x4xf32>
    %43 = vector.broadcast %40 : vector<2x8x1xf32> to vector<2x8x4xf32>
    %44 = vector.broadcast %42 : vector<1x1x4xf32> to vector<2x8x4xf32>
    %45 = arith.mulf %43, %44 : vector<2x8x4xf32>
    %46 = arith.addf %39, %45 : vector<2x8x4xf32>
    %47 = vector.extract_strided_slice %24 {offsets = [0, 0, 3], sizes = [2, 8, 1], strides = [1, 1, 1]} : vector<2x8x5xf32> to vector<2x8x1xf32>
    %48 = vector.extract_strided_slice %6 {offsets = [3, 0], sizes = [1, 4], strides = [1, 1]} : vector<5x4xf32> to vector<1x4xf32>
    %49 = vector.shape_cast %48 : vector<1x4xf32> to vector<1x1x4xf32>
    %50 = vector.broadcast %47 : vector<2x8x1xf32> to vector<2x8x4xf32>
    %51 = vector.broadcast %49 : vector<1x1x4xf32> to vector<2x8x4xf32>
    %52 = arith.mulf %50, %51 : vector<2x8x4xf32>
    %53 = arith.addf %46, %52 : vector<2x8x4xf32>
    %54 = vector.extract_strided_slice %24 {offsets = [0, 0, 4], sizes = [2, 8, 1], strides = [1, 1, 1]} : vector<2x8x5xf32> to vector<2x8x1xf32>
    %55 = vector.extract_strided_slice %6 {offsets = [4, 0], sizes = [1, 4], strides = [1, 1]} : vector<5x4xf32> to vector<1x4xf32>
    %56 = vector.shape_cast %55 : vector<1x4xf32> to vector<1x1x4xf32>
    %57 = vector.broadcast %54 : vector<2x8x1xf32> to vector<2x8x4xf32>
    %58 = vector.broadcast %56 : vector<1x1x4xf32> to vector<2x8x4xf32>
    %59 = arith.mulf %57, %58 : vector<2x8x4xf32>
    %60 = arith.addf %53, %59 : vector<2x8x4xf32>
    %61 = vector.extract_strided_slice %0 {offsets = [0, 0], sizes = [2, 1], strides = [1, 1]} : vector<2x8xf32> to vector<2x1xf32>
    %62 = vector.extract_strided_slice %1 {offsets = [0, 0], sizes = [2, 1], strides = [1, 1]} : vector<2x8xf32> to vector<2x1xf32>
    %63 = arith.subf %61, %4 : vector<2x1xf32>
    %64 = arith.mulf %62, %63 : vector<2x1xf32>
    %65 = arith.addf %4, %64 : vector<2x1xf32>
    %66 = vector.extract_strided_slice %0 {offsets = [0, 1], sizes = [2, 1], strides = [1, 1]} : vector<2x8xf32> to vector<2x1xf32>
    %67 = vector.extract_strided_slice %1 {offsets = [0, 1], sizes = [2, 1], strides = [1, 1]} : vector<2x8xf32> to vector<2x1xf32>
    %68 = arith.subf %66, %65 : vector<2x1xf32>
    %69 = arith.mulf %67, %68 : vector<2x1xf32>
    %70 = arith.addf %65, %69 : vector<2x1xf32>
    %71 = vector.extract_strided_slice %0 {offsets = [0, 2], sizes = [2, 1], strides = [1, 1]} : vector<2x8xf32> to vector<2x1xf32>
    %72 = vector.extract_strided_slice %1 {offsets = [0, 2], sizes = [2, 1], strides = [1, 1]} : vector<2x8xf32> to vector<2x1xf32>
    %73 = arith.subf %71, %70 : vector<2x1xf32>
    %74 = arith.mulf %72, %73 : vector<2x1xf32>
    %75 = arith.addf %70, %74 : vector<2x1xf32>
    %76 = vector.extract_strided_slice %0 {offsets = [0, 3], sizes = [2, 1], strides = [1, 1]} : vector<2x8xf32> to vector<2x1xf32>
    %77 = vector.extract_strided_slice %1 {offsets = [0, 3], sizes = [2, 1], strides = [1, 1]} : vector<2x8xf32> to vector<2x1xf32>
    %78 = arith.subf %76, %75 : vector<2x1xf32>
    %79 = arith.mulf %77, %78 : vector<2x1xf32>
    %80 = arith.addf %75, %79 : vector<2x1xf32>
    %81 = vector.extract_strided_slice %0 {offsets = [0, 4], sizes = [2, 1], strides = [1, 1]} : vector<2x8xf32> to vector<2x1xf32>
    %82 = vector.extract_strided_slice %1 {offsets = [0, 4], sizes = [2, 1], strides = [1, 1]} : vector<2x8xf32> to vector<2x1xf32>
    %83 = arith.subf %81, %80 : vector<2x1xf32>
    %84 = arith.mulf %82, %83 : vector<2x1xf32>
    %85 = arith.addf %80, %84 : vector<2x1xf32>
    %86 = vector.extract_strided_slice %0 {offsets = [0, 5], sizes = [2, 1], strides = [1, 1]} : vector<2x8xf32> to vector<2x1xf32>
    %87 = vector.extract_strided_slice %1 {offsets = [0, 5], sizes = [2, 1], strides = [1, 1]} : vector<2x8xf32> to vector<2x1xf32>
    %88 = arith.subf %86, %85 : vector<2x1xf32>
    %89 = arith.mulf %87, %88 : vector<2x1xf32>
    %90 = arith.addf %85, %89 : vector<2x1xf32>
    %91 = vector.extract_strided_slice %0 {offsets = [0, 6], sizes = [2, 1], strides = [1, 1]} : vector<2x8xf32> to vector<2x1xf32>
    %92 = vector.extract_strided_slice %1 {offsets = [0, 6], sizes = [2, 1], strides = [1, 1]} : vector<2x8xf32> to vector<2x1xf32>
    %93 = arith.subf %91, %90 : vector<2x1xf32>
    %94 = arith.mulf %92, %93 : vector<2x1xf32>
    %95 = arith.addf %90, %94 : vector<2x1xf32>
    %96 = vector.extract_strided_slice %0 {offsets = [0, 7], sizes = [2, 1], strides = [1, 1]} : vector<2x8xf32> to vector<2x1xf32>
    %97 = vector.extract_strided_slice %1 {offsets = [0, 7], sizes = [2, 1], strides = [1, 1]} : vector<2x8xf32> to vector<2x1xf32>
    %98 = arith.subf %96, %95 : vector<2x1xf32>
    %99 = arith.mulf %97, %98 : vector<2x1xf32>
    %100 = arith.addf %95, %99 : vector<2x1xf32>
    %101 = tpu.concatenate %4, %65, %70, %75, %80, %85, %90, %95 in 1 : vector<2x1xf32>, vector<2x1xf32>, vector<2x1xf32>, vector<2x1xf32>, vector<2x1xf32>, vector<2x1xf32>, vector<2x1xf32>, vector<2x1xf32> -> vector<2x8xf32>
    %102 = arith.subf %0, %101 : vector<2x8xf32>
    %103 = vector.shape_cast %102 : vector<2x8xf32> to vector<2x8x1xf32>
    %104 = tpu.concatenate %103, %2, %60 in 2 : vector<2x8x1xf32>, vector<2x8x2xf32>, vector<2x8x4xf32> -> vector<2x8x7xf32>
    %105 = vector.shape_cast %104 : vector<2x8x7xf32> to vector<16x7xf32>
    %cst_37 = arith.constant dense<0.000000e+00> : vector<16x12xf32>
    %106 = tpu.matmul %105, %7, %cst_37 {dimension_numbers = #tpu.dot_dimension_numbers<[1], [0], [0], [1], [0, 0, 1, 1], [], []>} : vector<16x7xf32>, vector<7x12xf32>, vector<16x12xf32> -> vector<16x12xf32>
    %107 = vector.broadcast %8 : vector<1x12xf32> to vector<16x12xf32>
    %108 = arith.addf %106, %107 : vector<16x12xf32>
    %109 = vector.shape_cast %108 : vector<16x12xf32> to vector<2x8x12xf32>
    %cst_38 = arith.constant 0.000000e+00 : f32
    %110 = vector.broadcast %cst_38 : f32 to vector<2x4xf32>
    %c0_39 = arith.constant 0 : index
    %c0_40 = arith.constant 0 : index
    %c0_41 = arith.constant 0 : index
    %111 = vector.load %arg20[%c0_39, %c0_40, %c0_41] : memref<2x8x4xf32, #tpu.memory_space<vmem>>, vector<2x1x4xf32>
    %112 = vector.shape_cast %111 : vector<2x1x4xf32> to vector<2x4xf32>
    %113 = vector.shape_cast %110 : vector<2x4xf32> to vector<2x1x4xf32>
    tpu.vector_store %arg20[%c0_39, %c0_40, %c0_41], %113 {strides = array<i32>} : memref<2x8x4xf32, #tpu.memory_space<vmem>>, vector<2x1x4xf32>,
    %114 = vector.extract_strided_slice %110 {offsets = [0, 0], sizes = [2, 1], strides = [1, 1]} : vector<2x4xf32> to vector<2x1xf32>
    %115 = vector.extract_strided_slice %9 {offsets = [0, 0], sizes = [1, 12], strides = [1, 1]} : vector<4x12xf32> to vector<1x12xf32>
    %116 = vector.broadcast %114 : vector<2x1xf32> to vector<2x12xf32>
    %117 = vector.broadcast %115 : vector<1x12xf32> to vector<2x12xf32>
    %118 = arith.mulf %116, %117 : vector<2x12xf32>
    %119 = vector.broadcast %10 : vector<1x12xf32> to vector<2x12xf32>
    %120 = arith.addf %119, %118 : vector<2x12xf32>
    %121 = vector.extract_strided_slice %110 {offsets = [0, 1], sizes = [2, 1], strides = [1, 1]} : vector<2x4xf32> to vector<2x1xf32>
    %122 = vector.extract_strided_slice %9 {offsets = [1, 0], sizes = [1, 12], strides = [1, 1]} : vector<4x12xf32> to vector<1x12xf32>
    %123 = vector.broadcast %121 : vector<2x1xf32> to vector<2x12xf32>
    %124 = vector.broadcast %122 : vector<1x12xf32> to vector<2x12xf32>
    %125 = arith.mulf %123, %124 : vector<2x12xf32>
    %126 = arith.addf %120, %125 : vector<2x12xf32>
    %127 = vector.extract_strided_slice %110 {offsets = [0, 2], sizes = [2, 1], strides = [1, 1]} : vector<2x4xf32> to vector<2x1xf32>
    %128 = vector.extract_strided_slice %9 {offsets = [2, 0], sizes = [1, 12], strides = [1, 1]} : vector<4x12xf32> to vector<1x12xf32>
    %129 = vector.broadcast %127 : vector<2x1xf32> to vector<2x12xf32>
    %130 = vector.broadcast %128 : vector<1x12xf32> to vector<2x12xf32>
    %131 = arith.mulf %129, %130 : vector<2x12xf32>
    %132 = arith.addf %126, %131 : vector<2x12xf32>
    %133 = vector.extract_strided_slice %110 {offsets = [0, 3], sizes = [2, 1], strides = [1, 1]} : vector<2x4xf32> to vector<2x1xf32>
    %134 = vector.extract_strided_slice %9 {offsets = [3, 0], sizes = [1, 12], strides = [1, 1]} : vector<4x12xf32> to vector<1x12xf32>
    %135 = vector.broadcast %133 : vector<2x1xf32> to vector<2x12xf32>
    %136 = vector.broadcast %134 : vector<1x12xf32> to vector<2x12xf32>
    %137 = arith.mulf %135, %136 : vector<2x12xf32>
    %138 = arith.addf %132, %137 : vector<2x12xf32>
    %139 = vector.extract_strided_slice %109 {offsets = [0, 0, 0], sizes = [2, 1, 8], strides = [1, 1, 1]} : vector<2x8x12xf32> to vector<2x1x8xf32>
    %140 = vector.shape_cast %139 : vector<2x1x8xf32> to vector<2x8xf32>
    %141 = vector.extract_strided_slice %138 {offsets = [0, 0], sizes = [2, 8], strides = [1, 1]} : vector<2x12xf32> to vector<2x8xf32>
    %142 = arith.addf %140, %141 : vector<2x8xf32>
    %143 = arith.negf %142 : vector<2x8xf32>
    %144 = math.exp %143 : vector<2x8xf32>
    %cst_42 = arith.constant 1.000000e+00 : f32
    %145 = vector.broadcast %cst_42 : f32 to vector<2x8xf32>
    %146 = arith.addf %145, %144 : vector<2x8xf32>
    %147 = arith.divf %145, %146 : vector<2x8xf32>
    %148 = vector.extract_strided_slice %147 {offsets = [0, 0], sizes = [2, 4], strides = [1, 1]} : vector<2x8xf32> to vector<2x4xf32>
    %149 = vector.extract_strided_slice %147 {offsets = [0, 4], sizes = [2, 4], strides = [1, 1]} : vector<2x8xf32> to vector<2x4xf32>
    %150 = vector.extract_strided_slice %109 {offsets = [0, 0, 8], sizes = [2, 1, 4], strides = [1, 1, 1]} : vector<2x8x12xf32> to vector<2x1x4xf32>
    %151 = vector.shape_cast %150 : vector<2x1x4xf32> to vector<2x4xf32>
    %152 = vector.extract_strided_slice %138 {offsets = [0, 8], sizes = [2, 4], strides = [1, 1]} : vector<2x12xf32> to vector<2x4xf32>
    %153 = arith.mulf %148, %152 : vector<2x4xf32>
    %154 = arith.addf %151, %153 : vector<2x4xf32>
    %155 = math.tanh %154 : vector<2x4xf32>
    %cst_43 = arith.constant 1.000000e+00 : f32
    %156 = vector.broadcast %cst_43 : f32 to vector<2x4xf32>
    %157 = arith.subf %156, %149 : vector<2x4xf32>
    %158 = arith.mulf %157, %155 : vector<2x4xf32>
    %159 = arith.mulf %149, %110 : vector<2x4xf32>
    %160 = arith.addf %158, %159 : vector<2x4xf32>
    %161 = vector.extract_strided_slice %1 {offsets = [0, 0], sizes = [2, 1], strides = [1, 1]} : vector<2x8xf32> to vector<2x1xf32>
    %162 = arith.subf %160, %110 : vector<2x4xf32>
    %163 = vector.broadcast %161 : vector<2x1xf32> to vector<2x4xf32>
    %164 = arith.mulf %163, %162 : vector<2x4xf32>
    %165 = arith.addf %110, %164 : vector<2x4xf32>
    %c0_44 = arith.constant 0 : index
    %c1_45 = arith.constant 1 : index
    %c0_46 = arith.constant 0 : index
    %166 = vector.load %arg20[%c0_44, %c1_45, %c0_46] : memref<2x8x4xf32, #tpu.memory_space<vmem>>, vector<2x1x4xf32>
    %167 = vector.shape_cast %166 : vector<2x1x4xf32> to vector<2x4xf32>
    %168 = vector.shape_cast %165 : vector<2x4xf32> to vector<2x1x4xf32>
    tpu.vector_store %arg20[%c0_44, %c1_45, %c0_46], %168 {strides = array<i32>} : memref<2x8x4xf32, #tpu.memory_space<vmem>>, vector<2x1x4xf32>,
    %169 = vector.extract_strided_slice %165 {offsets = [0, 0], sizes = [2, 1], strides = [1, 1]} : vector<2x4xf32> to vector<2x1xf32>
    %170 = vector.extract_strided_slice %9 {offsets = [0, 0], sizes = [1, 12], strides = [1, 1]} : vector<4x12xf32> to vector<1x12xf32>
    %171 = vector.broadcast %169 : vector<2x1xf32> to vector<2x12xf32>
    %172 = vector.broadcast %170 : vector<1x12xf32> to vector<2x12xf32>
    %173 = arith.mulf %171, %172 : vector<2x12xf32>
    %174 = vector.broadcast %10 : vector<1x12xf32> to vector<2x12xf32>
    %175 = arith.addf %174, %173 : vector<2x12xf32>
    %176 = vector.extract_strided_slice %165 {offsets = [0, 1], sizes = [2, 1], strides = [1, 1]} : vector<2x4xf32> to vector<2x1xf32>
    %177 = vector.extract_strided_slice %9 {offsets = [1, 0], sizes = [1, 12], strides = [1, 1]} : vector<4x12xf32> to vector<1x12xf32>
    %178 = vector.broadcast %176 : vector<2x1xf32> to vector<2x12xf32>
    %179 = vector.broadcast %177 : vector<1x12xf32> to vector<2x12xf32>
    %180 = arith.mulf %178, %179 : vector<2x12xf32>
    %181 = arith.addf %175, %180 : vector<2x12xf32>
    %182 = vector.extract_strided_slice %165 {offsets = [0, 2], sizes = [2, 1], strides = [1, 1]} : vector<2x4xf32> to vector<2x1xf32>
    %183 = vector.extract_strided_slice %9 {offsets = [2, 0], sizes = [1, 12], strides = [1, 1]} : vector<4x12xf32> to vector<1x12xf32>
    %184 = vector.broadcast %182 : vector<2x1xf32> to vector<2x12xf32>
    %185 = vector.broadcast %183 : vector<1x12xf32> to vector<2x12xf32>
    %186 = arith.mulf %184, %185 : vector<2x12xf32>
    %187 = arith.addf %181, %186 : vector<2x12xf32>
    %188 = vector.extract_strided_slice %165 {offsets = [0, 3], sizes = [2, 1], strides = [1, 1]} : vector<2x4xf32> to vector<2x1xf32>
    %189 = vector.extract_strided_slice %9 {offsets = [3, 0], sizes = [1, 12], strides = [1, 1]} : vector<4x12xf32> to vector<1x12xf32>
    %190 = vector.broadcast %188 : vector<2x1xf32> to vector<2x12xf32>
    %191 = vector.broadcast %189 : vector<1x12xf32> to vector<2x12xf32>
    %192 = arith.mulf %190, %191 : vector<2x12xf32>
    %193 = arith.addf %187, %192 : vector<2x12xf32>
    %194 = vector.extract_strided_slice %109 {offsets = [0, 1, 0], sizes = [2, 1, 8], strides = [1, 1, 1]} : vector<2x8x12xf32> to vector<2x1x8xf32>
    %195 = vector.shape_cast %194 : vector<2x1x8xf32> to vector<2x8xf32>
    %196 = vector.extract_strided_slice %193 {offsets = [0, 0], sizes = [2, 8], strides = [1, 1]} : vector<2x12xf32> to vector<2x8xf32>
    %197 = arith.addf %195, %196 : vector<2x8xf32>
    %198 = arith.negf %197 : vector<2x8xf32>
    %199 = math.exp %198 : vector<2x8xf32>
    %cst_47 = arith.constant 1.000000e+00 : f32
    %200 = vector.broadcast %cst_47 : f32 to vector<2x8xf32>
    %201 = arith.addf %200, %199 : vector<2x8xf32>
    %202 = arith.divf %200, %201 : vector<2x8xf32>
    %203 = vector.extract_strided_slice %202 {offsets = [0, 0], sizes = [2, 4], strides = [1, 1]} : vector<2x8xf32> to vector<2x4xf32>
    %204 = vector.extract_strided_slice %202 {offsets = [0, 4], sizes = [2, 4], strides = [1, 1]} : vector<2x8xf32> to vector<2x4xf32>
    %205 = vector.extract_strided_slice %109 {offsets = [0, 1, 8], sizes = [2, 1, 4], strides = [1, 1, 1]} : vector<2x8x12xf32> to vector<2x1x4xf32>
    %206 = vector.shape_cast %205 : vector<2x1x4xf32> to vector<2x4xf32>
    %207 = vector.extract_strided_slice %193 {offsets = [0, 8], sizes = [2, 4], strides = [1, 1]} : vector<2x12xf32> to vector<2x4xf32>
    %208 = arith.mulf %203, %207 : vector<2x4xf32>
    %209 = arith.addf %206, %208 : vector<2x4xf32>
    %210 = math.tanh %209 : vector<2x4xf32>
    %cst_48 = arith.constant 1.000000e+00 : f32
    %211 = vector.broadcast %cst_48 : f32 to vector<2x4xf32>
    %212 = arith.subf %211, %204 : vector<2x4xf32>
    %213 = arith.mulf %212, %210 : vector<2x4xf32>
    %214 = arith.mulf %204, %165 : vector<2x4xf32>
    %215 = arith.addf %213, %214 : vector<2x4xf32>
    %216 = vector.extract_strided_slice %1 {offsets = [0, 1], sizes = [2, 1], strides = [1, 1]} : vector<2x8xf32> to vector<2x1xf32>
    %217 = arith.subf %215, %165 : vector<2x4xf32>
    %218 = vector.broadcast %216 : vector<2x1xf32> to vector<2x4xf32>
    %219 = arith.mulf %218, %217 : vector<2x4xf32>
    %220 = arith.addf %165, %219 : vector<2x4xf32>
    %c0_49 = arith.constant 0 : index
    %c2 = arith.constant 2 : index
    %c0_50 = arith.constant 0 : index
    %221 = vector.load %arg20[%c0_49, %c2, %c0_50] : memref<2x8x4xf32, #tpu.memory_space<vmem>>, vector<2x1x4xf32>
    %222 = vector.shape_cast %221 : vector<2x1x4xf32> to vector<2x4xf32>
    %223 = vector.shape_cast %220 : vector<2x4xf32> to vector<2x1x4xf32>
    tpu.vector_store %arg20[%c0_49, %c2, %c0_50], %223 {strides = array<i32>} : memref<2x8x4xf32, #tpu.memory_space<vmem>>, vector<2x1x4xf32>,
    %224 = vector.extract_strided_slice %220 {offsets = [0, 0], sizes = [2, 1], strides = [1, 1]} : vector<2x4xf32> to vector<2x1xf32>
    %225 = vector.extract_strided_slice %9 {offsets = [0, 0], sizes = [1, 12], strides = [1, 1]} : vector<4x12xf32> to vector<1x12xf32>
    %226 = vector.broadcast %224 : vector<2x1xf32> to vector<2x12xf32>
    %227 = vector.broadcast %225 : vector<1x12xf32> to vector<2x12xf32>
    %228 = arith.mulf %226, %227 : vector<2x12xf32>
    %229 = vector.broadcast %10 : vector<1x12xf32> to vector<2x12xf32>
    %230 = arith.addf %229, %228 : vector<2x12xf32>
    %231 = vector.extract_strided_slice %220 {offsets = [0, 1], sizes = [2, 1], strides = [1, 1]} : vector<2x4xf32> to vector<2x1xf32>
    %232 = vector.extract_strided_slice %9 {offsets = [1, 0], sizes = [1, 12], strides = [1, 1]} : vector<4x12xf32> to vector<1x12xf32>
    %233 = vector.broadcast %231 : vector<2x1xf32> to vector<2x12xf32>
    %234 = vector.broadcast %232 : vector<1x12xf32> to vector<2x12xf32>
    %235 = arith.mulf %233, %234 : vector<2x12xf32>
    %236 = arith.addf %230, %235 : vector<2x12xf32>
    %237 = vector.extract_strided_slice %220 {offsets = [0, 2], sizes = [2, 1], strides = [1, 1]} : vector<2x4xf32> to vector<2x1xf32>
    %238 = vector.extract_strided_slice %9 {offsets = [2, 0], sizes = [1, 12], strides = [1, 1]} : vector<4x12xf32> to vector<1x12xf32>
    %239 = vector.broadcast %237 : vector<2x1xf32> to vector<2x12xf32>
    %240 = vector.broadcast %238 : vector<1x12xf32> to vector<2x12xf32>
    %241 = arith.mulf %239, %240 : vector<2x12xf32>
    %242 = arith.addf %236, %241 : vector<2x12xf32>
    %243 = vector.extract_strided_slice %220 {offsets = [0, 3], sizes = [2, 1], strides = [1, 1]} : vector<2x4xf32> to vector<2x1xf32>
    %244 = vector.extract_strided_slice %9 {offsets = [3, 0], sizes = [1, 12], strides = [1, 1]} : vector<4x12xf32> to vector<1x12xf32>
    %245 = vector.broadcast %243 : vector<2x1xf32> to vector<2x12xf32>
    %246 = vector.broadcast %244 : vector<1x12xf32> to vector<2x12xf32>
    %247 = arith.mulf %245, %246 : vector<2x12xf32>
    %248 = arith.addf %242, %247 : vector<2x12xf32>
    %249 = vector.extract_strided_slice %109 {offsets = [0, 2, 0], sizes = [2, 1, 8], strides = [1, 1, 1]} : vector<2x8x12xf32> to vector<2x1x8xf32>
    %250 = vector.shape_cast %249 : vector<2x1x8xf32> to vector<2x8xf32>
    %251 = vector.extract_strided_slice %248 {offsets = [0, 0], sizes = [2, 8], strides = [1, 1]} : vector<2x12xf32> to vector<2x8xf32>
    %252 = arith.addf %250, %251 : vector<2x8xf32>
    %253 = arith.negf %252 : vector<2x8xf32>
    %254 = math.exp %253 : vector<2x8xf32>
    %cst_51 = arith.constant 1.000000e+00 : f32
    %255 = vector.broadcast %cst_51 : f32 to vector<2x8xf32>
    %256 = arith.addf %255, %254 : vector<2x8xf32>
    %257 = arith.divf %255, %256 : vector<2x8xf32>
    %258 = vector.extract_strided_slice %257 {offsets = [0, 0], sizes = [2, 4], strides = [1, 1]} : vector<2x8xf32> to vector<2x4xf32>
    %259 = vector.extract_strided_slice %257 {offsets = [0, 4], sizes = [2, 4], strides = [1, 1]} : vector<2x8xf32> to vector<2x4xf32>
    %260 = vector.extract_strided_slice %109 {offsets = [0, 2, 8], sizes = [2, 1, 4], strides = [1, 1, 1]} : vector<2x8x12xf32> to vector<2x1x4xf32>
    %261 = vector.shape_cast %260 : vector<2x1x4xf32> to vector<2x4xf32>
    %262 = vector.extract_strided_slice %248 {offsets = [0, 8], sizes = [2, 4], strides = [1, 1]} : vector<2x12xf32> to vector<2x4xf32>
    %263 = arith.mulf %258, %262 : vector<2x4xf32>
    %264 = arith.addf %261, %263 : vector<2x4xf32>
    %265 = math.tanh %264 : vector<2x4xf32>
    %cst_52 = arith.constant 1.000000e+00 : f32
    %266 = vector.broadcast %cst_52 : f32 to vector<2x4xf32>
    %267 = arith.subf %266, %259 : vector<2x4xf32>
    %268 = arith.mulf %267, %265 : vector<2x4xf32>
    %269 = arith.mulf %259, %220 : vector<2x4xf32>
    %270 = arith.addf %268, %269 : vector<2x4xf32>
    %271 = vector.extract_strided_slice %1 {offsets = [0, 2], sizes = [2, 1], strides = [1, 1]} : vector<2x8xf32> to vector<2x1xf32>
    %272 = arith.subf %270, %220 : vector<2x4xf32>
    %273 = vector.broadcast %271 : vector<2x1xf32> to vector<2x4xf32>
    %274 = arith.mulf %273, %272 : vector<2x4xf32>
    %275 = arith.addf %220, %274 : vector<2x4xf32>
    %c0_53 = arith.constant 0 : index
    %c3 = arith.constant 3 : index
    %c0_54 = arith.constant 0 : index
    %276 = vector.load %arg20[%c0_53, %c3, %c0_54] : memref<2x8x4xf32, #tpu.memory_space<vmem>>, vector<2x1x4xf32>
    %277 = vector.shape_cast %276 : vector<2x1x4xf32> to vector<2x4xf32>
    %278 = vector.shape_cast %275 : vector<2x4xf32> to vector<2x1x4xf32>
    tpu.vector_store %arg20[%c0_53, %c3, %c0_54], %278 {strides = array<i32>} : memref<2x8x4xf32, #tpu.memory_space<vmem>>, vector<2x1x4xf32>,
    %279 = vector.extract_strided_slice %275 {offsets = [0, 0], sizes = [2, 1], strides = [1, 1]} : vector<2x4xf32> to vector<2x1xf32>
    %280 = vector.extract_strided_slice %9 {offsets = [0, 0], sizes = [1, 12], strides = [1, 1]} : vector<4x12xf32> to vector<1x12xf32>
    %281 = vector.broadcast %279 : vector<2x1xf32> to vector<2x12xf32>
    %282 = vector.broadcast %280 : vector<1x12xf32> to vector<2x12xf32>
    %283 = arith.mulf %281, %282 : vector<2x12xf32>
    %284 = vector.broadcast %10 : vector<1x12xf32> to vector<2x12xf32>
    %285 = arith.addf %284, %283 : vector<2x12xf32>
    %286 = vector.extract_strided_slice %275 {offsets = [0, 1], sizes = [2, 1], strides = [1, 1]} : vector<2x4xf32> to vector<2x1xf32>
    %287 = vector.extract_strided_slice %9 {offsets = [1, 0], sizes = [1, 12], strides = [1, 1]} : vector<4x12xf32> to vector<1x12xf32>
    %288 = vector.broadcast %286 : vector<2x1xf32> to vector<2x12xf32>
    %289 = vector.broadcast %287 : vector<1x12xf32> to vector<2x12xf32>
    %290 = arith.mulf %288, %289 : vector<2x12xf32>
    %291 = arith.addf %285, %290 : vector<2x12xf32>
    %292 = vector.extract_strided_slice %275 {offsets = [0, 2], sizes = [2, 1], strides = [1, 1]} : vector<2x4xf32> to vector<2x1xf32>
    %293 = vector.extract_strided_slice %9 {offsets = [2, 0], sizes = [1, 12], strides = [1, 1]} : vector<4x12xf32> to vector<1x12xf32>
    %294 = vector.broadcast %292 : vector<2x1xf32> to vector<2x12xf32>
    %295 = vector.broadcast %293 : vector<1x12xf32> to vector<2x12xf32>
    %296 = arith.mulf %294, %295 : vector<2x12xf32>
    %297 = arith.addf %291, %296 : vector<2x12xf32>
    %298 = vector.extract_strided_slice %275 {offsets = [0, 3], sizes = [2, 1], strides = [1, 1]} : vector<2x4xf32> to vector<2x1xf32>
    %299 = vector.extract_strided_slice %9 {offsets = [3, 0], sizes = [1, 12], strides = [1, 1]} : vector<4x12xf32> to vector<1x12xf32>
    %300 = vector.broadcast %298 : vector<2x1xf32> to vector<2x12xf32>
    %301 = vector.broadcast %299 : vector<1x12xf32> to vector<2x12xf32>
    %302 = arith.mulf %300, %301 : vector<2x12xf32>
    %303 = arith.addf %297, %302 : vector<2x12xf32>
    %304 = vector.extract_strided_slice %109 {offsets = [0, 3, 0], sizes = [2, 1, 8], strides = [1, 1, 1]} : vector<2x8x12xf32> to vector<2x1x8xf32>
    %305 = vector.shape_cast %304 : vector<2x1x8xf32> to vector<2x8xf32>
    %306 = vector.extract_strided_slice %303 {offsets = [0, 0], sizes = [2, 8], strides = [1, 1]} : vector<2x12xf32> to vector<2x8xf32>
    %307 = arith.addf %305, %306 : vector<2x8xf32>
    %308 = arith.negf %307 : vector<2x8xf32>
    %309 = math.exp %308 : vector<2x8xf32>
    %cst_55 = arith.constant 1.000000e+00 : f32
    %310 = vector.broadcast %cst_55 : f32 to vector<2x8xf32>
    %311 = arith.addf %310, %309 : vector<2x8xf32>
    %312 = arith.divf %310, %311 : vector<2x8xf32>
    %313 = vector.extract_strided_slice %312 {offsets = [0, 0], sizes = [2, 4], strides = [1, 1]} : vector<2x8xf32> to vector<2x4xf32>
    %314 = vector.extract_strided_slice %312 {offsets = [0, 4], sizes = [2, 4], strides = [1, 1]} : vector<2x8xf32> to vector<2x4xf32>
    %315 = vector.extract_strided_slice %109 {offsets = [0, 3, 8], sizes = [2, 1, 4], strides = [1, 1, 1]} : vector<2x8x12xf32> to vector<2x1x4xf32>
    %316 = vector.shape_cast %315 : vector<2x1x4xf32> to vector<2x4xf32>
    %317 = vector.extract_strided_slice %303 {offsets = [0, 8], sizes = [2, 4], strides = [1, 1]} : vector<2x12xf32> to vector<2x4xf32>
    %318 = arith.mulf %313, %317 : vector<2x4xf32>
    %319 = arith.addf %316, %318 : vector<2x4xf32>
    %320 = math.tanh %319 : vector<2x4xf32>
    %cst_56 = arith.constant 1.000000e+00 : f32
    %321 = vector.broadcast %cst_56 : f32 to vector<2x4xf32>
    %322 = arith.subf %321, %314 : vector<2x4xf32>
    %323 = arith.mulf %322, %320 : vector<2x4xf32>
    %324 = arith.mulf %314, %275 : vector<2x4xf32>
    %325 = arith.addf %323, %324 : vector<2x4xf32>
    %326 = vector.extract_strided_slice %1 {offsets = [0, 3], sizes = [2, 1], strides = [1, 1]} : vector<2x8xf32> to vector<2x1xf32>
    %327 = arith.subf %325, %275 : vector<2x4xf32>
    %328 = vector.broadcast %326 : vector<2x1xf32> to vector<2x4xf32>
    %329 = arith.mulf %328, %327 : vector<2x4xf32>
    %330 = arith.addf %275, %329 : vector<2x4xf32>
    %c0_57 = arith.constant 0 : index
    %c4 = arith.constant 4 : index
    %c0_58 = arith.constant 0 : index
    %331 = vector.load %arg20[%c0_57, %c4, %c0_58] : memref<2x8x4xf32, #tpu.memory_space<vmem>>, vector<2x1x4xf32>
    %332 = vector.shape_cast %331 : vector<2x1x4xf32> to vector<2x4xf32>
    %333 = vector.shape_cast %330 : vector<2x4xf32> to vector<2x1x4xf32>
    tpu.vector_store %arg20[%c0_57, %c4, %c0_58], %333 {strides = array<i32>} : memref<2x8x4xf32, #tpu.memory_space<vmem>>, vector<2x1x4xf32>,
    %334 = vector.extract_strided_slice %330 {offsets = [0, 0], sizes = [2, 1], strides = [1, 1]} : vector<2x4xf32> to vector<2x1xf32>
    %335 = vector.extract_strided_slice %9 {offsets = [0, 0], sizes = [1, 12], strides = [1, 1]} : vector<4x12xf32> to vector<1x12xf32>
    %336 = vector.broadcast %334 : vector<2x1xf32> to vector<2x12xf32>
    %337 = vector.broadcast %335 : vector<1x12xf32> to vector<2x12xf32>
    %338 = arith.mulf %336, %337 : vector<2x12xf32>
    %339 = vector.broadcast %10 : vector<1x12xf32> to vector<2x12xf32>
    %340 = arith.addf %339, %338 : vector<2x12xf32>
    %341 = vector.extract_strided_slice %330 {offsets = [0, 1], sizes = [2, 1], strides = [1, 1]} : vector<2x4xf32> to vector<2x1xf32>
    %342 = vector.extract_strided_slice %9 {offsets = [1, 0], sizes = [1, 12], strides = [1, 1]} : vector<4x12xf32> to vector<1x12xf32>
    %343 = vector.broadcast %341 : vector<2x1xf32> to vector<2x12xf32>
    %344 = vector.broadcast %342 : vector<1x12xf32> to vector<2x12xf32>
    %345 = arith.mulf %343, %344 : vector<2x12xf32>
    %346 = arith.addf %340, %345 : vector<2x12xf32>
    %347 = vector.extract_strided_slice %330 {offsets = [0, 2], sizes = [2, 1], strides = [1, 1]} : vector<2x4xf32> to vector<2x1xf32>
    %348 = vector.extract_strided_slice %9 {offsets = [2, 0], sizes = [1, 12], strides = [1, 1]} : vector<4x12xf32> to vector<1x12xf32>
    %349 = vector.broadcast %347 : vector<2x1xf32> to vector<2x12xf32>
    %350 = vector.broadcast %348 : vector<1x12xf32> to vector<2x12xf32>
    %351 = arith.mulf %349, %350 : vector<2x12xf32>
    %352 = arith.addf %346, %351 : vector<2x12xf32>
    %353 = vector.extract_strided_slice %330 {offsets = [0, 3], sizes = [2, 1], strides = [1, 1]} : vector<2x4xf32> to vector<2x1xf32>
    %354 = vector.extract_strided_slice %9 {offsets = [3, 0], sizes = [1, 12], strides = [1, 1]} : vector<4x12xf32> to vector<1x12xf32>
    %355 = vector.broadcast %353 : vector<2x1xf32> to vector<2x12xf32>
    %356 = vector.broadcast %354 : vector<1x12xf32> to vector<2x12xf32>
    %357 = arith.mulf %355, %356 : vector<2x12xf32>
    %358 = arith.addf %352, %357 : vector<2x12xf32>
    %359 = vector.extract_strided_slice %109 {offsets = [0, 4, 0], sizes = [2, 1, 8], strides = [1, 1, 1]} : vector<2x8x12xf32> to vector<2x1x8xf32>
    %360 = vector.shape_cast %359 : vector<2x1x8xf32> to vector<2x8xf32>
    %361 = vector.extract_strided_slice %358 {offsets = [0, 0], sizes = [2, 8], strides = [1, 1]} : vector<2x12xf32> to vector<2x8xf32>
    %362 = arith.addf %360, %361 : vector<2x8xf32>
    %363 = arith.negf %362 : vector<2x8xf32>
    %364 = math.exp %363 : vector<2x8xf32>
    %cst_59 = arith.constant 1.000000e+00 : f32
    %365 = vector.broadcast %cst_59 : f32 to vector<2x8xf32>
    %366 = arith.addf %365, %364 : vector<2x8xf32>
    %367 = arith.divf %365, %366 : vector<2x8xf32>
    %368 = vector.extract_strided_slice %367 {offsets = [0, 0], sizes = [2, 4], strides = [1, 1]} : vector<2x8xf32> to vector<2x4xf32>
    %369 = vector.extract_strided_slice %367 {offsets = [0, 4], sizes = [2, 4], strides = [1, 1]} : vector<2x8xf32> to vector<2x4xf32>
    %370 = vector.extract_strided_slice %109 {offsets = [0, 4, 8], sizes = [2, 1, 4], strides = [1, 1, 1]} : vector<2x8x12xf32> to vector<2x1x4xf32>
    %371 = vector.shape_cast %370 : vector<2x1x4xf32> to vector<2x4xf32>
    %372 = vector.extract_strided_slice %358 {offsets = [0, 8], sizes = [2, 4], strides = [1, 1]} : vector<2x12xf32> to vector<2x4xf32>
    %373 = arith.mulf %368, %372 : vector<2x4xf32>
    %374 = arith.addf %371, %373 : vector<2x4xf32>
    %375 = math.tanh %374 : vector<2x4xf32>
    %cst_60 = arith.constant 1.000000e+00 : f32
    %376 = vector.broadcast %cst_60 : f32 to vector<2x4xf32>
    %377 = arith.subf %376, %369 : vector<2x4xf32>
    %378 = arith.mulf %377, %375 : vector<2x4xf32>
    %379 = arith.mulf %369, %330 : vector<2x4xf32>
    %380 = arith.addf %378, %379 : vector<2x4xf32>
    %381 = vector.extract_strided_slice %1 {offsets = [0, 4], sizes = [2, 1], strides = [1, 1]} : vector<2x8xf32> to vector<2x1xf32>
    %382 = arith.subf %380, %330 : vector<2x4xf32>
    %383 = vector.broadcast %381 : vector<2x1xf32> to vector<2x4xf32>
    %384 = arith.mulf %383, %382 : vector<2x4xf32>
    %385 = arith.addf %330, %384 : vector<2x4xf32>
    %c0_61 = arith.constant 0 : index
    %c5 = arith.constant 5 : index
    %c0_62 = arith.constant 0 : index
    %386 = vector.load %arg20[%c0_61, %c5, %c0_62] : memref<2x8x4xf32, #tpu.memory_space<vmem>>, vector<2x1x4xf32>
    %387 = vector.shape_cast %386 : vector<2x1x4xf32> to vector<2x4xf32>
    %388 = vector.shape_cast %385 : vector<2x4xf32> to vector<2x1x4xf32>
    tpu.vector_store %arg20[%c0_61, %c5, %c0_62], %388 {strides = array<i32>} : memref<2x8x4xf32, #tpu.memory_space<vmem>>, vector<2x1x4xf32>,
    %389 = vector.extract_strided_slice %385 {offsets = [0, 0], sizes = [2, 1], strides = [1, 1]} : vector<2x4xf32> to vector<2x1xf32>
    %390 = vector.extract_strided_slice %9 {offsets = [0, 0], sizes = [1, 12], strides = [1, 1]} : vector<4x12xf32> to vector<1x12xf32>
    %391 = vector.broadcast %389 : vector<2x1xf32> to vector<2x12xf32>
    %392 = vector.broadcast %390 : vector<1x12xf32> to vector<2x12xf32>
    %393 = arith.mulf %391, %392 : vector<2x12xf32>
    %394 = vector.broadcast %10 : vector<1x12xf32> to vector<2x12xf32>
    %395 = arith.addf %394, %393 : vector<2x12xf32>
    %396 = vector.extract_strided_slice %385 {offsets = [0, 1], sizes = [2, 1], strides = [1, 1]} : vector<2x4xf32> to vector<2x1xf32>
    %397 = vector.extract_strided_slice %9 {offsets = [1, 0], sizes = [1, 12], strides = [1, 1]} : vector<4x12xf32> to vector<1x12xf32>
    %398 = vector.broadcast %396 : vector<2x1xf32> to vector<2x12xf32>
    %399 = vector.broadcast %397 : vector<1x12xf32> to vector<2x12xf32>
    %400 = arith.mulf %398, %399 : vector<2x12xf32>
    %401 = arith.addf %395, %400 : vector<2x12xf32>
    %402 = vector.extract_strided_slice %385 {offsets = [0, 2], sizes = [2, 1], strides = [1, 1]} : vector<2x4xf32> to vector<2x1xf32>
    %403 = vector.extract_strided_slice %9 {offsets = [2, 0], sizes = [1, 12], strides = [1, 1]} : vector<4x12xf32> to vector<1x12xf32>
    %404 = vector.broadcast %402 : vector<2x1xf32> to vector<2x12xf32>
    %405 = vector.broadcast %403 : vector<1x12xf32> to vector<2x12xf32>
    %406 = arith.mulf %404, %405 : vector<2x12xf32>
    %407 = arith.addf %401, %406 : vector<2x12xf32>
    %408 = vector.extract_strided_slice %385 {offsets = [0, 3], sizes = [2, 1], strides = [1, 1]} : vector<2x4xf32> to vector<2x1xf32>
    %409 = vector.extract_strided_slice %9 {offsets = [3, 0], sizes = [1, 12], strides = [1, 1]} : vector<4x12xf32> to vector<1x12xf32>
    %410 = vector.broadcast %408 : vector<2x1xf32> to vector<2x12xf32>
    %411 = vector.broadcast %409 : vector<1x12xf32> to vector<2x12xf32>
    %412 = arith.mulf %410, %411 : vector<2x12xf32>
    %413 = arith.addf %407, %412 : vector<2x12xf32>
    %414 = vector.extract_strided_slice %109 {offsets = [0, 5, 0], sizes = [2, 1, 8], strides = [1, 1, 1]} : vector<2x8x12xf32> to vector<2x1x8xf32>
    %415 = vector.shape_cast %414 : vector<2x1x8xf32> to vector<2x8xf32>
    %416 = vector.extract_strided_slice %413 {offsets = [0, 0], sizes = [2, 8], strides = [1, 1]} : vector<2x12xf32> to vector<2x8xf32>
    %417 = arith.addf %415, %416 : vector<2x8xf32>
    %418 = arith.negf %417 : vector<2x8xf32>
    %419 = math.exp %418 : vector<2x8xf32>
    %cst_63 = arith.constant 1.000000e+00 : f32
    %420 = vector.broadcast %cst_63 : f32 to vector<2x8xf32>
    %421 = arith.addf %420, %419 : vector<2x8xf32>
    %422 = arith.divf %420, %421 : vector<2x8xf32>
    %423 = vector.extract_strided_slice %422 {offsets = [0, 0], sizes = [2, 4], strides = [1, 1]} : vector<2x8xf32> to vector<2x4xf32>
    %424 = vector.extract_strided_slice %422 {offsets = [0, 4], sizes = [2, 4], strides = [1, 1]} : vector<2x8xf32> to vector<2x4xf32>
    %425 = vector.extract_strided_slice %109 {offsets = [0, 5, 8], sizes = [2, 1, 4], strides = [1, 1, 1]} : vector<2x8x12xf32> to vector<2x1x4xf32>
    %426 = vector.shape_cast %425 : vector<2x1x4xf32> to vector<2x4xf32>
    %427 = vector.extract_strided_slice %413 {offsets = [0, 8], sizes = [2, 4], strides = [1, 1]} : vector<2x12xf32> to vector<2x4xf32>
    %428 = arith.mulf %423, %427 : vector<2x4xf32>
    %429 = arith.addf %426, %428 : vector<2x4xf32>
    %430 = math.tanh %429 : vector<2x4xf32>
    %cst_64 = arith.constant 1.000000e+00 : f32
    %431 = vector.broadcast %cst_64 : f32 to vector<2x4xf32>
    %432 = arith.subf %431, %424 : vector<2x4xf32>
    %433 = arith.mulf %432, %430 : vector<2x4xf32>
    %434 = arith.mulf %424, %385 : vector<2x4xf32>
    %435 = arith.addf %433, %434 : vector<2x4xf32>
    %436 = vector.extract_strided_slice %1 {offsets = [0, 5], sizes = [2, 1], strides = [1, 1]} : vector<2x8xf32> to vector<2x1xf32>
    %437 = arith.subf %435, %385 : vector<2x4xf32>
    %438 = vector.broadcast %436 : vector<2x1xf32> to vector<2x4xf32>
    %439 = arith.mulf %438, %437 : vector<2x4xf32>
    %440 = arith.addf %385, %439 : vector<2x4xf32>
    %c0_65 = arith.constant 0 : index
    %c6 = arith.constant 6 : index
    %c0_66 = arith.constant 0 : index
    %441 = vector.load %arg20[%c0_65, %c6, %c0_66] : memref<2x8x4xf32, #tpu.memory_space<vmem>>, vector<2x1x4xf32>
    %442 = vector.shape_cast %441 : vector<2x1x4xf32> to vector<2x4xf32>
    %443 = vector.shape_cast %440 : vector<2x4xf32> to vector<2x1x4xf32>
    tpu.vector_store %arg20[%c0_65, %c6, %c0_66], %443 {strides = array<i32>} : memref<2x8x4xf32, #tpu.memory_space<vmem>>, vector<2x1x4xf32>,
    %444 = vector.extract_strided_slice %440 {offsets = [0, 0], sizes = [2, 1], strides = [1, 1]} : vector<2x4xf32> to vector<2x1xf32>
    %445 = vector.extract_strided_slice %9 {offsets = [0, 0], sizes = [1, 12], strides = [1, 1]} : vector<4x12xf32> to vector<1x12xf32>
    %446 = vector.broadcast %444 : vector<2x1xf32> to vector<2x12xf32>
    %447 = vector.broadcast %445 : vector<1x12xf32> to vector<2x12xf32>
    %448 = arith.mulf %446, %447 : vector<2x12xf32>
    %449 = vector.broadcast %10 : vector<1x12xf32> to vector<2x12xf32>
    %450 = arith.addf %449, %448 : vector<2x12xf32>
    %451 = vector.extract_strided_slice %440 {offsets = [0, 1], sizes = [2, 1], strides = [1, 1]} : vector<2x4xf32> to vector<2x1xf32>
    %452 = vector.extract_strided_slice %9 {offsets = [1, 0], sizes = [1, 12], strides = [1, 1]} : vector<4x12xf32> to vector<1x12xf32>
    %453 = vector.broadcast %451 : vector<2x1xf32> to vector<2x12xf32>
    %454 = vector.broadcast %452 : vector<1x12xf32> to vector<2x12xf32>
    %455 = arith.mulf %453, %454 : vector<2x12xf32>
    %456 = arith.addf %450, %455 : vector<2x12xf32>
    %457 = vector.extract_strided_slice %440 {offsets = [0, 2], sizes = [2, 1], strides = [1, 1]} : vector<2x4xf32> to vector<2x1xf32>
    %458 = vector.extract_strided_slice %9 {offsets = [2, 0], sizes = [1, 12], strides = [1, 1]} : vector<4x12xf32> to vector<1x12xf32>
    %459 = vector.broadcast %457 : vector<2x1xf32> to vector<2x12xf32>
    %460 = vector.broadcast %458 : vector<1x12xf32> to vector<2x12xf32>
    %461 = arith.mulf %459, %460 : vector<2x12xf32>
    %462 = arith.addf %456, %461 : vector<2x12xf32>
    %463 = vector.extract_strided_slice %440 {offsets = [0, 3], sizes = [2, 1], strides = [1, 1]} : vector<2x4xf32> to vector<2x1xf32>
    %464 = vector.extract_strided_slice %9 {offsets = [3, 0], sizes = [1, 12], strides = [1, 1]} : vector<4x12xf32> to vector<1x12xf32>
    %465 = vector.broadcast %463 : vector<2x1xf32> to vector<2x12xf32>
    %466 = vector.broadcast %464 : vector<1x12xf32> to vector<2x12xf32>
    %467 = arith.mulf %465, %466 : vector<2x12xf32>
    %468 = arith.addf %462, %467 : vector<2x12xf32>
    %469 = vector.extract_strided_slice %109 {offsets = [0, 6, 0], sizes = [2, 1, 8], strides = [1, 1, 1]} : vector<2x8x12xf32> to vector<2x1x8xf32>
    %470 = vector.shape_cast %469 : vector<2x1x8xf32> to vector<2x8xf32>
    %471 = vector.extract_strided_slice %468 {offsets = [0, 0], sizes = [2, 8], strides = [1, 1]} : vector<2x12xf32> to vector<2x8xf32>
    %472 = arith.addf %470, %471 : vector<2x8xf32>
    %473 = arith.negf %472 : vector<2x8xf32>
    %474 = math.exp %473 : vector<2x8xf32>
    %cst_67 = arith.constant 1.000000e+00 : f32
    %475 = vector.broadcast %cst_67 : f32 to vector<2x8xf32>
    %476 = arith.addf %475, %474 : vector<2x8xf32>
    %477 = arith.divf %475, %476 : vector<2x8xf32>
    %478 = vector.extract_strided_slice %477 {offsets = [0, 0], sizes = [2, 4], strides = [1, 1]} : vector<2x8xf32> to vector<2x4xf32>
    %479 = vector.extract_strided_slice %477 {offsets = [0, 4], sizes = [2, 4], strides = [1, 1]} : vector<2x8xf32> to vector<2x4xf32>
    %480 = vector.extract_strided_slice %109 {offsets = [0, 6, 8], sizes = [2, 1, 4], strides = [1, 1, 1]} : vector<2x8x12xf32> to vector<2x1x4xf32>
    %481 = vector.shape_cast %480 : vector<2x1x4xf32> to vector<2x4xf32>
    %482 = vector.extract_strided_slice %468 {offsets = [0, 8], sizes = [2, 4], strides = [1, 1]} : vector<2x12xf32> to vector<2x4xf32>
    %483 = arith.mulf %478, %482 : vector<2x4xf32>
    %484 = arith.addf %481, %483 : vector<2x4xf32>
    %485 = math.tanh %484 : vector<2x4xf32>
    %cst_68 = arith.constant 1.000000e+00 : f32
    %486 = vector.broadcast %cst_68 : f32 to vector<2x4xf32>
    %487 = arith.subf %486, %479 : vector<2x4xf32>
    %488 = arith.mulf %487, %485 : vector<2x4xf32>
    %489 = arith.mulf %479, %440 : vector<2x4xf32>
    %490 = arith.addf %488, %489 : vector<2x4xf32>
    %491 = vector.extract_strided_slice %1 {offsets = [0, 6], sizes = [2, 1], strides = [1, 1]} : vector<2x8xf32> to vector<2x1xf32>
    %492 = arith.subf %490, %440 : vector<2x4xf32>
    %493 = vector.broadcast %491 : vector<2x1xf32> to vector<2x4xf32>
    %494 = arith.mulf %493, %492 : vector<2x4xf32>
    %495 = arith.addf %440, %494 : vector<2x4xf32>
    %c0_69 = arith.constant 0 : index
    %c7 = arith.constant 7 : index
    %c0_70 = arith.constant 0 : index
    %496 = vector.load %arg20[%c0_69, %c7, %c0_70] : memref<2x8x4xf32, #tpu.memory_space<vmem>>, vector<2x1x4xf32>
    %497 = vector.shape_cast %496 : vector<2x1x4xf32> to vector<2x4xf32>
    %498 = vector.shape_cast %495 : vector<2x4xf32> to vector<2x1x4xf32>
    tpu.vector_store %arg20[%c0_69, %c7, %c0_70], %498 {strides = array<i32>} : memref<2x8x4xf32, #tpu.memory_space<vmem>>, vector<2x1x4xf32>,
    %499 = vector.extract_strided_slice %495 {offsets = [0, 0], sizes = [2, 1], strides = [1, 1]} : vector<2x4xf32> to vector<2x1xf32>
    %500 = vector.extract_strided_slice %9 {offsets = [0, 0], sizes = [1, 12], strides = [1, 1]} : vector<4x12xf32> to vector<1x12xf32>
    %501 = vector.broadcast %499 : vector<2x1xf32> to vector<2x12xf32>
    %502 = vector.broadcast %500 : vector<1x12xf32> to vector<2x12xf32>
    %503 = arith.mulf %501, %502 : vector<2x12xf32>
    %504 = vector.broadcast %10 : vector<1x12xf32> to vector<2x12xf32>
    %505 = arith.addf %504, %503 : vector<2x12xf32>
    %506 = vector.extract_strided_slice %495 {offsets = [0, 1], sizes = [2, 1], strides = [1, 1]} : vector<2x4xf32> to vector<2x1xf32>
    %507 = vector.extract_strided_slice %9 {offsets = [1, 0], sizes = [1, 12], strides = [1, 1]} : vector<4x12xf32> to vector<1x12xf32>
    %508 = vector.broadcast %506 : vector<2x1xf32> to vector<2x12xf32>
    %509 = vector.broadcast %507 : vector<1x12xf32> to vector<2x12xf32>
    %510 = arith.mulf %508, %509 : vector<2x12xf32>
    %511 = arith.addf %505, %510 : vector<2x12xf32>
    %512 = vector.extract_strided_slice %495 {offsets = [0, 2], sizes = [2, 1], strides = [1, 1]} : vector<2x4xf32> to vector<2x1xf32>
    %513 = vector.extract_strided_slice %9 {offsets = [2, 0], sizes = [1, 12], strides = [1, 1]} : vector<4x12xf32> to vector<1x12xf32>
    %514 = vector.broadcast %512 : vector<2x1xf32> to vector<2x12xf32>
    %515 = vector.broadcast %513 : vector<1x12xf32> to vector<2x12xf32>
    %516 = arith.mulf %514, %515 : vector<2x12xf32>
    %517 = arith.addf %511, %516 : vector<2x12xf32>
    %518 = vector.extract_strided_slice %495 {offsets = [0, 3], sizes = [2, 1], strides = [1, 1]} : vector<2x4xf32> to vector<2x1xf32>
    %519 = vector.extract_strided_slice %9 {offsets = [3, 0], sizes = [1, 12], strides = [1, 1]} : vector<4x12xf32> to vector<1x12xf32>
    %520 = vector.broadcast %518 : vector<2x1xf32> to vector<2x12xf32>
    %521 = vector.broadcast %519 : vector<1x12xf32> to vector<2x12xf32>
    %522 = arith.mulf %520, %521 : vector<2x12xf32>
    %523 = arith.addf %517, %522 : vector<2x12xf32>
    %524 = vector.extract_strided_slice %109 {offsets = [0, 7, 0], sizes = [2, 1, 8], strides = [1, 1, 1]} : vector<2x8x12xf32> to vector<2x1x8xf32>
    %525 = vector.shape_cast %524 : vector<2x1x8xf32> to vector<2x8xf32>
    %526 = vector.extract_strided_slice %523 {offsets = [0, 0], sizes = [2, 8], strides = [1, 1]} : vector<2x12xf32> to vector<2x8xf32>
    %527 = arith.addf %525, %526 : vector<2x8xf32>
    %528 = arith.negf %527 : vector<2x8xf32>
    %529 = math.exp %528 : vector<2x8xf32>
    %cst_71 = arith.constant 1.000000e+00 : f32
    %530 = vector.broadcast %cst_71 : f32 to vector<2x8xf32>
    %531 = arith.addf %530, %529 : vector<2x8xf32>
    %532 = arith.divf %530, %531 : vector<2x8xf32>
    %533 = vector.extract_strided_slice %532 {offsets = [0, 0], sizes = [2, 4], strides = [1, 1]} : vector<2x8xf32> to vector<2x4xf32>
    %534 = vector.extract_strided_slice %532 {offsets = [0, 4], sizes = [2, 4], strides = [1, 1]} : vector<2x8xf32> to vector<2x4xf32>
    %535 = vector.extract_strided_slice %109 {offsets = [0, 7, 8], sizes = [2, 1, 4], strides = [1, 1, 1]} : vector<2x8x12xf32> to vector<2x1x4xf32>
    %536 = vector.shape_cast %535 : vector<2x1x4xf32> to vector<2x4xf32>
    %537 = vector.extract_strided_slice %523 {offsets = [0, 8], sizes = [2, 4], strides = [1, 1]} : vector<2x12xf32> to vector<2x4xf32>
    %538 = arith.mulf %533, %537 : vector<2x4xf32>
    %539 = arith.addf %536, %538 : vector<2x4xf32>
    %540 = math.tanh %539 : vector<2x4xf32>
    %cst_72 = arith.constant 1.000000e+00 : f32
    %541 = vector.broadcast %cst_72 : f32 to vector<2x4xf32>
    %542 = arith.subf %541, %534 : vector<2x4xf32>
    %543 = arith.mulf %542, %540 : vector<2x4xf32>
    %544 = arith.mulf %534, %495 : vector<2x4xf32>
    %545 = arith.addf %543, %544 : vector<2x4xf32>
    %546 = vector.extract_strided_slice %1 {offsets = [0, 7], sizes = [2, 1], strides = [1, 1]} : vector<2x8xf32> to vector<2x1xf32>
    %547 = arith.subf %545, %495 : vector<2x4xf32>
    %548 = vector.broadcast %546 : vector<2x1xf32> to vector<2x4xf32>
    %549 = arith.mulf %548, %547 : vector<2x4xf32>
    %550 = arith.addf %495, %549 : vector<2x4xf32>
    %c0_73 = arith.constant 0 : index
    %c0_74 = arith.constant 0 : index
    %c0_75 = arith.constant 0 : index
    %551 = vector.load %arg20[%c0_73, %c0_74, %c0_75] : memref<2x8x4xf32, #tpu.memory_space<vmem>>, vector<2x8x4xf32>
    %552 = vector.shape_cast %551 : vector<2x8x4xf32> to vector<16x4xf32>
    %553 = vector.shape_cast %11 : vector<1x4xf32> to vector<1x1x4xf32>
    %554 = vector.broadcast %553 : vector<1x1x4xf32> to vector<2x8x4xf32>
    %555 = arith.mulf %551, %554 : vector<2x8x4xf32>
    %cst_76 = arith.constant dense<0.000000e+00> : vector<2x8xf32>
    %556 = vector.multi_reduction <add>, %555, %cst_76 [2] : vector<2x8x4xf32> to vector<2x8xf32>
    %557 = vector.broadcast %12 : vector<1x1xf32> to vector<2x8xf32>
    %558 = arith.addf %556, %557 : vector<2x8xf32>
    %cst_77 = arith.constant 0.000000e+00 : f32
    %559 = vector.broadcast %cst_77 : f32 to vector<2x8xf32>
    %560 = arith.maximumf %558, %559 : vector<2x8xf32>
    %561 = vector.broadcast %cst_77 : f32 to vector<2x8xf32>
    %562 = arith.subf %558, %561 : vector<2x8xf32>
    %563 = arith.cmpf one, %562, %562 : vector<2x8xf32>
    %564 = vector.broadcast %cst_77 : f32 to vector<2x8xf32>
    %565 = arith.addf %558, %564 : vector<2x8xf32>
    %566 = math.absf %562 : vector<2x8xf32>
    %cst_78 = arith.constant 0.000000e+00 : f32
    %567 = vector.broadcast %cst_78 : f32 to vector<2x8xf32>
    %568 = arith.subf %567, %566 : vector<2x8xf32>
    %569 = math.exp %568 : vector<2x8xf32>
    %570 = math.log1p %569 : vector<2x8xf32>
    %571 = arith.addf %560, %570 : vector<2x8xf32>
    %572 = arith.select %563, %565, %571 : vector<2x8xi1>, vector<2x8xf32>
    %cst_79 = arith.constant dense<0.000000e+00> : vector<16x5xf32>
    %573 = tpu.matmul %552, %13, %cst_79 {dimension_numbers = #tpu.dot_dimension_numbers<[1], [0], [0], [1], [0, 0, 1, 1], [], []>} : vector<16x4xf32>, vector<4x5xf32>, vector<16x5xf32> -> vector<16x5xf32>
    %574 = vector.broadcast %14 : vector<1x5xf32> to vector<16x5xf32>
    %575 = arith.addf %573, %574 : vector<16x5xf32>
    %576 = vector.shape_cast %575 : vector<16x5xf32> to vector<2x8x5xf32>
    %cst_80 = arith.constant dense<0xFF800000> : vector<2x8xf32>
    %577 = vector.multi_reduction <maximumf>, %576, %cst_80 [2] : vector<2x8x5xf32> to vector<2x8xf32>
    %cst_81 = arith.constant 0xFF800000 : f32
    %578 = vector.broadcast %cst_81 : f32 to vector<2x8xf32>
    %579 = arith.maximumf %578, %577 : vector<2x8xf32>
    %580 = vector.shape_cast %579 : vector<2x8xf32> to vector<2x8x1xf32>
    %581 = vector.broadcast %580 : vector<2x8x1xf32> to vector<2x8x5xf32>
    %582 = arith.subf %576, %581 : vector<2x8x5xf32>
    %583 = math.exp %582 : vector<2x8x5xf32>
    %cst_82 = arith.constant dense<0.000000e+00> : vector<2x8xf32>
    %584 = vector.multi_reduction <add>, %583, %cst_82 [2] : vector<2x8x5xf32> to vector<2x8xf32>
    %585 = vector.shape_cast %584 : vector<2x8xf32> to vector<2x8x1xf32>
    %586 = math.log %585 : vector<2x8x1xf32>
    %587 = vector.broadcast %586 : vector<2x8x1xf32> to vector<2x8x5xf32>
    %588 = arith.subf %582, %587 : vector<2x8x5xf32>
    %589 = math.exp %588 : vector<2x8x5xf32>
    %590 = arith.mulf %588, %24 : vector<2x8x5xf32>
    %cst_83 = arith.constant dense<0.000000e+00> : vector<2x8xf32>
    %591 = vector.multi_reduction <add>, %590, %cst_83 [2] : vector<2x8x5xf32> to vector<2x8xf32>
    %cst_84 = arith.constant -18.420681 : f32
    %592 = vector.broadcast %cst_84 : f32 to vector<2x8xf32>
    %593 = arith.maximumf %591, %592 : vector<2x8xf32>
    %594 = vector.broadcast %cst_84 : f32 to vector<2x8xf32>
    %595 = arith.subf %591, %594 : vector<2x8xf32>
    %596 = arith.cmpf one, %595, %595 : vector<2x8xf32>
    %597 = vector.broadcast %cst_84 : f32 to vector<2x8xf32>
    %598 = arith.addf %591, %597 : vector<2x8xf32>
    %599 = math.absf %595 : vector<2x8xf32>
    %cst_85 = arith.constant 0.000000e+00 : f32
    %600 = vector.broadcast %cst_85 : f32 to vector<2x8xf32>
    %601 = arith.subf %600, %599 : vector<2x8xf32>
    %602 = math.exp %601 : vector<2x8xf32>
    %603 = math.log1p %602 : vector<2x8xf32>
    %604 = arith.addf %593, %603 : vector<2x8xf32>
    %605 = arith.select %596, %598, %604 : vector<2x8xi1>, vector<2x8xf32>
    %606 = arith.mulf %605, %1 : vector<2x8xf32>
    %cst_86 = arith.constant dense<0.000000e+00> : vector<2xf32>
    %607 = vector.multi_reduction <add>, %606, %cst_86 [1] : vector<2x8xf32> to vector<2xf32>
    %608 = vector.shape_cast %607 : vector<2xf32> to vector<2x1xf32>
    %609 = arith.mulf %572, %102 : vector<2x8xf32>
    %610 = arith.mulf %609, %1 : vector<2x8xf32>
    %611 = tpu.iota {dimensions = array<i32: 0>} : vector<8x8xi32>
    %612 = tpu.iota {dimensions = array<i32: 1>} : vector<8x8xi32>
    %613 = arith.cmpi sle, %611, %612 : vector<8x8xi32>
    %614 = arith.extui %613 : vector<8x8xi1> to vector<8x8xi32>
    %615 = arith.sitofp %614 : vector<8x8xi32> to vector<8x8xf32>
    %cst_87 = arith.constant dense<0.000000e+00> : vector<2x8xf32>
    %616 = tpu.matmul %610, %615, %cst_87 {dimension_numbers = #tpu.dot_dimension_numbers<[1], [0], [0], [1], [0, 0, 1, 1], [], []>} : vector<2x8xf32>, vector<8x8xf32>, vector<2x8xf32> -> vector<2x8xf32>
    %cst_88 = arith.constant dense<0.000000e+00> : vector<2xf32>
    %617 = vector.multi_reduction <add>, %610, %cst_88 [1] : vector<2x8xf32> to vector<2xf32>
    %618 = vector.shape_cast %617 : vector<2xf32> to vector<2x1xf32>
    %619 = vector.broadcast %11 : vector<1x4xf32> to vector<2x4xf32>
    %620 = arith.mulf %550, %619 : vector<2x4xf32>
    %cst_89 = arith.constant dense<0.000000e+00> : vector<2xf32>
    %621 = vector.multi_reduction <add>, %620, %cst_89 [1] : vector<2x4xf32> to vector<2xf32>
    %622 = vector.shape_cast %621 : vector<2xf32> to vector<2x1xf32>
    %623 = vector.broadcast %12 : vector<1x1xf32> to vector<2x1xf32>
    %624 = arith.addf %622, %623 : vector<2x1xf32>
    %cst_90 = arith.constant 0.000000e+00 : f32
    %625 = vector.broadcast %cst_90 : f32 to vector<2x1xf32>
    %626 = arith.maximumf %624, %625 : vector<2x1xf32>
    %627 = vector.broadcast %cst_90 : f32 to vector<2x1xf32>
    %628 = arith.subf %624, %627 : vector<2x1xf32>
    %629 = arith.cmpf one, %628, %628 : vector<2x1xf32>
    %630 = vector.broadcast %cst_90 : f32 to vector<2x1xf32>
    %631 = arith.addf %624, %630 : vector<2x1xf32>
    %632 = math.absf %628 : vector<2x1xf32>
    %cst_91 = arith.constant 0.000000e+00 : f32
    %633 = vector.broadcast %cst_91 : f32 to vector<2x1xf32>
    %634 = arith.subf %633, %632 : vector<2x1xf32>
    %635 = math.exp %634 : vector<2x1xf32>
    %636 = math.log1p %635 : vector<2x1xf32>
    %637 = arith.addf %626, %636 : vector<2x1xf32>
    %638 = arith.select %629, %631, %637 : vector<2x1xi1>, vector<2x1xf32>
    %639 = arith.subf %5, %100 : vector<2x1xf32>
    %cst_92 = arith.constant 0.000000e+00 : f32
    %640 = vector.broadcast %cst_92 : f32 to vector<2x1xf32>
    %641 = arith.maximumf %639, %640 : vector<2x1xf32>
    %642 = arith.mulf %638, %641 : vector<2x1xf32>
    %643 = arith.addf %618, %642 : vector<2x1xf32>
    %cst_93 = arith.constant 9.99999993E-9 : f32
    %644 = vector.broadcast %cst_93 : f32 to vector<2x8xf32>
    %645 = arith.addf %572, %644 : vector<2x8xf32>
    %646 = math.log %645 : vector<2x8xf32>
    %647 = arith.mulf %646, %1 : vector<2x8xf32>
    %cst_94 = arith.constant dense<0.000000e+00> : vector<2xf32>
    %648 = vector.multi_reduction <add>, %647, %cst_94 [1] : vector<2x8xf32> to vector<2xf32>
    %649 = vector.shape_cast %648 : vector<2xf32> to vector<2x1xf32>
    %650 = arith.subf %649, %643 : vector<2x1xf32>
    %651 = tpu.concatenate %551, %60 in 2 : vector<2x8x4xf32>, vector<2x8x4xf32> -> vector<2x8x8xf32>
    %652 = vector.shape_cast %651 : vector<2x8x8xf32> to vector<16x8xf32>
    %cst_95 = arith.constant dense<0.000000e+00> : vector<16x64xf32>
    %653 = tpu.matmul %652, %15, %cst_95 {dimension_numbers = #tpu.dot_dimension_numbers<[1], [0], [0], [1], [0, 0, 1, 1], [], []>} : vector<16x8xf32>, vector<8x64xf32>, vector<16x64xf32> -> vector<16x64xf32>
    %654 = vector.broadcast %16 : vector<1x64xf32> to vector<16x64xf32>
    %655 = arith.addf %653, %654 : vector<16x64xf32>
    %cst_96 = arith.constant 0.000000e+00 : f32
    %656 = vector.broadcast %cst_96 : f32 to vector<16x64xf32>
    %657 = arith.maximumf %655, %656 : vector<16x64xf32>
    %658 = vector.broadcast %cst_96 : f32 to vector<16x64xf32>
    %659 = arith.subf %655, %658 : vector<16x64xf32>
    %660 = arith.cmpf one, %659, %659 : vector<16x64xf32>
    %661 = vector.broadcast %cst_96 : f32 to vector<16x64xf32>
    %662 = arith.addf %655, %661 : vector<16x64xf32>
    %663 = math.absf %659 : vector<16x64xf32>
    %cst_97 = arith.constant 0.000000e+00 : f32
    %664 = vector.broadcast %cst_97 : f32 to vector<16x64xf32>
    %665 = arith.subf %664, %663 : vector<16x64xf32>
    %666 = math.exp %665 : vector<16x64xf32>
    %667 = math.log1p %666 : vector<16x64xf32>
    %668 = arith.addf %657, %667 : vector<16x64xf32>
    %669 = arith.select %660, %662, %668 : vector<16x64xi1>, vector<16x64xf32>
    %cst_98 = arith.constant dense<0.000000e+00> : vector<16x4xf32>
    %670 = tpu.matmul %669, %17, %cst_98 {dimension_numbers = #tpu.dot_dimension_numbers<[1], [0], [0], [1], [0, 0, 1, 1], [], []>} : vector<16x64xf32>, vector<64x4xf32>, vector<16x4xf32> -> vector<16x4xf32>
    %671 = vector.broadcast %18 : vector<1x4xf32> to vector<16x4xf32>
    %672 = arith.addf %670, %671 : vector<16x4xf32>
    %673 = vector.shape_cast %672 : vector<16x4xf32> to vector<2x8x4xf32>
    %674 = vector.extract_strided_slice %673 {offsets = [0, 0, 0], sizes = [2, 8, 2], strides = [1, 1, 1]} : vector<2x8x4xf32> to vector<2x8x2xf32>
    %675 = vector.extract_strided_slice %673 {offsets = [0, 0, 2], sizes = [2, 8, 2], strides = [1, 1, 1]} : vector<2x8x4xf32> to vector<2x8x2xf32>
    %676 = arith.subf %2, %674 : vector<2x8x2xf32>
    %cst_99 = arith.constant 0.000000e+00 : f32
    %677 = vector.broadcast %cst_99 : f32 to vector<2x8x2xf32>
    %678 = arith.subf %677, %675 : vector<2x8x2xf32>
    %679 = math.exp %678 : vector<2x8x2xf32>
    %680 = arith.mulf %676, %679 : vector<2x8x2xf32>
    %681 = arith.mulf %680, %680 : vector<2x8x2xf32>
    %cst_100 = arith.constant 2.000000e+00 : f32
    %682 = vector.broadcast %cst_100 : f32 to vector<2x8x2xf32>
    %683 = arith.mulf %682, %675 : vector<2x8x2xf32>
    %684 = arith.addf %681, %683 : vector<2x8x2xf32>
    %cst_101 = arith.constant 1.83787704 : f32
    %685 = vector.broadcast %cst_101 : f32 to vector<2x8x2xf32>
    %686 = arith.addf %684, %685 : vector<2x8x2xf32>
    %cst_102 = arith.constant dense<0.000000e+00> : vector<2x8xf32>
    %687 = vector.multi_reduction <add>, %686, %cst_102 [2] : vector<2x8x2xf32> to vector<2x8xf32>
    %cst_103 = arith.constant -5.000000e-01 : f32
    %688 = vector.broadcast %cst_103 : f32 to vector<2x8xf32>
    %689 = arith.mulf %688, %687 : vector<2x8xf32>
    %690 = arith.mulf %689, %1 : vector<2x8xf32>
    %cst_104 = arith.constant dense<0.000000e+00> : vector<2xf32>
    %691 = vector.multi_reduction <add>, %690, %cst_104 [1] : vector<2x8xf32> to vector<2xf32>
    %692 = vector.shape_cast %691 : vector<2xf32> to vector<2x1xf32>
    %693 = vector.extract_strided_slice %589 {offsets = [0, 0, 0], sizes = [2, 1, 5], strides = [1, 1, 1]} : vector<2x8x5xf32> to vector<2x1x5xf32>
    %694 = vector.shape_cast %693 : vector<2x1x5xf32> to vector<2x5xf32>
    %695 = vector.extract_strided_slice %589 {offsets = [0, 1, 0], sizes = [2, 1, 5], strides = [1, 1, 1]} : vector<2x8x5xf32> to vector<2x1x5xf32>
    %696 = vector.shape_cast %695 : vector<2x1x5xf32> to vector<2x5xf32>
    %697 = vector.extract_strided_slice %589 {offsets = [0, 2, 0], sizes = [2, 1, 5], strides = [1, 1, 1]} : vector<2x8x5xf32> to vector<2x1x5xf32>
    %698 = vector.shape_cast %697 : vector<2x1x5xf32> to vector<2x5xf32>
    %699 = vector.extract_strided_slice %589 {offsets = [0, 3, 0], sizes = [2, 1, 5], strides = [1, 1, 1]} : vector<2x8x5xf32> to vector<2x1x5xf32>
    %700 = vector.shape_cast %699 : vector<2x1x5xf32> to vector<2x5xf32>
    %701 = vector.extract_strided_slice %589 {offsets = [0, 4, 0], sizes = [2, 1, 5], strides = [1, 1, 1]} : vector<2x8x5xf32> to vector<2x1x5xf32>
    %702 = vector.shape_cast %701 : vector<2x1x5xf32> to vector<2x5xf32>
    %703 = vector.extract_strided_slice %589 {offsets = [0, 5, 0], sizes = [2, 1, 5], strides = [1, 1, 1]} : vector<2x8x5xf32> to vector<2x1x5xf32>
    %704 = vector.shape_cast %703 : vector<2x1x5xf32> to vector<2x5xf32>
    %705 = vector.extract_strided_slice %589 {offsets = [0, 6, 0], sizes = [2, 1, 5], strides = [1, 1, 1]} : vector<2x8x5xf32> to vector<2x1x5xf32>
    %706 = vector.shape_cast %705 : vector<2x1x5xf32> to vector<2x5xf32>
    %707 = vector.extract_strided_slice %589 {offsets = [0, 7, 0], sizes = [2, 1, 5], strides = [1, 1, 1]} : vector<2x8x5xf32> to vector<2x1x5xf32>
    %708 = vector.shape_cast %707 : vector<2x1x5xf32> to vector<2x5xf32>
    %709 = tpu.concatenate %694, %696, %698, %700, %702, %704, %706, %708 in 1 : vector<2x5xf32>, vector<2x5xf32>, vector<2x5xf32>, vector<2x5xf32>, vector<2x5xf32>, vector<2x5xf32>, vector<2x5xf32>, vector<2x5xf32> -> vector<2x40xf32>
    %cst_105 = arith.constant 0.000000e+00 : f32
    %710 = vector.broadcast %cst_105 : f32 to vector<2x65xf32>
    %711 = tpu.concatenate %692, %650, %608, %550, %572, %616, %709, %710 in 1 : vector<2x1xf32>, vector<2x1xf32>, vector<2x1xf32>, vector<2x4xf32>, vector<2x8xf32>, vector<2x8xf32>, vector<2x40xf32>, vector<2x65xf32> -> vector<2x128xf32>
    %c0_106 = arith.constant 0 : index
    %c0_107 = arith.constant 0 : index
    %712 = vector.load %arg19[%c0_106, %c0_107] : memref<2x128xf32, #tpu.memory_space<vmem>>, vector<2x128xf32>
    tpu.vector_store %arg19[%c0_106, %c0_107], %711 {strides = array<i32>} : memref<2x128xf32, #tpu.memory_space<vmem>>, vector<2x128xf32>,
    return
  }
  func.func @transform_0(%arg0: i32) -> (i32, i32) {
    %c0_i32 = arith.constant 0 : i32
    %c0_i32_0 = arith.constant 0 : i32
    return %arg0, %c0_i32 : i32, i32
  }
  func.func @transform_1(%arg0: i32) -> (i32, i32) {
    %c0_i32 = arith.constant 0 : i32
    %c0_i32_0 = arith.constant 0 : i32
    return %arg0, %c0_i32 : i32, i32
  }
  func.func @transform_2(%arg0: i32) -> (i32, i32, i32) {
    %c0_i32 = arith.constant 0 : i32
    %c0_i32_0 = arith.constant 0 : i32
    %c0_i32_1 = arith.constant 0 : i32
    return %arg0, %c0_i32, %c0_i32_0 : i32, i32, i32
  }
  func.func @transform_3(%arg0: i32) -> (i32, i32) {
    %c0_i32 = arith.constant 0 : i32
    %c0_i32_0 = arith.constant 0 : i32
    return %arg0, %c0_i32 : i32, i32
  }
  func.func @transform_4(%arg0: i32) -> (i32, i32) {
    %c0_i32 = arith.constant 0 : i32
    %c0_i32_0 = arith.constant 0 : i32
    return %arg0, %c0_i32 : i32, i32
  }
  func.func @transform_5(%arg0: i32) -> (i32, i32) {
    %c0_i32 = arith.constant 0 : i32
    %c0_i32_0 = arith.constant 0 : i32
    %c0_i32_1 = arith.constant 0 : i32
    return %c0_i32, %c0_i32_0 : i32, i32
  }
  func.func @transform_6(%arg0: i32) -> (i32, i32) {
    %c0_i32 = arith.constant 0 : i32
    %c0_i32_0 = arith.constant 0 : i32
    %c0_i32_1 = arith.constant 0 : i32
    return %c0_i32, %c0_i32_0 : i32, i32
  }
  func.func @transform_7(%arg0: i32) -> (i32, i32) {
    %c0_i32 = arith.constant 0 : i32
    %c0_i32_0 = arith.constant 0 : i32
    %c0_i32_1 = arith.constant 0 : i32
    return %c0_i32, %c0_i32_0 : i32, i32
  }
  func.func @transform_8(%arg0: i32) -> (i32, i32) {
    %c0_i32 = arith.constant 0 : i32
    %c0_i32_0 = arith.constant 0 : i32
    %c0_i32_1 = arith.constant 0 : i32
    return %c0_i32, %c0_i32_0 : i32, i32
  }
  func.func @transform_9(%arg0: i32) -> (i32, i32) {
    %c0_i32 = arith.constant 0 : i32
    %c0_i32_0 = arith.constant 0 : i32
    %c0_i32_1 = arith.constant 0 : i32
    return %c0_i32, %c0_i32_0 : i32, i32
  }
  func.func @transform_10(%arg0: i32) -> (i32, i32) {
    %c0_i32 = arith.constant 0 : i32
    %c0_i32_0 = arith.constant 0 : i32
    %c0_i32_1 = arith.constant 0 : i32
    return %c0_i32, %c0_i32_0 : i32, i32
  }
  func.func @transform_11(%arg0: i32) -> (i32, i32) {
    %c0_i32 = arith.constant 0 : i32
    %c0_i32_0 = arith.constant 0 : i32
    %c0_i32_1 = arith.constant 0 : i32
    return %c0_i32, %c0_i32_0 : i32, i32
  }
  func.func @transform_12(%arg0: i32) -> (i32, i32) {
    %c0_i32 = arith.constant 0 : i32
    %c0_i32_0 = arith.constant 0 : i32
    %c0_i32_1 = arith.constant 0 : i32
    return %c0_i32, %c0_i32_0 : i32, i32
  }
  func.func @transform_13(%arg0: i32) -> (i32, i32) {
    %c0_i32 = arith.constant 0 : i32
    %c0_i32_0 = arith.constant 0 : i32
    %c0_i32_1 = arith.constant 0 : i32
    return %c0_i32, %c0_i32_0 : i32, i32
  }
  func.func @transform_14(%arg0: i32) -> (i32, i32) {
    %c0_i32 = arith.constant 0 : i32
    %c0_i32_0 = arith.constant 0 : i32
    %c0_i32_1 = arith.constant 0 : i32
    return %c0_i32, %c0_i32_0 : i32, i32
  }
  func.func @transform_15(%arg0: i32) -> (i32, i32) {
    %c0_i32 = arith.constant 0 : i32
    %c0_i32_0 = arith.constant 0 : i32
    %c0_i32_1 = arith.constant 0 : i32
    return %c0_i32, %c0_i32_0 : i32, i32
  }
  func.func @transform_16(%arg0: i32) -> (i32, i32) {
    %c0_i32 = arith.constant 0 : i32
    %c0_i32_0 = arith.constant 0 : i32
    %c0_i32_1 = arith.constant 0 : i32
    return %c0_i32, %c0_i32_0 : i32, i32
  }
  func.func @transform_17(%arg0: i32) -> (i32, i32) {
    %c0_i32 = arith.constant 0 : i32
    %c0_i32_0 = arith.constant 0 : i32
    %c0_i32_1 = arith.constant 0 : i32
    return %c0_i32, %c0_i32_0 : i32, i32
  }
  func.func @transform_18(%arg0: i32) -> (i32, i32) {
    %c0_i32 = arith.constant 0 : i32
    %c0_i32_0 = arith.constant 0 : i32
    return %arg0, %c0_i32 : i32, i32
  }
}

</mosaic_0001>

<bundles_post_ra>
// kernel: tpu_custom_call.1
= control target key start
LH: loop header
LB: loop body
LE: loop exit
PB: predicated region body
PF: predicated region fallthrough
CT: control target
= control target key end

     0   :  { %s3520_s0 = inlined_call_operand.vmem [shape: f32[2,2], index: 0, kind: input, shape index: {}]   ;;  %s3521_s1 = inlined_call_operand.vmem [shape: f32[2,8], index: 1, kind: input, shape index: {}]   ;;  %s3522_s2 = inlined_call_operand.vmem [shape: f32[2,8,2], index: 2, kind: input, shape index: {}]   ;;  %s3523_s3 = inlined_call_operand.vmem [shape: s32[2,8], index: 3, kind: input, shape index: {}]   ;;  %s3524_s4 = inlined_call_operand.vmem [shape: f32[2,8], index: 4, kind: input, shape index: {}]   ;;  %s3525_s5 = inlined_call_operand.vmem [shape: f32[5,4], index: 5, kind: input, shape index: {}]   ;;  %s3526_s6 = inlined_call_operand.vmem [shape: f32[7,12], index: 6, kind: input, shape index: {}]   ;;  %s3527_s7 = inlined_call_operand.vmem [shape: f32[4,12], index: 7, kind: input, shape index: {}]   ;;  %s3528_s8 = inlined_call_operand.vmem [shape: f32[1,12], index: 8, kind: input, shape index: {}]   ;;  %s3529_s9 = inlined_call_operand.vmem [shape: f32[1,12], index: 9, kind: input, shape index: {}]   ;;  %s3530_s10 = inlined_call_operand.vmem [shape: f32[1,4], index: 10, kind: input, shape index: {}]   ;;  %s3531_s11 = inlined_call_operand.<no memory space> [shape: f32[1,1], index: 11, kind: input, shape index: {}]   ;;  %s3532_s12 = inlined_call_operand.vmem [shape: f32[4,5], index: 12, kind: input, shape index: {}]   ;;  %s3533_s13 = inlined_call_operand.vmem [shape: f32[1,5], index: 13, kind: input, shape index: {}]   ;;  %s3534_s14 = inlined_call_operand.vmem [shape: f32[8,64], index: 14, kind: input, shape index: {}]   ;;  %s3535_s15 = inlined_call_operand.vmem [shape: f32[1,64], index: 15, kind: input, shape index: {}]   ;;  %s3536_s16 = inlined_call_operand.vmem [shape: f32[64,4], index: 16, kind: input, shape index: {}]   ;;  %s3537_s17 = inlined_call_operand.vmem [shape: f32[1,4], index: 17, kind: input, shape index: {}]   ;;  %s3538_s18 = inlined_call_operand.hbm [shape: f32[2,128], index: 18, kind: output, shape index: {}]  }
   0x1   :  { %3542 = sst [smem:[#allocation7_spill]] %s3520_s0  ;;  %v23_v0 = vstv %s3531_s11 }
   0x2   :  { %3543 = sst [smem:[#allocation8_spill]] %s3521_s1  ;;  %24 = vst [vmem:[#allocation3] sm:$0x1] %v23_v0 }
   0x3   :  { %3544 = sst [smem:[#allocation9_spill]] %s3522_s2 }
   0x4   :  { %s3545_s0 = sld [smem:[#allocation8_spill]]  ;;  %v2784_v2 = vld [vmem:[%s3524_s4] sm:$0x3] }
   0x5   :  { %s3546_s22 = sld [smem:[#allocation7_spill]] }
   0xa   :  { %v2779_v1 = vld [vmem:[%s3545_s0] sm:$0x3] }
   0xb   :  { %v2789_v3 = vld [vmem:[%s3546_s22] sm:$0x3] }
   0xc   :  { %v192_v4 = vsub.f32 %v2779_v1, %v2789_v3 }
   0xd   :  { %25 = vsyncpa [#allocation5], 0  ;;  %s2642_s11 = smov 1   ;;  %s2643_s2 = smov 127   ;;  %v88_v27 = vlaneseq  ;;  %v66_v32 = vld [vmem:[%s3523_s3] sm:$0x3] }
   0xe   :  { %v193_v5 = vmul.f32 %v192_v4, %v2784_v2  ;;  %s2644_s23 = smov 2   ;;  %s2645_s24 = smov 126   ;;  %vm412_vm0 = vcmask 24576   ;;  %v2652_v35 = vmov 0.0   ;;  %v2653_v36 = vmov 1  }
   0xf   :  { %s2646_s25 = smov 3   ;;  %s2647_s26 = smov 125   ;;  %v2822_v28 = vshrl.u32 %v88_v27, 7  ;;  %413 = vst.msk [vmem:[#allocation2] sm:$0x1] %vm412_vm0, %v2652_v35  ;;  %2408 = vset.pattern.permute.xlu1 %v2653_v36  ;;  %v2654_v38 = vmov 0  }
  0x10   :  { %v194_v6 = vadd.f32 %v193_v5, %v2789_v3  ;;  %s2648_s27 = smov 4   ;;  %s2649_s28 = smov 124   ;;  %414 = vst.msk [vmem:[#allocation2 + $0x8] sm:$0x1] %vm412_vm0, %v2652_v35  ;;  %2402 = vset.pattern.permute.xlu0 %v2654_v38  ;;  %v2846_v42 = vand.u32 127, %v88_v27  ;;  %v2657_v51 = vmov 2  }
  0x11   :  { %s2650_s29 = smov 5   ;;  %v2829_v31 = vsub.s32 0, %v2822_v28  ;;  %s2651_s1 = smov 123   ;;  %v2842_v37 = vsub.s32 1, %v2822_v28  ;;  %v2658_v52 = vmov 3   ;;  %v2659_v53 = vmov 4  }
  0x12   :  { %196 = vrot.lane.b32.xlu0 %v194_v6, %s2642_s11  ;;  %s2655_s3 = smov 6   ;;  %s2656_s20 = smov 122   ;;  %v68_v58 = vld [vmem:[%s3525_s5] sm:$0x1f]  ;;  %v154_v63 = vsub.s32 2, %v2822_v28  ;;  %v170_v0 = vsub.s32 3, %v2822_v28 }
  0x13   :  { %v93_v34 = vrot.slane %v66_v32, %v2829_v31  ;;  %v100_v41 = vrot.slane %v66_v32, %v2842_v37  ;;  %s2660_s21 = smov 7   ;;  %s3547_s30 = sld [smem:[#allocation9_spill]]  ;;  %v139_v59 = vrot.slane %v68_v58, %v2842_v37  ;;  %v123_v60 = vrot.slane %v68_v58, %v2829_v31 }
  0x14   :  { %vm272_vm3 = vcmask 7168   ;;  %vm274_vm4 = vcmask 15360   ;;  %vm276_vm5 = vcmask 23552   ;;  %vm278_vm6 = vcmask 31744  }
  0x15   :  { %vm280_vm7 = vcmask 39936   ;;  %vm282_vm8 = vcmask 48128   ;;  %vm284_vm9 = vcmask 56320   ;;  %vm333_vm10 = vcmask 1046528  }
  0x16   :  { %vm501_vm11 = vcmask 1041409   ;;  %vm1490_vm12 = vcmask 1043456  }
  0x19   :  { %v64_v56 = vld [vmem:[%s3547_s30] sm:$0xff]  ;;  %v65_v57 = vld [vmem:[%s3547_s30 + $0x8] sm:$0xff] }
  0x84   :  { %v2796_v7 = vpop.permute.xlu0 %196 }
  0x85   :  { %v199_v8 = vsub.f32 %v2779_v1, %v2796_v7 }
  0x87   :  { %v200_v9 = vmul.f32 %v199_v8, %v2784_v2 }
  0x89   :  { %202 = vrot.lane.b32.xlu0 %v200_v9, %s2643_s2 }
  0xfb   :  { %v203_v10 = vpop.permute.xlu0 %202 }
  0xfc   :  { %v205_v11 = vadd.f32 %v203_v10, %v194_v6 }
  0xfe   :  { %207 = vrot.lane.b32.xlu1 %v205_v11, %s2644_s23 }
 0x170   :  { %v2802_v12 = vpop.permute.xlu1 %207 }
 0x171   :  { %v210_v13 = vsub.f32 %v2779_v1, %v2802_v12 }
 0x173   :  { %v211_v14 = vmul.f32 %v210_v13, %v2784_v2 }
 0x175   :  { %213 = vrot.lane.b32.xlu1 %v211_v14, %s2645_s24  ;;  %v155_v14 = vrot.slane %v68_v58, %v154_v63 }
 0x1e7   :  { %v214_v15 = vpop.permute.xlu1 %213 }
 0x1e8   :  { %v216_v16 = vadd.f32 %v214_v15, %v205_v11  ;;  %v171_v15 = vrot.slane %v68_v58, %v170_v0 }
 0x1ea   :  { %218 = vrot.lane.b32.xlu0 %v216_v16, %s2646_s25 }
 0x25c   :  { %v2809_v17 = vpop.permute.xlu0 %218 }
 0x25d   :  { %v221_v18 = vsub.f32 %v2779_v1, %v2809_v17 }
 0x25f   :  { %v222_v19 = vmul.f32 %v221_v18, %v2784_v2 }
 0x261   :  { %224 = vrot.lane.b32.xlu1 %v222_v19, %s2647_s26  ;;  %s2675_s26 = smov 30  }
 0x2d3   :  { %v225_v20 = vpop.permute.xlu1 %224 }
 0x2d4   :  { %v227_v21 = vadd.f32 %v225_v20, %v216_v16 }
 0x2d6   :  { %229 = vrot.lane.b32.xlu0 %v227_v21, %s2648_s27 }
 0x348   :  { %v2815_v22 = vpop.permute.xlu0 %229 }
 0x349   :  { %v232_v23 = vsub.f32 %v2779_v1, %v2815_v22 }
 0x34b   :  { %v233_v24 = vmul.f32 %v232_v23, %v2784_v2 }
 0x34d   :  { %235 = vrot.lane.b32.xlu1 %v233_v24, %s2649_s28 }
 0x3bf   :  { %v236_v25 = vpop.permute.xlu1 %235 }
 0x3c0   :  { %v238_v26 = vadd.f32 %v236_v25, %v227_v21  ;;  %v186_v21 = vsub.s32 4, %v2822_v28 }
 0x3c2   :  { %240 = vrot.lane.b32.xlu0 %v238_v26, %s2650_s29 }
 0x434   :  { %v2824_v29 = vpop.permute.xlu0 %240 }
 0x435   :  { %v243_v30 = vsub.f32 %v2779_v1, %v2824_v29 }
 0x437   :  { %v244_v33 = vmul.f32 %v243_v30, %v2784_v2 }
 0x439   :  { %246 = vrot.lane.b32.xlu1 %v244_v33, %s2651_s1 }
 0x43d   :  { %95 = vbcast.lane.b32.xlu1 %v93_v34, 256  ;;  %v187_v34 = vrot.slane %v68_v58, %v186_v21  ;;  %v273_v58 = vsel %vm272_vm3, %v2789_v3, %v2796_v7 }
 0x4ab   :  { %v247_v39 = vpop.permute.xlu1 %246 }
 0x4ac   :  { %v249_v40 = vadd.f32 %v247_v39, %v238_v26 }
 0x4ae   :  { %251 = vrot.lane.b32.xlu0 %v249_v40, %s2655_s3 }
 0x4af   :  { %v96_v43 = vpop.permute.xlu1 %95 }
 0x4b0   :  { %vm104_vm1 = vcmp.eq.s32.totalorder %v2846_v42, %v96_v43 }
 0x4b1   :  { %v2855_v48 = vsel %vm104_vm1, 1.0, %v2652_v35  ;;  %vm1706_vm1 = vcmp.le.s32.totalorder %v2822_v28, %v2846_v42 }
 0x4b2   :  { %102 = vbcast.lane.b32.xlu0 %v100_v41, 256 }
 0x520   :  { %v2848_v44 = vpop.permute.xlu0 %251 }
 0x521   :  { %v254_v45 = vsub.f32 %v2779_v1, %v2848_v44 }
 0x523   :  { %v255_v46 = vmul.f32 %v254_v45, %v2784_v2 }
 0x524   :  { %v103_v47 = vpop.permute.xlu0 %102 }
 0x525   :  { %257 = vrot.lane.b32.xlu1 %v255_v46, %s2656_s20  ;;  %vm105_vm2 = vcmp.eq.s32.totalorder %v2846_v42, %v103_v47 }
 0x526   :  { %v2859_v49 = vsel %vm105_vm2, 1.0, %v2652_v35  ;;  %vm2667_vm2 = vmmov 0  }
 0x527   :  { %v2409_v50 = vpack.i.bf16 %v2859_v49, %v2855_v48 }
 0x529   :  { %2410 = vperm.xlu1 %2408, %v2409_v50   ;;  %2404 = vperm.xlu0 %2402, %v2409_v50  }
 0x52d   :  { %2414 = vset.pattern.permute.xlu1 %v2657_v51  ;;  %2420 = vset.pattern.permute.xlu0 %v2658_v52 }
 0x52e   :  { %2416 = vperm.xlu1 %2414, %v2409_v50   ;;  %2422 = vperm.xlu0 %2420, %v2409_v50  }
 0x532   :  { %2426 = vset.pattern.permute.xlu1 %v2659_v53  ;;  %2433 = vset.pattern.permute.xlu0 %v2653_v36 }
 0x533   :  { %2428 = vperm.xlu1 %2426, %v2409_v50  }
 0x537   :  { %2432 = vset.pattern.permute.xlu1 %v2654_v38 }
 0x597   :  { %v258_v54 = vpop.permute.xlu1 %257 }
 0x598   :  { %v2868_v55 = vadd.f32 %v258_v54, %v249_v40 }
 0x59a   :  { %262 = vrot.lane.b32.xlu1 %v2868_v55, %s2660_s21  ;;  %s2671_s21 = smov 25  }
 0x59e   :  { %303 = vrot.lane.b32.xlu1 %v64_v56, %s2642_s11 }
 0x5a2   :  { %305 = vrot.lane.b32.xlu1 %v65_v57, %s2642_s11 }
 0x5a4   :  { %v2411_v61 = vpop.permute.xlu1 %2410  ;;  %v2405_v62 = vpop.permute.xlu0 %2404 }
 0x5a5   :  { %v2413_v4 = vunpack.i.h.bf16 %v2411_v61  ;;  %v2412_v5 = vunpack.i.l.bf16 %v2411_v61  ;;  %v2407_v6 = vunpack.i.h.bf16 %v2405_v62  ;;  %v2406_v8 = vunpack.i.l.bf16 %v2405_v62 }
 0x5a7   :  { %v141_v9 = vmul.f32 %v2413_v4, %v139_v59  ;;  %v140_v10 = vmul.f32 %v2412_v5, %v139_v59  ;;  %v125_v11 = vmul.f32 %v2407_v6, %v123_v60  ;;  %v124_v13 = vmul.f32 %v2406_v8, %v123_v60  ;;  %v71_v60 = vld [vmem:[%s3527_s7] sm:$0xf]  ;;  %s2672_s7 = smov 35  }
 0x5a8   :  { %v275_v59 = vsel %vm274_vm4, %v273_v58, %v2802_v12  ;;  %v2910_v7 = vrot.slane %v71_v60, %v2829_v31  ;;  %v2913_v12 = vrot.slane %v71_v60, %v2842_v37 }
 0x5a9   :  { %v142_v16 = vadd.f32 %v140_v10, %v124_v13  ;;  %v143_v18 = vadd.f32 %v141_v9, %v125_v11  ;;  %v2417_v19 = vpop.permute.xlu1 %2416  ;;  %v2423_v20 = vpop.permute.xlu0 %2422  ;;  %v277_v61 = vsel %vm276_vm5, %v275_v59, %v2809_v17  ;;  %v69_v17 = vld [vmem:[%s3526_s6] sm:$0x7f]  ;;  %s2661_s6 = smov 120  }
 0x5aa   :  { %v2419_v23 = vunpack.i.h.bf16 %v2417_v19  ;;  %v2418_v24 = vunpack.i.l.bf16 %v2417_v19  ;;  %v2425_v25 = vunpack.i.h.bf16 %v2423_v20  ;;  %v2424_v26 = vunpack.i.l.bf16 %v2423_v20  ;;  %2327 = vmatprep.subr.msk.mxu1 %vm333_vm10, %v69_v17 }
 0x5ab   :  { %v279_v62 = vsel %vm278_vm6, %v277_v61, %v2815_v22  ;;  %2328 = vmatpush3.msk.msra.mxu1 %vm333_vm10, %v69_v17  ;;  %v419_v8 = vmul.f32 0.0, %v2910_v7  ;;  %v431_v9 = vmul.f32 0.0, %v2913_v12 }
 0x5ac   :  { %v157_v27 = vmul.f32 %v2419_v23, %v155_v14  ;;  %v156_v30 = vmul.f32 %v2418_v24, %v155_v14  ;;  %v173_v32 = vmul.f32 %v2425_v25, %v171_v15  ;;  %v172_v33 = vmul.f32 %v2424_v26, %v171_v15 }
 0x5ad   :  { %v281_v3 = vsel %vm280_vm7, %v279_v62, %v2824_v29  ;;  %v2923_v29 = vrot.slane %v71_v60, %v154_v63  ;;  %v2939_v63 = vrot.slane %v71_v60, %v170_v0 }
 0x5ae   :  { %v158_v39 = vadd.f32 %v156_v30, %v142_v16  ;;  %v159_v40 = vadd.f32 %v157_v27, %v143_v18  ;;  %v2429_v41 = vpop.permute.xlu1 %2428  ;;  %v283_v4 = vsel %vm282_vm8, %v281_v3, %v2848_v44  ;;  %v2929_v44 = vld [vmem:[%s3529_s9] ss:$0 sm:$0xff]  ;;  %vm1726_vm8 = vcmask 64512  }
 0x5af   :  { %v2431_v43 = vunpack.i.h.bf16 %v2429_v41  ;;  %v2430_v45 = vunpack.i.l.bf16 %v2429_v41  ;;  %v426_v11 = vadd.f32 %v2929_v44, %v419_v8  ;;  %v443_v16 = vmul.f32 0.0, %v2939_v63 }
 0x5b0   :  { %v175_v46 = vadd.f32 %v173_v32, %v159_v40  ;;  %v174_v47 = vadd.f32 %v172_v33, %v158_v39  ;;  %v2268_v32 = vld [vmem:[%s3528_s8] ss:$0 sm:$0xff]  ;;  %s2662_s8 = smov 8  }
 0x5b1   :  { %v189_v50 = vmul.f32 %v2431_v43, %v187_v34  ;;  %v188_v54 = vmul.f32 %v2430_v45, %v187_v34  ;;  %v432_v13 = vadd.f32 %v431_v9, %v426_v11 }
 0x5b3   :  { %v2889_v56 = vadd.f32 %v189_v50, %v175_v46  ;;  %v2891_v57 = vadd.f32 %v188_v54, %v174_v47 }
 0x5b5   :  { %313 = vrot.lane.b32.xlu1 %v2889_v56, %s2646_s25 }
 0x60c   :  { %v2916_v5 = vpop.permute.xlu1 %262 }
 0x60d   :  { %v285_v22 = vsel %vm284_vm9, %v283_v4, %v2916_v5 }
 0x60e   :  { %v286_v6 = vsub.f32 %v2779_v1, %v285_v22  ;;  %v437_v1 = vmul.f32 0.0, %v2923_v29 }
 0x610   :  { %v2934_v10 = vrot.slane %v286_v6, %v2829_v31  ;;  %v2944_v14 = vrot.slane %v286_v6, %v2842_v37  ;;  %v438_v15 = vadd.f32 %v437_v1, %v432_v13  ;;  %v304_v0 = vpop.permute.xlu1 %303 }
 0x612   :  { %292 = vbcast.lane.b32.xlu0 %v2934_v10, 256  ;;  %v444_v18 = vadd.f32 %v443_v16, %v438_v15 }
 0x614   :  { %v306_v20 = vpop.permute.xlu1 %305 }
 0x616   :  { %299 = vbcast.lane.b32.xlu0 %v2944_v14, 256 }
 0x61a   :  { %311 = vrot.lane.b32.xlu0 %v2891_v57, %s2646_s25 }
 0x61e   :  { %460 = vrot.lane.b32.xlu0 %v444_v18, %s2661_s6 }
 0x627   :  { %v314_v26 = vpop.permute.xlu1 %313 }
 0x684   :  { %v293_v19 = vpop.permute.xlu0 %292 }
 0x685   :  { %v317_v24 = vsel %vm272_vm3, %v293_v19, %v304_v0 }
 0x688   :  { %v300_v21 = vpop.permute.xlu0 %299 }
 0x689   :  { %v318_v23 = vsel %vm272_vm3, %v300_v21, %v306_v20 }
 0x68a   :  { %v320_v30 = vsel %vm276_vm5, %v318_v23, %v314_v26 }
 0x68c   :  { %v312_v25 = vpop.permute.xlu0 %311 }
 0x68d   :  { %v319_v27 = vsel %vm276_vm5, %v317_v24, %v312_v25  ;;  %v2663_v25 = vmov 1966171168  }
 0x68e   :  { %2329 = vmatprep.mubr.msk.f32.mxu1 %vm284_vm9, %v319_v27  ;;  %v510_v26 = vunpack.c.l.s4 %v2663_v25 }
 0x68f   :  { %2330 = vmatmul.mubr.msk.f32.vlgmr.msra.gmra.mxu1 %vm284_vm9, %v320_v30 }
 0x690   :  { %v461_v59 = vpop.permute.xlu0 %460  ;;  %v511_v27 = vunpack.c.0.s8 %v510_v26 }
 0x74f   :  { %v2331_v33 = vpop.f32.mrf.mxu1 }
 0x750   :  { %v2960_v34 = vadd.f32 %v2331_v33, %v2268_v32 }
 0x751   :  { %v403_v39 = vpop.f32.mrf.mxu1 }
 0x752   :  { %v2962_v40 = vadd.f32 %v2268_v32, %v403_v39  ;;  %v446_v41 = vadd.f32 %v444_v18, %v2960_v34  ;;  %v2976_v32 = vsub.s32 %v511_v27, %v2822_v28 }
 0x754   :  { %v445_v43 = vadd.f32 %v444_v18, %v2962_v40  ;;  %v2274_v45 = vmul.f32 -1.442695, %v446_v41 }
 0x756   :  { %v2273_v46 = vmul.f32 -1.442695, %v445_v43  ;;  %2469 = vpow2.f32 %v2274_v45 }
 0x758   :  { %2471 = vpow2.f32 %v2273_v46 }
 0x763   :  { %v2470_v47 = vpop.eup %2469 }
 0x764   :  { %v454_v50 = vadd.f32 1.0, %v2470_v47 }
 0x765   :  { %v2472_v54 = vpop.eup %2471 }
 0x766   :  { %v453_v58 = vadd.f32 1.0, %v2472_v54  ;;  %2473 = vrcp.f32 %v454_v50 }
 0x768   :  { %2475 = vrcp.f32 %v453_v58 }
 0x773   :  { %v2474_v60 = vpop.eup %2473 }
 0x774   :  { %v464_v61 = vmul.f32 %v2474_v60, %v461_v59  ;;  %v478_v11 = vsub.f32 1.0, %v2474_v60  ;;  %v490_v13 = vmul.f32 0.0, %v2474_v60 }
 0x775   :  { %v2476_v62 = vpop.eup %2475 }
 0x776   :  { %v463_v3 = vmul.f32 %v2476_v62, %v461_v59  ;;  %469 = vrot.lane.b32.xlu1 %v464_v61, %s2662_s8  ;;  %v477_v16 = vsub.f32 1.0, %v2476_v62  ;;  %v489_v19 = vmul.f32 0.0, %v2476_v62 }
 0x778   :  { %467 = vrot.lane.b32.xlu0 %v463_v3, %s2662_s8 }
 0x7e8   :  { %v470_v4 = vpop.permute.xlu1 %469 }
 0x7e9   :  { %v474_v17 = vadd.f32 %v470_v4, %v2960_v34 }
 0x7ea   :  { %v468_v22 = vpop.permute.xlu0 %467 }
 0x7eb   :  { %2477 = vtanh.f32 %v474_v17  ;;  %v473_v6 = vadd.f32 %v468_v22, %v2962_v40 }
 0x7ed   :  { %2479 = vtanh.f32 %v473_v6 }
 0x7f8   :  { %v2478_v8 = vpop.eup %2477 }
 0x7f9   :  { %483 = vrot.lane.b32.xlu1 %v2478_v8, %s2649_s28 }
 0x7fa   :  { %v2480_v9 = vpop.eup %2479 }
 0x7fb   :  { %481 = vrot.lane.b32.xlu0 %v2480_v9, %s2649_s28 }
 0x7fd   :  { %495 = vperm.xlu1 %2432, %v2784_v2  }
 0x86b   :  { %v484_v1 = vpop.permute.xlu1 %483 }
 0x86c   :  { %v488_v15 = vmul.f32 %v484_v1, %v478_v11 }
 0x86d   :  { %v482_v18 = vpop.permute.xlu0 %481 }
 0x86e   :  { %v492_v0 = vadd.f32 %v490_v13, %v488_v15  ;;  %v487_v20 = vmul.f32 %v482_v18, %v477_v16 }
 0x870   :  { %v500_v21 = vrot.slane %v492_v0, 7  ;;  %v491_v23 = vadd.f32 %v489_v19, %v487_v20 }
 0x872   :  { %v502_v24 = vsel %vm501_vm11, %v500_v21, %v491_v23 }
 0x873   :  { %503 = vrot.lane.b32.xlu0 %v502_v24, %s2649_s28 }
 0x878   :  { %v496_v30 = vpop.permute.xlu1 %495 }
 0x8e5   :  { %v504_v33 = vpop.permute.xlu0 %503 }
 0x8e6   :  { %v2978_v39 = vmul.f32 %v504_v33, %v496_v30 }
 0x8e8   :  { %v515_v41 = vrot.slane %v2978_v39, %v2976_v32  ;;  %542 = vperm.xlu0 %2433, %v2978_v39   ;;  %536 = vperm.xlu1 %2432, %v2978_v39   ;;  %v609_v25 = vrot.slane %v2978_v39, 7 }
 0x8ea   :  { %v516_v43 = vcombine.high %v515_v41, %v515_v41  ;;  %v523_v45 = vrot.slane %v515_v41, %v2976_v32 }
 0x8ec   :  { %v530_v46 = vrot.slane %v516_v43, %v2976_v32  ;;  %533 = vst.msk [vmem:[#allocation2 + $0x1] sm:$0x1] %vm412_vm0, %v523_v45  ;;  %2434 = vset.pattern.permute.xlu1 %v2657_v51 }
 0x8ed   :  { %548 = vperm.xlu1 %2434, %v2978_v39  }
 0x8ee   :  { %534 = vst.msk [vmem:[#allocation2 + $0x9] sm:$0x1] %vm412_vm0, %v530_v46 }
 0x8f1   :  { %2435 = vset.pattern.permute.xlu1 %v2658_v52 }
 0x8f2   :  { %554 = vperm.xlu1 %2435, %v2978_v39  }
 0x8f6   :  { %2437 = vset.pattern.permute.xlu1 %v2653_v36 }
 0x963   :  { %v537_v47 = vpop.permute.xlu1 %536  ;;  %v543_v54 = vpop.permute.xlu0 %542 }
 0x964   :  { %v539_v50 = vmul.f32 %v537_v47, %v2910_v7  ;;  %v545_v59 = vmul.f32 %v543_v54, %v2913_v12 }
 0x966   :  { %v540_v58 = vadd.f32 %v2929_v44, %v539_v50 }
 0x968   :  { %v549_v60 = vpop.permute.xlu1 %548  ;;  %v546_v61 = vadd.f32 %v545_v59, %v540_v58 }
 0x969   :  { %v551_v62 = vmul.f32 %v549_v60, %v2923_v29 }
 0x96b   :  { %v552_v4 = vadd.f32 %v551_v62, %v546_v61 }
 0x96d   :  { %v555_v3 = vpop.permute.xlu1 %554 }
 0x96e   :  { %v557_v17 = vmul.f32 %v555_v3, %v2939_v63 }
 0x970   :  { %v558_v22 = vadd.f32 %v557_v17, %v552_v4 }
 0x972   :  { %579 = vrot.lane.b32.xlu1 %v558_v22, %s2661_s6  ;;  %v560_v6 = vrot.slane %v558_v22, 7  ;;  %v564_v8 = vadd.f32 %v558_v22, %v2960_v34 }
 0x974   :  { %577 = vrot.lane.b32.xlu0 %v560_v6, %s2661_s6  ;;  %v563_v9 = vadd.f32 %v560_v6, %v2962_v40  ;;  %v2276_v11 = vmul.f32 -1.442695, %v564_v8 }
 0x976   :  { %v2275_v1 = vmul.f32 -1.442695, %v563_v9  ;;  %2481 = vpow2.f32 %v2276_v11 }
 0x978   :  { %2483 = vpow2.f32 %v2275_v1 }
 0x983   :  { %v2482_v13 = vpop.eup %2481 }
 0x984   :  { %v572_v16 = vadd.f32 1.0, %v2482_v13 }
 0x985   :  { %v2484_v15 = vpop.eup %2483 }
 0x986   :  { %v571_v18 = vadd.f32 1.0, %v2484_v15  ;;  %2485 = vrcp.f32 %v572_v16 }
 0x988   :  { %2487 = vrcp.f32 %v571_v18 }
 0x993   :  { %v2486_v0 = vpop.eup %2485 }
 0x994   :  { %v598_v60 = vsub.f32 1.0, %v2486_v0 }
 0x995   :  { %v2488_v21 = vpop.eup %2487 }
 0x996   :  { %v597_v46 = vsub.f32 1.0, %v2488_v21 }
 0x9e4   :  { %v580_v19 = vpop.permute.xlu1 %579 }
 0x9e5   :  { %v584_v20 = vmul.f32 %v2486_v0, %v580_v19 }
 0x9e6   :  { %v578_v23 = vpop.permute.xlu0 %577 }
 0x9e7   :  { %v583_v24 = vmul.f32 %v2488_v21, %v578_v23  ;;  %589 = vrot.lane.b32.xlu1 %v584_v20, %s2662_s8 }
 0x9e9   :  { %587 = vrot.lane.b32.xlu0 %v583_v24, %s2662_s8 }
 0x9eb   :  { %610 = vrot.lane.b32.xlu1 %v609_v25, %s2648_s27 }
 0x9ef   :  { %612 = vrot.lane.b32.xlu1 %v2978_v39, %s2648_s27 }
 0xa59   :  { %v590_v26 = vpop.permute.xlu1 %589 }
 0xa5a   :  { %v594_v33 = vadd.f32 %v590_v26, %v2960_v34 }
 0xa5b   :  { %v588_v27 = vpop.permute.xlu0 %587 }
 0xa5c   :  { %v593_v30 = vadd.f32 %v588_v27, %v2962_v40 }
 0xa5d   :  { %v611_v45 = vpop.permute.xlu1 %610 }
 0xa5e   :  { %2489 = vtanh.f32 %v593_v30  ;;  %v616_v50 = vmul.f32 %v2488_v21, %v611_v45 }
 0xa5f   :  { %2491 = vtanh.f32 %v594_v33 }
 0xa61   :  { %v613_v58 = vpop.permute.xlu1 %612 }
 0xa62   :  { %v617_v62 = vmul.f32 %v2486_v0, %v613_v58 }
 0xa6b   :  { %v2490_v41 = vpop.eup %2489 }
 0xa6c   :  { %601 = vrot.lane.b32.xlu0 %v2490_v41, %s2649_s28  ;;  %v2492_v43 = vpop.eup %2491 }
 0xa70   :  { %603 = vrot.lane.b32.xlu0 %v2492_v43, %s2649_s28 }
 0xa74   :  { %623 = vperm.xlu0 %2433, %v2784_v2  }
 0xa78   :  { %2436 = vset.pattern.permute.xlu0 %v2654_v38 }
 0xade   :  { %v602_v47 = vpop.permute.xlu0 %601 }
 0xadf   :  { %v607_v54 = vmul.f32 %v602_v47, %v597_v46 }
 0xae1   :  { %v618_v59 = vadd.f32 %v616_v50, %v607_v54 }
 0xae2   :  { %v604_v61 = vpop.permute.xlu0 %603 }
 0xae3   :  { %v620_v3 = vsub.f32 %v618_v59, %v611_v45  ;;  %v608_v4 = vmul.f32 %v604_v61, %v598_v60 }
 0xae5   :  { %v619_v17 = vadd.f32 %v617_v62, %v608_v4  ;;  %v628_v6 = vrot.slane %v620_v3, 1 }
 0xae7   :  { %v621_v22 = vsub.f32 %v619_v17, %v613_v58 }
 0xae9   :  { %v629_v8 = vsel %vm501_vm11, %v621_v22, %v628_v6 }
 0xaea   :  { %630 = vrot.lane.b32.xlu1 %v629_v8, %s2649_s28 }
 0xaef   :  { %v624_v9 = vpop.permute.xlu0 %623 }
 0xb5c   :  { %v631_v11 = vpop.permute.xlu1 %630 }
 0xb5d   :  { %v633_v1 = vmul.f32 %v631_v11, %v624_v9 }
 0xb5f   :  { %v3017_v13 = vadd.f32 %v633_v1, %v2978_v39 }
 0xb61   :  { %v642_v15 = vrot.slane %v3017_v13, %v2976_v32  ;;  %669 = vperm.xlu1 %2437, %v3017_v13   ;;  %663 = vperm.xlu0 %2436, %v3017_v13  }
 0xb63   :  { %v643_v16 = vcombine.high %v642_v15, %v642_v15  ;;  %v650_v18 = vrot.slane %v642_v15, %v2976_v32 }
 0xb65   :  { %2438 = vset.pattern.permute.xlu1 %v2657_v51  ;;  %2439 = vset.pattern.permute.xlu0 %v2658_v52  ;;  %660 = vst.msk [vmem:[#allocation2 + $0x2] sm:$0x1] %vm412_vm0, %v650_v18  ;;  %v657_v0 = vrot.slane %v643_v16, %v2976_v32  ;;  %v737_v16 = vrot.slane %v3017_v13, 6 }
 0xb66   :  { %675 = vperm.xlu1 %2438, %v3017_v13   ;;  %681 = vperm.xlu0 %2439, %v3017_v13  }
 0xb67   :  { %661 = vst.msk [vmem:[#allocation2 + $0xa] sm:$0x1] %vm412_vm0, %v657_v0  ;;  %v738_v0 = vrot.slane %v3017_v13, 7 }
 0xb6a   :  { %2440 = vset.pattern.permute.xlu0 %v2657_v51  ;;  %2441 = vset.pattern.permute.xlu1 %v2654_v38 }
 0xbdc   :  { %v670_v39 = vpop.permute.xlu1 %669  ;;  %v664_v19 = vpop.permute.xlu0 %663 }
 0xbdd   :  { %v666_v20 = vmul.f32 %v664_v19, %v2910_v7  ;;  %v672_v21 = vmul.f32 %v670_v39, %v2913_v12 }
 0xbdf   :  { %v667_v23 = vadd.f32 %v2929_v44, %v666_v20 }
 0xbe1   :  { %v676_v24 = vpop.permute.xlu1 %675  ;;  %v673_v25 = vadd.f32 %v672_v21, %v667_v23  ;;  %v682_v26 = vpop.permute.xlu0 %681 }
 0xbe2   :  { %v678_v27 = vmul.f32 %v676_v24, %v2923_v29  ;;  %v684_v33 = vmul.f32 %v682_v26, %v2939_v63 }
 0xbe4   :  { %v679_v30 = vadd.f32 %v678_v27, %v673_v25 }
 0xbe6   :  { %v685_v41 = vadd.f32 %v684_v33, %v679_v30 }
 0xbe8   :  { %v687_v43 = vrot.slane %v685_v41, 6  ;;  %v688_v45 = vrot.slane %v685_v41, 7 }
 0xbea   :  { %705 = vrot.lane.b32.xlu1 %v687_v43, %s2661_s6  ;;  %v691_v46 = vadd.f32 %v687_v43, %v2962_v40  ;;  %v692_v50 = vadd.f32 %v688_v45, %v2960_v34 }
 0xbec   :  { %v2277_v47 = vmul.f32 -1.442695, %v691_v46  ;;  %v2278_v54 = vmul.f32 -1.442695, %v692_v50 }
 0xbee   :  { %707 = vrot.lane.b32.xlu1 %v688_v45, %s2661_s6  ;;  %2493 = vpow2.f32 %v2277_v47 }
 0xbef   :  { %2495 = vpow2.f32 %v2278_v54 }
 0xbfb   :  { %v2494_v58 = vpop.eup %2493 }
 0xbfc   :  { %v699_v59 = vadd.f32 1.0, %v2494_v58  ;;  %v2496_v60 = vpop.eup %2495 }
 0xbfd   :  { %v700_v61 = vadd.f32 1.0, %v2496_v60 }
 0xbfe   :  { %2497 = vrcp.f32 %v699_v59 }
 0xbff   :  { %2499 = vrcp.f32 %v700_v61 }
 0xc0b   :  { %v2498_v62 = vpop.eup %2497 }
 0xc0c   :  { %v2500_v17 = vpop.eup %2499  ;;  %v725_v19 = vsub.f32 1.0, %v2498_v62 }
 0xc0d   :  { %v726_v25 = vsub.f32 1.0, %v2500_v17 }
 0xc5c   :  { %v706_v3 = vpop.permute.xlu1 %705 }
 0xc5d   :  { %v711_v4 = vmul.f32 %v2498_v62, %v706_v3 }
 0xc5f   :  { %715 = vrot.lane.b32.xlu0 %v711_v4, %s2662_s8 }
 0xc60   :  { %v708_v22 = vpop.permute.xlu1 %707 }
 0xc61   :  { %v712_v6 = vmul.f32 %v2500_v17, %v708_v22 }
 0xc63   :  { %717 = vrot.lane.b32.xlu1 %v712_v6, %s2662_s8 }
 0xcd1   :  { %v716_v8 = vpop.permute.xlu0 %715 }
 0xcd2   :  { %v721_v9 = vadd.f32 %v716_v8, %v2962_v40 }
 0xcd4   :  { %2501 = vtanh.f32 %v721_v9 }
 0xcd5   :  { %v718_v11 = vpop.permute.xlu1 %717 }
 0xcd6   :  { %v722_v1 = vadd.f32 %v718_v11, %v2960_v34 }
 0xcd8   :  { %2503 = vtanh.f32 %v722_v1 }
 0xce1   :  { %v2502_v15 = vpop.eup %2501 }
 0xce2   :  { %729 = vrot.lane.b32.xlu0 %v2502_v15, %s2649_s28 }
 0xce5   :  { %v2504_v18 = vpop.eup %2503 }
 0xce6   :  { %731 = vrot.lane.b32.xlu1 %v2504_v18, %s2649_s28  ;;  %739 = vrot.lane.b32.xlu0 %v737_v16, %s2648_s27 }
 0xcea   :  { %741 = vrot.lane.b32.xlu1 %v738_v0, %s2648_s27  ;;  %752 = vperm.xlu0 %2440, %v2784_v2  }
 0xcee   :  { %2442 = vset.pattern.permute.xlu0 %v2653_v36 }
 0xd54   :  { %v730_v39 = vpop.permute.xlu0 %729 }
 0xd55   :  { %v735_v23 = vmul.f32 %v730_v39, %v725_v19 }
 0xd58   :  { %v732_v20 = vpop.permute.xlu1 %731  ;;  %v740_v21 = vpop.permute.xlu0 %739 }
 0xd59   :  { %v745_v24 = vmul.f32 %v2498_v62, %v740_v21  ;;  %v736_v30 = vmul.f32 %v732_v20, %v726_v25 }
 0xd5b   :  { %v747_v26 = vadd.f32 %v745_v24, %v735_v23 }
 0xd5c   :  { %v742_v27 = vpop.permute.xlu1 %741 }
 0xd5d   :  { %v746_v33 = vmul.f32 %v2500_v17, %v742_v27  ;;  %v749_v41 = vsub.f32 %v747_v26, %v740_v21 }
 0xd5f   :  { %v748_v43 = vadd.f32 %v746_v33, %v736_v30  ;;  %v757_v46 = vrot.slane %v749_v41, 2 }
 0xd61   :  { %v750_v45 = vsub.f32 %v748_v43, %v742_v27 }
 0xd63   :  { %v758_v47 = vrot.slane %v750_v45, 1 }
 0xd65   :  { %v759_v50 = vsel %vm501_vm11, %v758_v47, %v757_v46  ;;  %v753_v54 = vpop.permute.xlu0 %752 }
 0xd66   :  { %760 = vrot.lane.b32.xlu1 %v759_v50, %s2649_s28 }
 0xdd8   :  { %v761_v58 = vpop.permute.xlu1 %760 }
 0xdd9   :  { %v763_v59 = vmul.f32 %v761_v58, %v753_v54 }
 0xddb   :  { %v3057_v60 = vadd.f32 %v763_v59, %v3017_v13 }
 0xddd   :  { %v772_v61 = vrot.slane %v3057_v60, %v2976_v32  ;;  %799 = vperm.xlu0 %2442, %v3057_v60   ;;  %793 = vperm.xlu1 %2441, %v3057_v60  }
 0xddf   :  { %v773_v62 = vcombine.high %v772_v61, %v772_v61  ;;  %v780_v3 = vrot.slane %v772_v61, %v2976_v32 }
 0xde1   :  { %2443 = vset.pattern.permute.xlu1 %v2657_v51  ;;  %2445 = vset.pattern.permute.xlu0 %v2658_v52  ;;  %790 = vst.msk [vmem:[#allocation2 + $0x3] sm:$0x1] %vm412_vm0, %v780_v3  ;;  %v787_v4 = vrot.slane %v773_v62, %v2976_v32  ;;  %v868_v3 = vrot.slane %v3057_v60, 6 }
 0xde2   :  { %805 = vperm.xlu1 %2443, %v3057_v60  }
 0xde3   :  { %791 = vst.msk [vmem:[#allocation2 + $0xb] sm:$0x1] %vm412_vm0, %v787_v4  ;;  %v867_v4 = vrot.slane %v3057_v60, 5 }
 0xde6   :  { %2444 = vset.pattern.permute.xlu1 %v2658_v52 }
 0xde7   :  { %811 = vperm.xlu1 %2444, %v3057_v60  }
 0xdeb   :  { %2446 = vset.pattern.permute.xlu1 %v2654_v38 }
 0xe58   :  { %v794_v13 = vpop.permute.xlu1 %793  ;;  %v800_v22 = vpop.permute.xlu0 %799 }
 0xe59   :  { %v796_v17 = vmul.f32 %v794_v13, %v2910_v7  ;;  %v802_v8 = vmul.f32 %v800_v22, %v2913_v12 }
 0xe5b   :  { %v797_v6 = vadd.f32 %v2929_v44, %v796_v17 }
 0xe5d   :  { %v806_v9 = vpop.permute.xlu1 %805  ;;  %v803_v11 = vadd.f32 %v802_v8, %v797_v6 }
 0xe5e   :  { %v808_v1 = vmul.f32 %v806_v9, %v2923_v29 }
 0xe60   :  { %v809_v16 = vadd.f32 %v808_v1, %v803_v11 }
 0xe62   :  { %v812_v15 = vpop.permute.xlu1 %811 }
 0xe63   :  { %v814_v18 = vmul.f32 %v812_v15, %v2939_v63 }
 0xe65   :  { %v815_v0 = vadd.f32 %v814_v18, %v809_v16 }
 0xe67   :  { %v818_v39 = vrot.slane %v815_v0, 6  ;;  %v817_v19 = vrot.slane %v815_v0, 5 }
 0xe69   :  { %837 = vrot.lane.b32.xlu1 %v818_v39, %s2661_s6  ;;  %835 = vrot.lane.b32.xlu0 %v817_v19, %s2661_s6  ;;  %v822_v20 = vadd.f32 %v818_v39, %v2960_v34  ;;  %v821_v21 = vadd.f32 %v817_v19, %v2962_v40 }
 0xe6b   :  { %v2280_v23 = vmul.f32 -1.442695, %v822_v20  ;;  %v2279_v24 = vmul.f32 -1.442695, %v821_v21 }
 0xe6d   :  { %2505 = vpow2.f32 %v2280_v23 }
 0xe6e   :  { %2507 = vpow2.f32 %v2279_v24 }
 0xe7a   :  { %v2506_v25 = vpop.eup %2505 }
 0xe7b   :  { %v2508_v26 = vpop.eup %2507  ;;  %v830_v27 = vadd.f32 1.0, %v2506_v25 }
 0xe7c   :  { %v829_v30 = vadd.f32 1.0, %v2508_v26 }
 0xe7d   :  { %2509 = vrcp.f32 %v830_v27 }
 0xe7e   :  { %2511 = vrcp.f32 %v829_v30 }
 0xe8a   :  { %v2510_v33 = vpop.eup %2509 }
 0xe8b   :  { %v2512_v41 = vpop.eup %2511  ;;  %v856_v22 = vsub.f32 1.0, %v2510_v33 }
 0xe8c   :  { %v855_v6 = vsub.f32 1.0, %v2512_v41 }
 0xedb   :  { %v838_v43 = vpop.permute.xlu1 %837  ;;  %v836_v45 = vpop.permute.xlu0 %835 }
 0xedc   :  { %v842_v46 = vmul.f32 %v2510_v33, %v838_v43  ;;  %v841_v47 = vmul.f32 %v2512_v41, %v836_v45 }
 0xede   :  { %847 = vrot.lane.b32.xlu1 %v842_v46, %s2662_s8  ;;  %845 = vrot.lane.b32.xlu0 %v841_v47, %s2662_s8 }
 0xf50   :  { %v848_v50 = vpop.permute.xlu1 %847  ;;  %v846_v54 = vpop.permute.xlu0 %845 }
 0xf51   :  { %v852_v58 = vadd.f32 %v848_v50, %v2960_v34  ;;  %v851_v59 = vadd.f32 %v846_v54, %v2962_v40 }
 0xf53   :  { %2513 = vtanh.f32 %v852_v58 }
 0xf54   :  { %2515 = vtanh.f32 %v851_v59 }
 0xf60   :  { %v2514_v61 = vpop.eup %2513 }
 0xf61   :  { %v2516_v62 = vpop.eup %2515  ;;  %861 = vrot.lane.b32.xlu1 %v2514_v61, %s2649_s28 }
 0xf62   :  { %859 = vrot.lane.b32.xlu0 %v2516_v62, %s2649_s28 }
 0xf65   :  { %871 = vrot.lane.b32.xlu1 %v868_v3, %s2648_s27 }
 0xf66   :  { %869 = vrot.lane.b32.xlu0 %v867_v4, %s2648_s27 }
 0xf6a   :  { %882 = vperm.xlu0 %2445, %v2784_v2  }
 0xf6e   :  { %2447 = vset.pattern.permute.xlu0 %v2653_v36 }
 0xfd3   :  { %v862_v13 = vpop.permute.xlu1 %861 }
 0xfd4   :  { %v860_v17 = vpop.permute.xlu0 %859  ;;  %v866_v9 = vmul.f32 %v862_v13, %v856_v22 }
 0xfd5   :  { %v865_v15 = vmul.f32 %v860_v17, %v855_v6 }
 0xfd7   :  { %v872_v8 = vpop.permute.xlu1 %871 }
 0xfd8   :  { %v876_v11 = vmul.f32 %v2510_v33, %v872_v8  ;;  %v870_v1 = vpop.permute.xlu0 %869 }
 0xfd9   :  { %v875_v16 = vmul.f32 %v2512_v41, %v870_v1 }
 0xfda   :  { %v878_v18 = vadd.f32 %v876_v11, %v866_v9 }
 0xfdb   :  { %v877_v0 = vadd.f32 %v875_v16, %v865_v15 }
 0xfdc   :  { %v880_v39 = vsub.f32 %v878_v18, %v872_v8 }
 0xfdd   :  { %v879_v19 = vsub.f32 %v877_v0, %v870_v1 }
 0xfde   :  { %v888_v20 = vrot.slane %v880_v39, 2 }
 0xfdf   :  { %v887_v21 = vrot.slane %v879_v19, 3 }
 0xfe1   :  { %v889_v2 = vsel %vm501_vm11, %v888_v20, %v887_v21 }
 0xfe2   :  { %890 = vrot.lane.b32.xlu1 %v889_v2, %s2649_s28 }
 0xfe5   :  { %v883_v23 = vpop.permute.xlu0 %882 }
0x1054   :  { %v891_v24 = vpop.permute.xlu1 %890 }
0x1055   :  { %v893_v25 = vmul.f32 %v891_v24, %v883_v23 }
0x1057   :  { %v3097_v26 = vadd.f32 %v893_v25, %v3057_v60 }
0x1059   :  { %v902_v27 = vrot.slane %v3097_v26, %v2976_v32  ;;  %929 = vperm.xlu0 %2447, %v3097_v26   ;;  %923 = vperm.xlu1 %2446, %v3097_v26  }
0x105b   :  { %v903_v30 = vcombine.high %v902_v27, %v902_v27  ;;  %v910_v33 = vrot.slane %v902_v27, %v2976_v32  ;;  %v998_v27 = vrot.slane %v3097_v26, 5 }
0x105d   :  { %v917_v41 = vrot.slane %v903_v30, %v2976_v32  ;;  %920 = vst.msk [vmem:[#allocation2 + $0x4] sm:$0x1] %vm412_vm0, %v910_v33  ;;  %2448 = vset.pattern.permute.xlu1 %v2657_v51  ;;  %2450 = vset.pattern.permute.xlu0 %v2659_v53  ;;  %v997_v30 = vrot.slane %v3097_v26, 4  ;;  %v3135_v33 = vld [vmem:[%s3524_s4] sm:$0x3] }
0x105e   :  { %935 = vperm.xlu1 %2448, %v3097_v26  }
0x105f   :  { %921 = vst.msk [vmem:[#allocation2 + $0xc] sm:$0x1] %vm412_vm0, %v917_v41 }
0x1062   :  { %2449 = vset.pattern.permute.xlu1 %v2658_v52 }
0x1063   :  { %941 = vperm.xlu1 %2449, %v3097_v26  }
0x1067   :  { %2451 = vset.pattern.permute.xlu1 %v2654_v38 }
0x10d4   :  { %v924_v60 = vpop.permute.xlu1 %923  ;;  %v930_v45 = vpop.permute.xlu0 %929 }
0x10d5   :  { %v926_v43 = vmul.f32 %v924_v60, %v2910_v7  ;;  %v932_v47 = vmul.f32 %v930_v45, %v2913_v12 }
0x10d7   :  { %v927_v46 = vadd.f32 %v2929_v44, %v926_v43 }
0x10d9   :  { %v936_v50 = vpop.permute.xlu1 %935  ;;  %v933_v53 = vadd.f32 %v932_v47, %v927_v46 }
0x10da   :  { %v938_v54 = vmul.f32 %v936_v50, %v2923_v29 }
0x10dc   :  { %v939_v59 = vadd.f32 %v938_v54, %v933_v53 }
0x10de   :  { %v942_v58 = vpop.permute.xlu1 %941 }
0x10df   :  { %v944_v61 = vmul.f32 %v942_v58, %v2939_v63 }
0x10e1   :  { %v945_v62 = vadd.f32 %v944_v61, %v939_v59 }
0x10e3   :  { %v948_v3 = vrot.slane %v945_v62, 5  ;;  %v947_v4 = vrot.slane %v945_v62, 4 }
0x10e5   :  { %967 = vrot.lane.b32.xlu1 %v948_v3, %s2661_s6  ;;  %965 = vrot.lane.b32.xlu0 %v947_v4, %s2661_s6  ;;  %v952_v13 = vadd.f32 %v948_v3, %v2960_v34  ;;  %v951_v17 = vadd.f32 %v947_v4, %v2962_v40 }
0x10e7   :  { %v2282_v22 = vmul.f32 -1.442695, %v952_v13  ;;  %v2281_v6 = vmul.f32 -1.442695, %v951_v17 }
0x10e9   :  { %2517 = vpow2.f32 %v2282_v22 }
0x10ea   :  { %2519 = vpow2.f32 %v2281_v6 }
0x10f6   :  { %v2518_v8 = vpop.eup %2517 }
0x10f7   :  { %v2520_v9 = vpop.eup %2519  ;;  %v960_v11 = vadd.f32 1.0, %v2518_v8 }
0x10f8   :  { %v959_v1 = vadd.f32 1.0, %v2520_v9 }
0x10f9   :  { %2521 = vrcp.f32 %v960_v11 }
0x10fa   :  { %2523 = vrcp.f32 %v959_v1 }
0x1106   :  { %v2522_v15 = vpop.eup %2521 }
0x1107   :  { %v2524_v16 = vpop.eup %2523  ;;  %v986_v43 = vsub.f32 1.0, %v2522_v15 }
0x1108   :  { %v985_v45 = vsub.f32 1.0, %v2524_v16 }
0x1157   :  { %v968_v18 = vpop.permute.xlu1 %967  ;;  %v966_v0 = vpop.permute.xlu0 %965 }
0x1158   :  { %v972_v39 = vmul.f32 %v2522_v15, %v968_v18  ;;  %v971_v19 = vmul.f32 %v2524_v16, %v966_v0 }
0x115a   :  { %977 = vrot.lane.b32.xlu1 %v972_v39, %s2662_s8  ;;  %975 = vrot.lane.b32.xlu0 %v971_v19, %s2662_s8 }
0x11cc   :  { %v978_v20 = vpop.permute.xlu1 %977  ;;  %v976_v21 = vpop.permute.xlu0 %975 }
0x11cd   :  { %v982_v2 = vadd.f32 %v978_v20, %v2960_v34  ;;  %v981_v23 = vadd.f32 %v976_v21, %v2962_v40 }
0x11cf   :  { %2525 = vtanh.f32 %v982_v2 }
0x11d0   :  { %2527 = vtanh.f32 %v981_v23 }
0x11dc   :  { %v2526_v24 = vpop.eup %2525 }
0x11dd   :  { %v2528_v25 = vpop.eup %2527  ;;  %991 = vrot.lane.b32.xlu1 %v2526_v24, %s2649_s28 }
0x11de   :  { %989 = vrot.lane.b32.xlu0 %v2528_v25, %s2649_s28 }
0x11e1   :  { %1001 = vrot.lane.b32.xlu1 %v998_v27, %s2648_s27 }
0x11e2   :  { %999 = vrot.lane.b32.xlu0 %v997_v30, %s2648_s27 }
0x11e6   :  { %1012 = vperm.xlu0 %2450, %v3135_v33  }
0x11ea   :  { %2452 = vset.pattern.permute.xlu0 %v2653_v36 }
0x124f   :  { %v992_v41 = vpop.permute.xlu1 %991 }
0x1250   :  { %v990_v60 = vpop.permute.xlu0 %989  ;;  %v996_v47 = vmul.f32 %v992_v41, %v986_v43 }
0x1251   :  { %v995_v54 = vmul.f32 %v990_v60, %v985_v45 }
0x1253   :  { %v1002_v46 = vpop.permute.xlu1 %1001 }
0x1254   :  { %v1006_v50 = vmul.f32 %v2522_v15, %v1002_v46  ;;  %v1000_v53 = vpop.permute.xlu0 %999 }
0x1255   :  { %v1005_v58 = vmul.f32 %v2524_v16, %v1000_v53 }
0x1256   :  { %v1008_v59 = vadd.f32 %v1006_v50, %v996_v47 }
0x1257   :  { %v1007_v61 = vadd.f32 %v1005_v58, %v995_v54 }
0x1258   :  { %v1010_v62 = vsub.f32 %v1008_v59, %v1002_v46 }
0x1259   :  { %v1009_v3 = vsub.f32 %v1007_v61, %v1000_v53 }
0x125a   :  { %v1018_v4 = vrot.slane %v1010_v62, 3 }
0x125b   :  { %v1017_v13 = vrot.slane %v1009_v3, 4 }
0x125d   :  { %v1019_v17 = vsel %vm501_vm11, %v1018_v4, %v1017_v13 }
0x125e   :  { %1020 = vrot.lane.b32.xlu1 %v1019_v17, %s2649_s28 }
0x1261   :  { %v1013_v22 = vpop.permute.xlu0 %1012 }
0x12d0   :  { %v1021_v6 = vpop.permute.xlu1 %1020 }
0x12d1   :  { %v1023_v8 = vmul.f32 %v1021_v6, %v1013_v22  ;;  %v2664_v6 = vmov 5  }
0x12d3   :  { %v3142_v9 = vadd.f32 %v1023_v8, %v3097_v26 }
0x12d5   :  { %v1032_v11 = vrot.slane %v3142_v9, %v2976_v32  ;;  %1059 = vperm.xlu0 %2452, %v3142_v9   ;;  %1053 = vperm.xlu1 %2451, %v3142_v9  }
0x12d7   :  { %v1033_v1 = vcombine.high %v1032_v11, %v1032_v11  ;;  %v1040_v15 = vrot.slane %v1032_v11, %v2976_v32 }
0x12d9   :  { %v1047_v16 = vrot.slane %v1033_v1, %v2976_v32  ;;  %1050 = vst.msk [vmem:[#allocation2 + $0x5] sm:$0x1] %vm412_vm0, %v1040_v15  ;;  %2453 = vset.pattern.permute.xlu1 %v2657_v51  ;;  %2455 = vset.pattern.permute.xlu0 %v2664_v6  ;;  %v1128_v1 = vrot.slane %v3142_v9, 4  ;;  %v1127_v15 = vrot.slane %v3142_v9, 3 }
0x12da   :  { %1065 = vperm.xlu1 %2453, %v3142_v9  }
0x12db   :  { %1051 = vst.msk [vmem:[#allocation2 + $0xd] sm:$0x1] %vm412_vm0, %v1047_v16 }
0x12de   :  { %2454 = vset.pattern.permute.xlu1 %v2658_v52 }
0x12df   :  { %1071 = vperm.xlu1 %2454, %v3142_v9  }
0x12e3   :  { %2456 = vset.pattern.permute.xlu1 %v2654_v38 }
0x1350   :  { %v1054_v26 = vpop.permute.xlu1 %1053  ;;  %v1060_v0 = vpop.permute.xlu0 %1059 }
0x1351   :  { %v1056_v18 = vmul.f32 %v1054_v26, %v2910_v7  ;;  %v1062_v19 = vmul.f32 %v1060_v0, %v2913_v12 }
0x1353   :  { %v1057_v39 = vadd.f32 %v2929_v44, %v1056_v18 }
0x1355   :  { %v1066_v20 = vpop.permute.xlu1 %1065  ;;  %v1063_v21 = vadd.f32 %v1062_v19, %v1057_v39 }
0x1356   :  { %v1068_v2 = vmul.f32 %v1066_v20, %v2923_v29 }
0x1358   :  { %v1069_v24 = vadd.f32 %v1068_v2, %v1063_v21 }
0x135a   :  { %v1072_v23 = vpop.permute.xlu1 %1071 }
0x135b   :  { %v1074_v25 = vmul.f32 %v1072_v23, %v2939_v63 }
0x135d   :  { %v1075_v27 = vadd.f32 %v1074_v25, %v1069_v24 }
0x135f   :  { %v1078_v30 = vrot.slane %v1075_v27, 4  ;;  %v1077_v41 = vrot.slane %v1075_v27, 3 }
0x1361   :  { %1097 = vrot.lane.b32.xlu1 %v1078_v30, %s2661_s6  ;;  %1095 = vrot.lane.b32.xlu0 %v1077_v41, %s2661_s6  ;;  %v1082_v60 = vadd.f32 %v1078_v30, %v2960_v34  ;;  %v1081_v44 = vadd.f32 %v1077_v41, %v2962_v40 }
0x1363   :  { %v2284_v43 = vmul.f32 -1.442695, %v1082_v60  ;;  %v2283_v45 = vmul.f32 -1.442695, %v1081_v44 }
0x1365   :  { %2529 = vpow2.f32 %v2284_v43 }
0x1366   :  { %2531 = vpow2.f32 %v2283_v45 }
0x1372   :  { %v2530_v46 = vpop.eup %2529 }
0x1373   :  { %v2532_v47 = vpop.eup %2531  ;;  %v1090_v50 = vadd.f32 1.0, %v2530_v46 }
0x1374   :  { %v1089_v53 = vadd.f32 1.0, %v2532_v47 }
0x1375   :  { %2533 = vrcp.f32 %v1090_v50 }
0x1376   :  { %2535 = vrcp.f32 %v1089_v53 }
0x1382   :  { %v2534_v54 = vpop.eup %2533 }
0x1383   :  { %v2536_v58 = vpop.eup %2535  ;;  %v1116_v18 = vsub.f32 1.0, %v2534_v54 }
0x1384   :  { %v1115_v0 = vsub.f32 1.0, %v2536_v58 }
0x13d3   :  { %v1098_v59 = vpop.permute.xlu1 %1097  ;;  %v1096_v61 = vpop.permute.xlu0 %1095 }
0x13d4   :  { %v1102_v62 = vmul.f32 %v2534_v54, %v1098_v59  ;;  %v1101_v3 = vmul.f32 %v2536_v58, %v1096_v61 }
0x13d6   :  { %1107 = vrot.lane.b32.xlu1 %v1102_v62, %s2662_s8  ;;  %1105 = vrot.lane.b32.xlu0 %v1101_v3, %s2662_s8  ;;  %v3200_v62 = vld [vmem:[%s3529_s9] ss:$0 sm:$0xff] }
0x1448   :  { %v1108_v4 = vpop.permute.xlu1 %1107  ;;  %v1106_v13 = vpop.permute.xlu0 %1105 }
0x1449   :  { %v1112_v17 = vadd.f32 %v1108_v4, %v2960_v34  ;;  %v1111_v22 = vadd.f32 %v1106_v13, %v2962_v40 }
0x144b   :  { %2537 = vtanh.f32 %v1112_v17 }
0x144c   :  { %2539 = vtanh.f32 %v1111_v22 }
0x1458   :  { %v2538_v8 = vpop.eup %2537 }
0x1459   :  { %v2540_v11 = vpop.eup %2539  ;;  %1121 = vrot.lane.b32.xlu1 %v2538_v8, %s2649_s28 }
0x145a   :  { %1119 = vrot.lane.b32.xlu0 %v2540_v11, %s2649_s28 }
0x145d   :  { %1131 = vrot.lane.b32.xlu1 %v1128_v1, %s2648_s27 }
0x145e   :  { %1129 = vrot.lane.b32.xlu0 %v1127_v15, %s2648_s27 }
0x1462   :  { %1142 = vperm.xlu0 %2455, %v3135_v33  }
0x1466   :  { %2457 = vset.pattern.permute.xlu0 %v2653_v36 }
0x14cb   :  { %v1122_v16 = vpop.permute.xlu1 %1121 }
0x14cc   :  { %v1120_v26 = vpop.permute.xlu0 %1119  ;;  %v1126_v19 = vmul.f32 %v1122_v16, %v1116_v18 }
0x14cd   :  { %v1125_v2 = vmul.f32 %v1120_v26, %v1115_v0 }
0x14cf   :  { %v1132_v39 = vpop.permute.xlu1 %1131 }
0x14d0   :  { %v1136_v20 = vmul.f32 %v2534_v54, %v1132_v39  ;;  %v1130_v21 = vpop.permute.xlu0 %1129 }
0x14d1   :  { %v1135_v23 = vmul.f32 %v2536_v58, %v1130_v21 }
0x14d2   :  { %v1138_v24 = vadd.f32 %v1136_v20, %v1126_v19 }
0x14d3   :  { %v1137_v25 = vadd.f32 %v1135_v23, %v1125_v2 }
0x14d4   :  { %v1140_v27 = vsub.f32 %v1138_v24, %v1132_v39 }
0x14d5   :  { %v1139_v30 = vsub.f32 %v1137_v25, %v1130_v21 }
0x14d6   :  { %v1148_v41 = vrot.slane %v1140_v27, 4 }
0x14d7   :  { %v1147_v60 = vrot.slane %v1139_v30, 5 }
0x14d9   :  { %v1149_v44 = vsel %vm501_vm11, %v1148_v41, %v1147_v60 }
0x14da   :  { %1150 = vrot.lane.b32.xlu1 %v1149_v44, %s2649_s28 }
0x14dd   :  { %v1143_v43 = vpop.permute.xlu0 %1142 }
0x154c   :  { %v1151_v45 = vpop.permute.xlu1 %1150 }
0x154d   :  { %v1153_v46 = vmul.f32 %v1151_v45, %v1143_v43 }
0x154f   :  { %v3181_v47 = vadd.f32 %v1153_v46, %v3142_v9  ;;  %v2665_v46 = vmov 6  }
0x1551   :  { %v1162_v50 = vrot.slane %v3181_v47, %v2976_v32  ;;  %1189 = vperm.xlu0 %2457, %v3181_v47   ;;  %1183 = vperm.xlu1 %2456, %v3181_v47  }
0x1553   :  { %v1163_v53 = vcombine.high %v1162_v50, %v1162_v50  ;;  %v1170_v54 = vrot.slane %v1162_v50, %v2976_v32 }
0x1555   :  { %v1177_v58 = vrot.slane %v1163_v53, %v2976_v32  ;;  %1180 = vst.msk [vmem:[#allocation2 + $0x6] sm:$0x1] %vm412_vm0, %v1170_v54  ;;  %2458 = vset.pattern.permute.xlu1 %v2657_v51  ;;  %2460 = vset.pattern.permute.xlu0 %v2665_v46  ;;  %v1258_v54 = vrot.slane %v3181_v47, 3  ;;  %v1646_v46 = vrot.slane %v3135_v33, %v2829_v31 }
0x1556   :  { %1195 = vperm.xlu1 %2458, %v3181_v47  }
0x1557   :  { %1181 = vst.msk [vmem:[#allocation2 + $0xe] sm:$0x1] %vm412_vm0, %v1177_v58  ;;  %v1257_v58 = vrot.slane %v3181_v47, 2 }
0x155a   :  { %2459 = vset.pattern.permute.xlu1 %v2658_v52 }
0x155b   :  { %1201 = vperm.xlu1 %2459, %v3181_v47  }
0x155f   :  { %2462 = vset.pattern.permute.xlu1 %v2654_v38 }
0x15cc   :  { %v1184_v9 = vpop.permute.xlu1 %1183  ;;  %v1190_v61 = vpop.permute.xlu0 %1189 }
0x15cd   :  { %v1186_v59 = vmul.f32 %v1184_v9, %v2910_v7  ;;  %v1192_v4 = vmul.f32 %v1190_v61, %v2913_v12 }
0x15cf   :  { %v1187_v3 = vadd.f32 %v3200_v62, %v1186_v59 }
0x15d1   :  { %v1196_v13 = vpop.permute.xlu1 %1195  ;;  %v1193_v17 = vadd.f32 %v1192_v4, %v1187_v3 }
0x15d2   :  { %v1198_v22 = vmul.f32 %v1196_v13, %v2923_v29 }
0x15d4   :  { %v1199_v8 = vadd.f32 %v1198_v22, %v1193_v17 }
0x15d6   :  { %v1202_v6 = vpop.permute.xlu1 %1201 }
0x15d7   :  { %v1204_v11 = vmul.f32 %v1202_v6, %v2939_v63 }
0x15d9   :  { %v1205_v1 = vadd.f32 %v1204_v11, %v1199_v8 }
0x15db   :  { %v1208_v15 = vrot.slane %v1205_v1, 3  ;;  %v1207_v16 = vrot.slane %v1205_v1, 2 }
0x15dd   :  { %1227 = vrot.lane.b32.xlu1 %v1208_v15, %s2661_s6  ;;  %1225 = vrot.lane.b32.xlu0 %v1207_v16, %s2661_s6  ;;  %v1212_v26 = vadd.f32 %v1208_v15, %v2960_v34  ;;  %v1211_v18 = vadd.f32 %v1207_v16, %v2962_v40 }
0x15df   :  { %v2286_v0 = vmul.f32 -1.442695, %v1212_v26  ;;  %v2285_v39 = vmul.f32 -1.442695, %v1211_v18 }
0x15e1   :  { %2541 = vpow2.f32 %v2286_v0  ;;  %v75_v0 = vld [vmem:[%s3532_s12] sm:$0xf]  ;;  %s2674_s12 = smov 20  }
0x15e2   :  { %2543 = vpow2.f32 %v2285_v39  ;;  %2332 = vmatprep.subr.msk.mxu1 %vm1490_vm12, %v75_v0 }
0x15e3   :  { %2333 = vmatpush3.msk.msra.mxu1 %vm1490_vm12, %v75_v0  ;;  %vm2007_vm12 = vcmask 523264  }
0x15e4   :  { %2337 = vmatprep.subr.mxu1 %v2652_v35 }
0x15ee   :  { %v2542_v19 = vpop.eup %2541 }
0x15ef   :  { %v2544_v20 = vpop.eup %2543  ;;  %v1220_v21 = vadd.f32 1.0, %v2542_v19 }
0x15f0   :  { %v1219_v2 = vadd.f32 1.0, %v2544_v20 }
0x15f1   :  { %2545 = vrcp.f32 %v1220_v21 }
0x15f2   :  { %2547 = vrcp.f32 %v1219_v2 }
0x15fe   :  { %v2546_v23 = vpop.eup %2545 }
0x15ff   :  { %v2548_v24 = vpop.eup %2547  ;;  %v1246_v61 = vsub.f32 1.0, %v2546_v23 }
0x1600   :  { %v1245_v3 = vsub.f32 1.0, %v2548_v24 }
0x164f   :  { %v1228_v25 = vpop.permute.xlu1 %1227  ;;  %v1226_v27 = vpop.permute.xlu0 %1225 }
0x1650   :  { %v1232_v30 = vmul.f32 %v2546_v23, %v1228_v25  ;;  %v1231_v41 = vmul.f32 %v2548_v24, %v1226_v27 }
0x1652   :  { %1237 = vrot.lane.b32.xlu1 %v1232_v30, %s2662_s8  ;;  %1235 = vrot.lane.b32.xlu0 %v1231_v41, %s2662_s8  ;;  %v3240_v30 = vld [vmem:[%s3530_s10] ss:$0 sm:$0xff] }
0x16c4   :  { %v1238_v60 = vpop.permute.xlu1 %1237  ;;  %v1236_v44 = vpop.permute.xlu0 %1235 }
0x16c5   :  { %v1242_v43 = vadd.f32 %v1238_v60, %v2960_v34  ;;  %v1241_v45 = vadd.f32 %v1236_v44, %v2962_v40 }
0x16c7   :  { %2549 = vtanh.f32 %v1242_v43 }
0x16c8   :  { %2551 = vtanh.f32 %v1241_v45  ;;  %v3258_v45 = vld [vmem:[#allocation3] ss:$0 sm:$0xff] }
0x16d4   :  { %v2550_v50 = vpop.eup %2549 }
0x16d5   :  { %v2552_v53 = vpop.eup %2551  ;;  %1251 = vrot.lane.b32.xlu1 %v2550_v50, %s2649_s28  ;;  %v1653_v50 = vrot.slane %v3135_v33, %v2842_v37 }
0x16d6   :  { %1249 = vrot.lane.b32.xlu0 %v2552_v53, %s2649_s28 }
0x16d9   :  { %1261 = vrot.lane.b32.xlu1 %v1258_v54, %s2648_s27 }
0x16da   :  { %1259 = vrot.lane.b32.xlu0 %v1257_v58, %s2648_s27 }
0x16de   :  { %1272 = vperm.xlu0 %2460, %v3135_v33  }
0x16e2   :  { %2461 = vset.pattern.permute.xlu0 %v2654_v38 }
0x1747   :  { %v1252_v9 = vpop.permute.xlu1 %1251 }
0x1748   :  { %v1250_v59 = vpop.permute.xlu0 %1249  ;;  %v1256_v13 = vmul.f32 %v1252_v9, %v1246_v61 }
0x1749   :  { %v1255_v6 = vmul.f32 %v1250_v59, %v1245_v3 }
0x174b   :  { %v1262_v4 = vpop.permute.xlu1 %1261 }
0x174c   :  { %v1266_v17 = vmul.f32 %v2546_v23, %v1262_v4  ;;  %v1260_v22 = vpop.permute.xlu0 %1259 }
0x174d   :  { %v1265_v8 = vmul.f32 %v2548_v24, %v1260_v22 }
0x174e   :  { %v1268_v11 = vadd.f32 %v1266_v17, %v1256_v13 }
0x174f   :  { %v1267_v1 = vadd.f32 %v1265_v8, %v1255_v6 }
0x1750   :  { %v1270_v15 = vsub.f32 %v1268_v11, %v1262_v4 }
0x1751   :  { %v1269_v16 = vsub.f32 %v1267_v1, %v1260_v22 }
0x1752   :  { %v1278_v26 = vrot.slane %v1270_v15, 5 }
0x1753   :  { %v1277_v18 = vrot.slane %v1269_v16, 6  ;;  %v2223_v16 = vadd.s32 4294967289, %v2846_v42 }
0x1755   :  { %v1279_v39 = vsel %vm501_vm11, %v1278_v26, %v1277_v18 }
0x1756   :  { %1280 = vrot.lane.b32.xlu1 %v1279_v39, %s2649_s28 }
0x1759   :  { %v1273_v19 = vpop.permute.xlu0 %1272 }
0x17c8   :  { %v1281_v20 = vpop.permute.xlu1 %1280 }
0x17c9   :  { %v1283_v21 = vmul.f32 %v1281_v20, %v1273_v19 }
0x17cb   :  { %v3229_v2 = vadd.f32 %v1283_v21, %v3181_v47 }
0x17cd   :  { %v1292_v23 = vrot.slane %v3229_v2, %v2976_v32 }
0x17cf   :  { %v1293_v24 = vcombine.high %v1292_v23, %v1292_v23  ;;  %v1300_v25 = vrot.slane %v1292_v23, %v2976_v32 }
0x17d1   :  { %v1307_v27 = vrot.slane %v1293_v24, %v2976_v32  ;;  %1310 = vst.msk [vmem:[#allocation2 + $0x7] sm:$0x1] %vm412_vm0, %v1300_v25 }
0x17d3   :  { %1311 = vst.msk [vmem:[#allocation2 + $0xf] sm:$0x1] %vm412_vm0, %v1307_v27  ;;  %v2226_v27 = vsub.s32 %v2223_v16, %v2822_v28 }
0x17d8   :  { %v3242_v41 = vld [vmem:[#allocation2] sm:$0xff] }
0x17d9   :  { %2334 = vmatprep.mubr.msk.f32.mxu1 %vm278_vm6, %v3242_v41  ;;  %v1423_v47 = vmul.f32 %v3240_v30, %v3242_v41 }
0x17da   :  { %v3248_v60 = vld [vmem:[#allocation2 + $0x8] sm:$0xff] }
0x17db   :  { %2335 = vmatmul.mubr.msk.f32.vlgmr.msra.gmra.mxu1 %vm278_vm6, %v3248_v60  ;;  %v1425_v32 = vsel %vm278_vm6, %v1423_v47, 0.0  ;;  %v1424_v44 = vmul.f32 %v3240_v30, %v3248_v60 }
0x17dc   :  { %1426 = vadd.xlane.f32.xlu1 %v1425_v32  ;;  %2339 = vmatprep.mubr.msk.f32.mxu1 %vm2667_vm2, %v2652_v35 }
0x17dd   :  { %v1428_v43 = vsel %vm278_vm6, %v1424_v44, 0.0 }
0x17de   :  { %1429 = vadd.xlane.f32.xlu0 %v1428_v43 }
0x17ed   :  { %1689 = vbcast.lane.b32.xlu1 %v2934_v10, 256 }
0x17f1   :  { %1696 = vbcast.lane.b32.xlu1 %v2944_v14, 256 }
0x17f4   :  { %1437 = vperm.xlu0 %2461, %v3258_v45  }
0x17f5   :  { %1648 = vbcast.lane.b32.xlu1 %v1646_v46, 256 }
0x17f8   :  { %1313 = vperm.xlu0 %2461, %v3229_v2  }
0x17f9   :  { %1655 = vbcast.lane.b32.xlu1 %v1653_v50, 256 }
0x17fc   :  { %2464 = vset.pattern.permute.xlu0 %v2657_v51 }
0x17fd   :  { %1325 = vperm.xlu0 %2464, %v3229_v2  }
0x1865   :  { %v1427_v14 = vpop.xlane.xlu1 %1426 }
0x1867   :  { %v1430_v10 = vpop.xlane.xlu0 %1429 }
0x1869   :  { %v1690_v22 = vpop.permute.xlu1 %1689 }
0x186d   :  { %v1697_v18 = vpop.permute.xlu1 %1696 }
0x186f   :  { %v1438_v53 = vpop.permute.xlu0 %1437 }
0x1870   :  { %v1440_v54 = vadd.f32 %v1438_v53, %v1427_v14  ;;  %v1441_v58 = vadd.f32 %v1438_v53, %v1430_v10 }
0x1871   :  { %v3270_v44 = vpop.permute.xlu1 %1648 }
0x1872   :  { %v1448_v9 = vand.u32 2147483647, %v1440_v54  ;;  %v1449_v31 = vand.u32 2147483647, %v1441_v58  ;;  %v1442_v20 = vmax.f32 %v1440_v54, 0.0  ;;  %v1443_v24 = vmax.f32 %v1441_v58, 0.0 }
0x1873   :  { %vm1444_vm15 = vcmp.ne.f32.partialorder %v1440_v54, %v1440_v54  ;;  %vm1445_vm0 = vcmp.ne.f32.partialorder %v1441_v58, %v1441_v58 }
0x1874   :  { %v1450_v59 = vsub.f32 0.0, %v1448_v9  ;;  %v1451_v61 = vsub.f32 0.0, %v1449_v31 }
0x1876   :  { %v1452_v3 = vmul.f32 1.442695, %v1450_v59  ;;  %v1454_v4 = vmul.f32 1.442695, %v1451_v61  ;;  %v3281_v59 = vpop.permute.xlu1 %1655 }
0x1878   :  { %2553 = vpow2.f32 %v1452_v3  ;;  %v77_v3 = vld [vmem:[%s3534_s14] sm:$0xff] }
0x1879   :  { %2555 = vpow2.f32 %v1454_v4  ;;  %v3304_v4 = vsub.s32 %v2846_v42, %v2822_v28 }
0x1885   :  { %v2554_v37 = vpop.eup %2553 }
0x1886   :  { %v2556_v33 = vpop.eup %2555  ;;  %v1456_v13 = vadd.f32 1.0, %v2554_v37  ;;  %v1459_v51 = vmul.f32 -0.5, %v2554_v37  ;;  %v1462_v11 = vand.u32 2147483647, %v2554_v37 }
0x1887   :  { %v1465_v17 = vadd.f32 1.0, %v2556_v33  ;;  %v1468_v6 = vmul.f32 -0.5, %v2556_v33  ;;  %v1471_v15 = vand.u32 2147483647, %v2556_v33 }
0x1888   :  { %2557 = vlog2.f32 %v1456_v13  ;;  %v1460_v8 = vadd.f32 1.0, %v1459_v51  ;;  %vm1463_vm13 = vcmp.lt.f32.partialorder %v1462_v11, 0.0004427343  ;;  %v1314_v13 = vpop.permute.xlu0 %1313 }
0x1889   :  { %2559 = vlog2.f32 %v1465_v17  ;;  %v1469_v1 = vadd.f32 1.0, %v1468_v6  ;;  %vm1472_vm14 = vcmp.lt.f32.partialorder %v1471_v15, 0.0004427343  ;;  %v1316_v42 = vmul.f32 %v1314_v13, %v2910_v7 }
0x188a   :  { %v1461_v19 = vmul.f32 %v2554_v37, %v1460_v8 }
0x188b   :  { %v1470_v23 = vmul.f32 %v2556_v33, %v1469_v1  ;;  %v1317_v6 = vadd.f32 %v3200_v62, %v1316_v42  ;;  %v2291_v62 = vld [vmem:[%s3533_s13] ss:$0 sm:$0xff] }
0x188c   :  { %v1326_v51 = vpop.permute.xlu0 %1325 }
0x188d   :  { %v1328_v11 = vmul.f32 %v1326_v51, %v2923_v29 }
0x1895   :  { %v2558_v26 = vpop.eup %2557 }
0x1896   :  { %v2560_v0 = vpop.eup %2559  ;;  %v1458_v39 = vmul.f32 0.6931472, %v2558_v26 }
0x1897   :  { %v1467_v21 = vmul.f32 0.6931472, %v2560_v0 }
0x1898   :  { %v1464_v25 = vsel %vm1463_vm13, %v1461_v19, %v1458_v39  ;;  %v86_v19 = vld [vmem:[%s3536_s16 + $0x38] sm:$0xff] }
0x1899   :  { %v1473_v47 = vsel %vm1472_vm14, %v1470_v23, %v1467_v21  ;;  %v1474_v32 = vadd.f32 %v1464_v25, %v1442_v20  ;;  %v85_v20 = vld [vmem:[%s3536_s16 + $0x30] sm:$0xff]  ;;  %2347 = vmatprep.subr.mxu0 %v86_v19  ;;  %v84_v21 = vld [vmem:[%s3536_s16 + $0x28] sm:$0xff]  ;;  %v83_v23 = vld [vmem:[%s3536_s16 + $0x20] sm:$0xff] }
0x189a   :  { %v1475_v43 = vadd.f32 %v1473_v47, %v1443_v24  ;;  %2348 = vmatpush3.msra.mxu0 %v86_v19  ;;  %v82_v24 = vld [vmem:[%s3536_s16 + $0x18] sm:$0xff]  ;;  %v81_v47 = vld [vmem:[%s3536_s16 + $0x10] sm:$0xff] }
0x189b   :  { %v3272_v46 = vsel %vm1444_vm15, %v1440_v54, %v1474_v32  ;;  %2349 = vmatprep.subr.mxu0 %v85_v20  ;;  %v80_v32 = vld [vmem:[%s3536_s16 + $0x8] sm:$0xff] }
0x189c   :  { %v3274_v50 = vsel %vm1445_vm0, %v1441_v58, %v1475_v43  ;;  %v1700_v10 = vmul.f32 %v1690_v22, %v3272_v46  ;;  %v2227_v14 = vrot.slane %v3272_v46, %v2226_v27  ;;  %v2666_v58 = vmov 1.0   ;;  %2350 = vmatpush3.msra.mxu0 %v85_v20 }
0x189d   :  { %v1701_v9 = vmul.f32 %v1697_v18, %v3274_v50  ;;  %v2231_v31 = vrot.slane %v3274_v50, %v2226_v27  ;;  %2338 = vmatpush3.msk.msra.mxu1 %vm1706_vm1, %v2666_v58  ;;  %2351 = vmatprep.subr.mxu0 %v84_v21  ;;  %vm1804_vm0 = vcmask 25600  }
0x189e   :  { %v1702_v53 = vmul.f32 %v1700_v10, %v3270_v44  ;;  %2342 = vmatprep.subr.mxu1 %v77_v3  ;;  %2352 = vmatpush3.msra.mxu0 %v84_v21 }
0x189f   :  { %v3284_v61 = vsel %vm501_vm11, %v2231_v31, %v2227_v14  ;;  %v1703_v54 = vmul.f32 %v1701_v9, %v3281_v59  ;;  %2353 = vmatprep.subr.mxu0 %v83_v23  ;;  %v79_v14 = vld [vmem:[%s3536_s16] sm:$0xff] }
0x18a0   :  { %1712 = vperm.xlu1 %2462, %v1702_v53   ;;  %2354 = vmatpush3.msra.mxu0 %v83_v23 }
0x18a1   :  { %2355 = vmatprep.subr.mxu0 %v82_v24 }
0x18a2   :  { %2356 = vmatpush3.msra.mxu0 %v82_v24 }
0x18a3   :  { %2357 = vmatprep.subr.mxu0 %v81_v47 }
0x18a4   :  { %1715 = vperm.xlu1 %2462, %v1703_v54   ;;  %2358 = vmatpush3.msra.mxu0 %v81_v47 }
0x18a5   :  { %2359 = vmatprep.subr.mxu0 %v80_v32 }
0x18a6   :  { %2360 = vmatpush3.msra.mxu0 %v80_v32 }
0x18a7   :  { %2361 = vmatprep.subr.mxu0 %v79_v14 }
0x18a8   :  { %1870 = vrot.lane.b32.xlu1 %v2891_v57, %s2648_s27  ;;  %2362 = vmatpush3.msra.mxu0 %v79_v14 }
0x18a9   :  { %2463 = vset.pattern.permute.xlu1 %v2653_v36 }
0x18ac   :  { %1872 = vrot.lane.b32.xlu1 %v2889_v56, %s2648_s27 }
0x18b0   :  { %1319 = vperm.xlu1 %2463, %v3229_v2  }
0x18b4   :  { %2465 = vset.pattern.permute.xlu1 %v2658_v52 }
0x18b5   :  { %1331 = vperm.xlu1 %2465, %v3229_v2  }
0x18b9   :  { %2467 = vset.pattern.permute.xlu1 %v2654_v38 }
0x191b   :  { %v1713_v35 = vpop.permute.xlu1 %1712 }
0x191c   :  { %v1720_v57 = vrot.slane %v1713_v35, %v3304_v4 }
0x191f   :  { %v1716_v37 = vpop.permute.xlu1 %1715 }
0x1920   :  { %v1724_v36 = vrot.slane %v1716_v37, %v3304_v4 }
0x1922   :  { %v3309_v56 = vsel %vm501_vm11, %v1724_v36, %v1720_v57 }
0x1923   :  { %2340 = vmatmul.mubr.msk.f32.vlgmr.msra.gmra.mxu1 %vm1726_vm8, %v3309_v56  ;;  %v1871_v52 = vpop.permute.xlu1 %1870 }
0x1924   :  { %v1876_v33 = vsel %vm278_vm6, %v3242_v41, %v1871_v52  ;;  %2343 = vmatpush3.msra.mxu1 %v77_v3 }
0x1925   :  { %2344 = vmatprep.mubr.msk.f32.mxu1 %vm1726_vm8, %v1876_v33 }
0x1927   :  { %v1873_v28 = vpop.permute.xlu1 %1872 }
0x1928   :  { %v1877_v17 = vsel %vm278_vm6, %v3248_v60, %v1873_v28  ;;  %v2336_v60 = vpop.f32.mrf.mxu1 }
0x1929   :  { %2345 = vmatmul.mubr.msk.f32.vlgmr.msra.gmra.mxu1 %vm1726_vm8, %v1877_v17 }
0x192a   :  { %v1560_v0 = vpop.f32.mrf.mxu1 }
0x192b   :  { %v1320_v22 = vpop.permute.xlu1 %1319  ;;  %v1561_v39 = vadd.f32 %v2291_v62, %v1560_v0 }
0x192c   :  { %v1322_v8 = vmul.f32 %v1320_v22, %v2913_v12  ;;  %v1566_v12 = vadd.f32 %v2336_v60, %v2291_v62 }
0x192e   :  { %v1323_v1 = vadd.f32 %v1322_v8, %v1317_v6  ;;  %v1572_v29 = vsel %vm280_vm7, %v1566_v12, -inf  ;;  %v2300_v6 = vld [vmem:[%s3535_s15] ss:$0 sm:$0xff] }
0x1930   :  { %v1332_v41 = vpop.permute.xlu1 %1331  ;;  %v1329_v15 = vadd.f32 %v1328_v11, %v1323_v1 }
0x1931   :  { %v1334_v16 = vmul.f32 %v1332_v41, %v2939_v63  ;;  %v1569_v63 = vsel %vm280_vm7, %v1561_v39, -inf }
0x1933   :  { %v1335_v26 = vadd.f32 %v1334_v16, %v1329_v15 }
0x1935   :  { %v1337_v18 = vrot.slane %v1335_v26, 1  ;;  %v1338_v7 = vrot.slane %v1335_v26, 2 }
0x1937   :  { %1357 = vrot.lane.b32.xlu0 %v1338_v7, %s2661_s6  ;;  %1355 = vrot.lane.b32.xlu1 %v1337_v18, %s2661_s6  ;;  %v1341_v25 = vadd.f32 %v1337_v18, %v2962_v40  ;;  %v1342_v27 = vadd.f32 %v1338_v7, %v2960_v34  ;;  %s2669_s6 = smov 121  }
0x1939   :  { %v2287_v43 = vmul.f32 -1.442695, %v1341_v25  ;;  %v2288_v10 = vmul.f32 -1.442695, %v1342_v27 }
0x193b   :  { %2561 = vpow2.f32 %v2287_v43 }
0x193c   :  { %2563 = vpow2.f32 %v2288_v10 }
0x1948   :  { %v2562_v53 = vpop.eup %2561 }
0x1949   :  { %v2564_v9 = vpop.eup %2563  ;;  %v1349_v31 = vadd.f32 1.0, %v2562_v53 }
0x194a   :  { %v1350_v54 = vadd.f32 1.0, %v2564_v9 }
0x194b   :  { %2565 = vrcp.f32 %v1349_v31 }
0x194c   :  { %2567 = vrcp.f32 %v1350_v54 }
0x1956   :  { %1573 = vmax.xlane.f32.xlu0 %v1572_v29 }
0x1958   :  { %v3354_v58 = vpop.eup %2565 }
0x1959   :  { %v3356_v3 = vpop.eup %2567 }
0x195b   :  { %1570 = vmax.xlane.f32.xlu1 %v1569_v63 }
0x19a9   :  { %v1358_v35 = vpop.permute.xlu0 %1357  ;;  %v1356_v37 = vpop.permute.xlu1 %1355 }
0x19aa   :  { %v1362_v57 = vmul.f32 %v3356_v3, %v1358_v35  ;;  %v1361_v36 = vmul.f32 %v3354_v58, %v1356_v37 }
0x19ac   :  { %1367 = vrot.lane.b32.xlu1 %v1362_v57, %s2662_s8  ;;  %1365 = vrot.lane.b32.xlu0 %v1361_v36, %s2662_s8 }
0x19df   :  { %v1574_v52 = vpop.xlane.xlu0 %1573 }
0x19e0   :  { %v3362_v33 = vsub.f32 %v1566_v12, %v1574_v52 }
0x19e2   :  { %v1579_v13 = vmul.f32 1.442695, %v3362_v33 }
0x19e3   :  { %v3365_v28 = vpop.f32.mrf.mxu1 }
0x19e4   :  { %2569 = vpow2.f32 %v1579_v13  ;;  %v1571_v42 = vpop.xlane.xlu1 %1570 }
0x19e5   :  { %v3367_v17 = vsub.f32 %v1561_v39, %v1571_v42  ;;  %v2341_v51 = vpop.f32.mrf.mxu1 }
0x19e7   :  { %v1577_v22 = vmul.f32 1.442695, %v3367_v17 }
0x19e9   :  { %2571 = vpow2.f32 %v1577_v22  ;;  %v2346_v8 = vpop.f32.mrf.mxu1 }
0x19ea   :  { %v1962_v11 = vadd.f32 %v2346_v8, %v2300_v6 }
0x19eb   :  { %v1956_v1 = vpop.f32.mrf.mxu1 }
0x19ec   :  { %v1972_v41 = vand.u32 2147483647, %v1962_v11  ;;  %v1957_v15 = vadd.f32 %v2300_v6, %v1956_v1  ;;  %v1966_v53 = vmax.f32 %v1962_v11, 0.0  ;;  %vm1968_vm14 = vcmp.ne.f32.partialorder %v1962_v11, %v1962_v11 }
0x19ee   :  { %v1974_v16 = vsub.f32 0.0, %v1972_v41  ;;  %v1971_v26 = vand.u32 2147483647, %v1957_v15  ;;  %v1965_v35 = vmax.f32 %v1957_v15, 0.0  ;;  %vm1967_vm13 = vcmp.ne.f32.partialorder %v1957_v15, %v1957_v15 }
0x19ef   :  { %v1387_v41 = vrot.slane %v3229_v2, 1 }
0x19f0   :  { %v1977_v18 = vmul.f32 1.442695, %v1974_v16  ;;  %v1973_v7 = vsub.f32 0.0, %v1971_v26 }
0x19f1   :  { %v2570_v60 = vpop.eup %2569 }
0x19f2   :  { %2573 = vpow2.f32 %v1977_v18  ;;  %v1975_v62 = vmul.f32 1.442695, %v1973_v7  ;;  %v1584_v12 = vsel %vm280_vm7, %v2570_v60, 0.0 }
0x19f3   :  { %1585 = vadd.xlane.f32.xlu0 %v1584_v12 }
0x19f4   :  { %2575 = vpow2.f32 %v1975_v62 }
0x19f6   :  { %v2572_v0 = vpop.eup %2571 }
0x19f7   :  { %v1581_v29 = vsel %vm280_vm7, %v2572_v0, 0.0  ;;  %v2668_v0 = vmov 7  }
0x19f8   :  { %1582 = vadd.xlane.f32.xlu1 %v1581_v29  ;;  %2466 = vset.pattern.permute.xlu0 %v2668_v0  ;;  %v1840_v0 = vadd.f32 1e-08, %v3272_v46  ;;  %v2615_v46 = vld [vmem:[%s3545_s0] sm:$0x3] }
0x19ff   :  { %v2574_v39 = vpop.eup %2573 }
0x1a00   :  { %v1988_v63 = vadd.f32 1.0, %v2574_v39  ;;  %v1991_v21 = vmul.f32 -0.5, %v2574_v39  ;;  %v1994_v25 = vand.u32 2147483647, %v2574_v39 }
0x1a01   :  { %v2576_v19 = vpop.eup %2575 }
0x1a02   :  { %v1979_v20 = vadd.f32 1.0, %v2576_v19  ;;  %2577 = vlog2.f32 %v1988_v63  ;;  %v1982_v23 = vmul.f32 -0.5, %v2576_v19  ;;  %v1992_v24 = vadd.f32 1.0, %v1991_v21 }
0x1a03   :  { %v1985_v32 = vand.u32 2147483647, %v2576_v19  ;;  %vm1995_vm6 = vcmp.lt.f32.partialorder %v1994_v25, 0.0004427343 }
0x1a04   :  { %2579 = vlog2.f32 %v1979_v20  ;;  %v1983_v27 = vadd.f32 1.0, %v1982_v23  ;;  %v1993_v10 = vmul.f32 %v2574_v39, %v1992_v24 }
0x1a05   :  { %vm1986_vm10 = vcmp.lt.f32.partialorder %v1985_v32, 0.0004427343 }
0x1a06   :  { %v1984_v31 = vmul.f32 %v2576_v19, %v1983_v27 }
0x1a0f   :  { %v2578_v47 = vpop.eup %2577 }
0x1a10   :  { %v1990_v43 = vmul.f32 0.6931472, %v2578_v47 }
0x1a11   :  { %v2580_v14 = vpop.eup %2579 }
0x1a12   :  { %v1981_v9 = vmul.f32 0.6931472, %v2580_v14  ;;  %v1996_v54 = vsel %vm1995_vm6, %v1993_v10, %v1990_v43  ;;  %vm1679_vm6 = vcmask 58368  }
0x1a13   :  { %v1998_v57 = vadd.f32 %v1996_v54, %v1966_v53 }
0x1a14   :  { %v1987_v37 = vsel %vm1986_vm10, %v1984_v31, %v1981_v9 }
0x1a15   :  { %v1997_v36 = vadd.f32 %v1987_v37, %v1965_v35  ;;  %v2000_v13 = vsel %vm1968_vm14, %v1962_v11, %v1998_v57  ;;  %vm2203_vm14 = vcmask 121856  }
0x1a17   :  { %v1999_v52 = vsel %vm1967_vm13, %v1957_v15, %v1997_v36  ;;  %v1388_v15 = vrot.slane %v3229_v2, 2  ;;  %v2303_v36 = vld [vmem:[%s3537_s17] ss:$0 sm:$0xff]  ;;  %vm2201_vm13 = vcmask 80896  }
0x1a18   :  { %2363 = vmatprep.mubr.msk.f32.mxu0 %vm2007_vm12, %v1999_v52 }
0x1a19   :  { %2364 = vmatmul.mubr.msk.f32.vlgmr.msra.gmra.mxu0 %vm2007_vm12, %v2000_v13 }
0x1a1e   :  { %v1368_v42 = vpop.permute.xlu1 %1367  ;;  %v1366_v51 = vpop.permute.xlu0 %1365 }
0x1a1f   :  { %v1372_v22 = vadd.f32 %v1368_v42, %v2960_v34  ;;  %v1371_v6 = vadd.f32 %v1366_v51, %v2962_v40 }
0x1a21   :  { %2581 = vtanh.f32 %v1372_v22 }
0x1a22   :  { %2583 = vtanh.f32 %v1371_v6 }
0x1a2e   :  { %v2582_v8 = vpop.eup %2581 }
0x1a2f   :  { %v2584_v1 = vpop.eup %2583  ;;  %1381 = vrot.lane.b32.xlu1 %v2582_v8, %s2649_s28 }
0x1a30   :  { %1379 = vrot.lane.b32.xlu0 %v2584_v1, %s2649_s28 }
0x1a33   :  { %1389 = vrot.lane.b32.xlu1 %v1387_v41, %s2648_s27 }
0x1a34   :  { %1391 = vrot.lane.b32.xlu0 %v1388_v15, %s2648_s27 }
0x1a7c   :  { %v1586_v11 = vpop.xlane.xlu0 %1585 }
0x1a7d   :  { %2585 = vlog2.f32 %v1586_v11 }
0x1a81   :  { %v1583_v34 = vpop.xlane.xlu1 %1582 }
0x1a82   :  { %2587 = vlog2.f32 %v1583_v34 }
0x1a8a   :  { %v2586_v40 = vpop.eup %2585 }
0x1a8b   :  { %v1590_v16 = vmul.f32 0.6931472, %v2586_v40 }
0x1a8d   :  { %v1592_v26 = vsub.f32 %v3362_v33, %v1590_v16 }
0x1a8f   :  { %v2588_v18 = vpop.eup %2587  ;;  %v1595_v7 = vmul.f32 1.442695, %v1592_v26  ;;  %v1598_v40 = vmul.f32 %v2859_v49, %v1592_v26  ;;  %v1376_v49 = vsub.f32 1.0, %v3356_v3  ;;  %v1375_v26 = vsub.f32 1.0, %v3354_v58 }
0x1a90   :  { %v1588_v60 = vmul.f32 0.6931472, %v2588_v18  ;;  %v1841_v18 = vadd.f32 1e-08, %v3274_v50 }
0x1a91   :  { %2589 = vpow2.f32 %v1595_v7  ;;  %v1602_v16 = vsel %vm280_vm7, %v1598_v40, 0.0 }
0x1a92   :  { %v1591_v62 = vsub.f32 %v3367_v17, %v1588_v60 }
0x1a94   :  { %v1593_v12 = vmul.f32 1.442695, %v1591_v62 }
0x1a96   :  { %2591 = vpow2.f32 %v1593_v12  ;;  %v1597_v12 = vmul.f32 %v2855_v48, %v1591_v62 }
0x1a9e   :  { %v2590_v29 = vpop.eup %2589 }
0x1a9f   :  { %v2171_v39 = vrot.slane %v2590_v29, 2  ;;  %v2183_v63 = vrot.slane %v2590_v29, 4  ;;  %v2195_v20 = vrot.slane %v2590_v29, 6  ;;  %v2165_v21 = vrot.slane %v2590_v29, 1 }
0x1aa0   :  { %v2177_v23 = vrot.slane %v2590_v29, 3  ;;  %v2156_v24 = vrot.slane %v2590_v29, 7  ;;  %v2189_v31 = vrot.slane %v2590_v29, 5 }
0x1aa1   :  { %v1382_v7 = vpop.permute.xlu1 %1381 }
0x1aa2   :  { %v1380_v60 = vpop.permute.xlu0 %1379 }
0x1aa3   :  { %v2592_v19 = vpop.eup %2591 }
0x1aa4   :  { %v2159_v25 = vrot.slane %v2592_v19, 1  ;;  %v2170_v33 = vrot.slane %v2592_v19, 3  ;;  %v2182_v27 = vrot.slane %v2592_v19, 5  ;;  %v2194_v47 = vrot.slane %v2592_v19, 7 }
0x1aa5   :  { %v2164_v32 = vrot.slane %v2592_v19, 2  ;;  %v2176_v43 = vrot.slane %v2592_v19, 4  ;;  %v2188_v10 = vrot.slane %v2592_v19, 6  ;;  %v3386_v17 = vsel %vm501_vm11, %v2156_v24, %v2592_v19 }
0x1aa6   :  { %v3389_v14 = vsel %vm501_vm11, %v2590_v29, %v2159_v25  ;;  %v3392_v53 = vsel %vm501_vm11, %v2171_v39, %v2170_v33  ;;  %v3395_v9 = vsel %vm501_vm11, %v2183_v63, %v2182_v27  ;;  %v3398_v54 = vsel %vm501_vm11, %v2195_v20, %v2194_v47  ;;  %v1390_v39 = vpop.permute.xlu1 %1389  ;;  %v1392_v63 = vpop.permute.xlu0 %1391 }
0x1aa7   :  { %v3401_v35 = vsel %vm501_vm11, %v2165_v21, %v2164_v32  ;;  %v3404_v37 = vsel %vm501_vm11, %v2177_v23, %v2176_v43  ;;  %v3407_v57 = vsel %vm501_vm11, %v2189_v31, %v2188_v10  ;;  %v1599_v29 = vsel %vm280_vm7, %v1597_v12, 0.0 }
0x1aa8   :  { %v1395_v19 = vmul.f32 %v3354_v58, %v1390_v39  ;;  %v1396_v50 = vmul.f32 %v3356_v3, %v1392_v63  ;;  %v1386_v20 = vmul.f32 %v1382_v7, %v1376_v49  ;;  %v1385_v21 = vmul.f32 %v1380_v60, %v1375_v26  ;;  %v2616_v58 = vld [vmem:[%s3524_s4] sm:$0x3] }
0x1aa9   :  { %v265_v24 = vsub.f32 %v2615_v46, %v2916_v5 }
0x1aaa   :  { %v1397_v48 = vadd.f32 %v1395_v19, %v1385_v21  ;;  %v1398_v62 = vadd.f32 %v1396_v50, %v1386_v20  ;;  %v2618_v50 = vld [vmem:[%s3547_s30] sm:$0xff] }
0x1aab   :  { %v266_v47 = vmul.f32 %v2616_v58, %v265_v24 }
0x1aac   :  { %v1399_v25 = vsub.f32 %v1397_v48, %v1390_v39  ;;  %v1400_v33 = vsub.f32 %v1398_v62, %v1392_v63 }
0x1aae   :  { %v1407_v32 = vrot.slane %v1399_v25, 7  ;;  %v1408_v43 = vrot.slane %v1400_v33, 6 }
0x1ab0   :  { %v1409_v5 = vsel %vm501_vm11, %v1408_v43, %v1407_v32 }
0x1ad9   :  { %v2365_v52 = vpop.f32.mrf.mxu0 }
0x1ada   :  { %v3412_v13 = vadd.f32 %v2365_v52, %v2303_v36 }
0x1adb   :  { %v2080_v42 = vpop.f32.mrf.mxu0 }
0x1adc   :  { %v2092_v51 = vsub.f32 0.0, %v3412_v13  ;;  %v2110_v22 = vmul.f32 2.0, %v3412_v13  ;;  %v3416_v6 = vadd.f32 %v2303_v36, %v2080_v42  ;;  %v2617_v42 = vld [vmem:[%s3547_s30 + $0x8] sm:$0xff]  ;;  %s2670_s30 = smov 15  }
0x1ade   :  { %v2095_v8 = vmul.f32 1.442695, %v2092_v51  ;;  %v2091_v1 = vsub.f32 0.0, %v3416_v6  ;;  %v2109_v41 = vmul.f32 2.0, %v3416_v6  ;;  %2115 = vrot.lane.b32.xlu0 %v2110_v22, %s2645_s24  ;;  %v2090_v51 = vsub.f32 %v2617_v42, %v3412_v13 }
0x1adf   :  { %v2089_v20 = vsub.f32 %v2618_v50, %v3416_v6 }
0x1ae0   :  { %2593 = vpow2.f32 %v2095_v8  ;;  %v2093_v15 = vmul.f32 1.442695, %v2091_v1  ;;  %2113 = vrot.lane.b32.xlu1 %v2109_v41, %s2645_s24 }
0x1ae2   :  { %2595 = vpow2.f32 %v2093_v15 }
0x1ae3   :  { %2597 = vlog2.f32 %v1841_v18 }
0x1ae4   :  { %2599 = vlog2.f32 %v1840_v0 }
0x1aed   :  { %v2594_v11 = vpop.eup %2593 }
0x1aee   :  { %2101 = vrot.lane.b32.xlu0 %v2594_v11, %s2645_s24 }
0x1aef   :  { %v2596_v34 = vpop.eup %2595 }
0x1af0   :  { %2099 = vrot.lane.b32.xlu1 %v2596_v34, %s2645_s24  ;;  %v2598_v23 = vpop.eup %2597 }
0x1af1   :  { %v1845_v27 = vmul.f32 0.6931472, %v2598_v23  ;;  %v2600_v3 = vpop.eup %2599 }
0x1af2   :  { %v1843_v31 = vmul.f32 0.6931472, %v2600_v3 }
0x1af3   :  { %v1847_v10 = vmul.f32 %v1845_v27, %v3281_v59 }
0x1af4   :  { %v1846_v36 = vmul.f32 %v1843_v31, %v3270_v44 }
0x1b0d   :  { %1603 = vadd.xlane.f32.xlu0 %v1602_v16 }
0x1b14   :  { %1600 = vadd.xlane.f32.xlu1 %v1599_v29 }
0x1b23   :  { %1402 = vperm.xlu0 %2466, %v2616_v58  }
0x1b25   :  { %268 = vrot.lane.b32.xlu1 %v266_v47, %s2669_s6 }
0x1b27   :  { %2468 = vset.pattern.permute.xlu0 %v2654_v38 }
0x1b28   :  { %1854 = vperm.xlu0 %2468, %v1847_v10  }
0x1b29   :  { %1410 = vrot.lane.b32.xlu1 %v1409_v5, %s2649_s28 }
0x1b2d   :  { %1851 = vperm.xlu1 %2467, %v1846_v36  }
0x1b50   :  { %v2116_v52 = vpop.permute.xlu0 %2115 }
0x1b52   :  { %v2114_v38 = vpop.permute.xlu1 %2113 }
0x1b60   :  { %v2102_v22 = vpop.permute.xlu0 %2101 }
0x1b61   :  { %v2106_v8 = vmul.f32 %v2102_v22, %v2090_v51 }
0x1b62   :  { %v2100_v34 = vpop.permute.xlu1 %2099 }
0x1b63   :  { %v2108_v1 = vmul.f32 %v2106_v8, %v2106_v8  ;;  %v2105_v48 = vmul.f32 %v2100_v34, %v2089_v20 }
0x1b65   :  { %v3450_v41 = vadd.f32 %v2116_v52, %v2108_v1  ;;  %v2107_v25 = vmul.f32 %v2105_v48, %v2105_v48 }
0x1b67   :  { %v2119_v43 = vadd.f32 %v2114_v38, %v2107_v25 }
0x1b69   :  { %v2121_v22 = vadd.f32 1.837877, %v2119_v43 }
0x1b96   :  { %v1604_v15 = vpop.xlane.xlu0 %1603 }
0x1b97   :  { %v3452_v11 = vadd.f32 18.420681, %v1604_v15  ;;  %v1606_v42 = vmax.f32 %v1604_v15, -18.420681  ;;  %v1612_v38 = vadd.f32 -18.420681, %v1604_v15 }
0x1b99   :  { %v1614_v40 = vand.u32 2147483647, %v3452_v11  ;;  %vm1610_vm8 = vcmp.ne.f32.partialorder %v3452_v11, %v3452_v11 }
0x1b9b   :  { %v1616_v16 = vsub.f32 0.0, %v1614_v40 }
0x1b9d   :  { %v1619_v18 = vmul.f32 1.442695, %v1616_v16  ;;  %v1601_v7 = vpop.xlane.xlu1 %1600 }
0x1b9e   :  { %v2295_v60 = vadd.f32 18.420681, %v1601_v7  ;;  %v1605_v51 = vmax.f32 %v1601_v7, -18.420681  ;;  %v1611_v1 = vadd.f32 -18.420681, %v1601_v7 }
0x1b9f   :  { %2601 = vpow2.f32 %v1619_v18  ;;  %v2122_v7 = vadd.f32 1.837877, %v3450_v41 }
0x1ba0   :  { %v1613_v12 = vand.u32 2147483647, %v2295_v60  ;;  %vm1609_vm2 = vcmp.ne.f32.partialorder %v2295_v60, %v2295_v60 }
0x1ba1   :  { %v269_v0 = vpop.permute.xlu1 %268  ;;  %v2126_v60 = vsel %vm274_vm4, %v2122_v7, 0.0 }
0x1ba2   :  { %v1615_v13 = vsub.f32 0.0, %v1613_v12  ;;  %v271_v29 = vadd.f32 %v269_v0, %v2868_v55  ;;  %v1403_v55 = vpop.permute.xlu0 %1402  ;;  %v2123_v12 = vsel %vm274_vm4, %v2121_v22, 0.0 }
0x1ba4   :  { %v1617_v39 = vmul.f32 1.442695, %v1615_v13  ;;  %1829 = vrot.lane.b32.xlu1 %v271_v29, %s2642_s11 }
0x1ba5   :  { %v1411_v21 = vpop.permute.xlu1 %1410 }
0x1ba6   :  { %2603 = vpow2.f32 %v1617_v39  ;;  %v1413_v23 = vmul.f32 %v1411_v21, %v1403_v55  ;;  %v1855_v15 = vpop.permute.xlu0 %1854 }
0x1ba7   :  { %v1863_v48 = vrot.slane %v1855_v15, %v3304_v4 }
0x1ba8   :  { %v3462_v58 = vadd.f32 %v1413_v23, %v3229_v2 }
0x1ba9   :  { %v1852_v29 = vpop.permute.xlu1 %1851 }
0x1baa   :  { %v1803_v6 = vmul.f32 %v3240_v30, %v3462_v58  ;;  %v1859_v41 = vrot.slane %v1852_v29, %v3304_v4 }
0x1bac   :  { %v2602_v63 = vpop.eup %2601  ;;  %v1805_v40 = vsel %vm1804_vm0, %v1803_v6, 0.0  ;;  %v1864_v23 = vsel %vm501_vm11, %v1863_v48, %v1859_v41  ;;  %vm2207_vm0 = vcmask 203776  }
0x1bad   :  { %v1630_v49 = vadd.f32 1.0, %v2602_v63  ;;  %v1633_v62 = vmul.f32 -0.5, %v2602_v63  ;;  %v1636_v27 = vand.u32 2147483647, %v2602_v63 }
0x1baf   :  { %2605 = vlog2.f32 %v1630_v49  ;;  %v1634_v33 = vadd.f32 1.0, %v1633_v62  ;;  %vm1637_vm15 = vcmp.lt.f32.partialorder %v1636_v27, 0.0004427343 }
0x1bb1   :  { %v1635_v10 = vmul.f32 %v2602_v63, %v1634_v33 }
0x1bb3   :  { %v2604_v26 = vpop.eup %2603 }
0x1bb4   :  { %v1621_v19 = vadd.f32 1.0, %v2604_v26  ;;  %v1624_v46 = vmul.f32 -0.5, %v2604_v26  ;;  %v1627_v32 = vand.u32 2147483647, %v2604_v26 }
0x1bb6   :  { %2607 = vlog2.f32 %v1621_v19  ;;  %v1625_v3 = vadd.f32 1.0, %v1624_v46  ;;  %vm1628_vm1 = vcmp.lt.f32.partialorder %v1627_v32, 0.0004427343 }
0x1bb8   :  { %v1626_v52 = vmul.f32 %v2604_v26, %v1625_v3 }
0x1bbc   :  { %v2606_v24 = vpop.eup %2605 }
0x1bbd   :  { %v1632_v47 = vmul.f32 0.6931472, %v2606_v24  ;;  %v1866_v24 = vsel %vm1679_vm6, %v1864_v23, 0.0 }
0x1bbf   :  { %v1638_v5 = vsel %vm1637_vm15, %v1635_v10, %v1632_v47  ;;  %vm2205_vm15 = vcmask 162816  }
0x1bc0   :  { %v1640_v8 = vadd.f32 %v1638_v5, %v1606_v42 }
0x1bc2   :  { %v1642_v18 = vsel %vm1610_vm8, %v1612_v38, %v1640_v8 }
0x1bc3   :  { %v2608_v31 = vpop.eup %2607  ;;  %v1660_v0 = vmul.f32 %v3281_v59, %v1642_v18 }
0x1bc4   :  { %v1623_v36 = vmul.f32 0.6931472, %v2608_v31 }
0x1bc6   :  { %v1629_v2 = vsel %vm1628_vm1, %v1626_v52, %v1623_v36  ;;  %vm2209_vm1 = vcmask 244736  }
0x1bc7   :  { %v1639_v34 = vadd.f32 %v1629_v2, %v1605_v51 }
0x1bc8   :  { %1806 = vadd.xlane.f32.xlu1 %v1805_v40 }
0x1bc9   :  { %v1641_v16 = vsel %vm1609_vm2, %v1611_v1, %v1639_v34  ;;  %vm2211_vm2 = vcmask 285696  }
0x1bca   :  { %v1659_v30 = vmul.f32 %v3270_v44, %v1641_v16 }
0x1bcc   :  { %1664 = vperm.xlu0 %2468, %v1659_v30   ;;  %2124 = vadd.xlane.f32.xlu1 %v2123_v12 }
0x1bd0   :  { %1667 = vperm.xlu0 %2468, %v1660_v0  }
0x1bef   :  { %2127 = vadd.xlane.f32.xlu0 %v2126_v60 }
0x1c16   :  { %v1830_v49 = vpop.permute.xlu1 %1829 }
0x1c47   :  { %v1665_v13 = vpop.permute.xlu0 %1664 }
0x1c48   :  { %v1672_v11 = vrot.slane %v1665_v13, %v3304_v4 }
0x1c4b   :  { %v1668_v39 = vpop.permute.xlu0 %1667 }
0x1c4c   :  { %v1676_v63 = vrot.slane %v1668_v39, %v3304_v4 }
0x1c4e   :  { %v1677_v26 = vsel %vm501_vm11, %v1676_v63, %v1672_v11 }
0x1c51   :  { %v1807_v19 = vpop.xlane.xlu1 %1806 }
0x1c55   :  { %v2125_v50 = vpop.xlane.xlu1 %2124 }
0x1c56   :  { %v2129_v20 = vmul.f32 -0.5, %v2125_v50 }
0x1c58   :  { %v2131_v21 = vmul.f32 %v2129_v20, %v3270_v44  ;;  %v1800_v44 = vsel %vm1679_vm6, %v3309_v56, 0.0  ;;  %v1680_v56 = vsel %vm1679_vm6, %v1677_v26, 0.0 }
0x1c5a   :  { %2136 = vperm.xlu1 %2467, %v2131_v21  }
0x1c78   :  { %v2128_v62 = vpop.xlane.xlu0 %2127 }
0x1c79   :  { %v2130_v55 = vmul.f32 -0.5, %v2128_v62 }
0x1c7b   :  { %v2132_v46 = vmul.f32 %v2130_v55, %v3281_v59  ;;  %v2619_v59 = vld [vmem:[%s3546_s22] sm:$0x3]  ;;  %s2676_s22 = smov 23  }
0x1c7c   :  { %v1832_v25 = vsub.f32 %v2619_v59, %v1830_v49 }
0x1c7d   :  { %2139 = vperm.xlu0 %2468, %v2132_v46  }
0x1c7e   :  { %1867 = vadd.xlane.f32.xlu1 %v1866_v24 }
0x1c8f   :  { %2161 = vrot.lane.b32.xlu1 %v3389_v14, %s2650_s29  ;;  %v1833_v14 = vmax.f32 %v1832_v25, 0.0  ;;  %s2673_s29 = smov 10  }
0x1c93   :  { %2173 = vrot.lane.b32.xlu1 %v3392_v53, %s2670_s30  ;;  %v1809_v53 = vadd.f32 %v3258_v45, %v1807_v19 }
0x1c95   :  { %v1810_v5 = vmax.f32 %v1809_v53, 0.0  ;;  %vm1811_vm12 = vcmp.ne.f32.partialorder %v1809_v53, %v1809_v53 }
0x1c97   :  { %2185 = vrot.lane.b32.xlu1 %v3395_v9, %s2671_s21  ;;  %v1813_v9 = vand.u32 2147483647, %v1809_v53 }
0x1c9b   :  { %2197 = vrot.lane.b32.xlu1 %v3398_v54, %s2672_s7  ;;  %v1814_v54 = vsub.f32 0.0, %v1813_v9 }
0x1c9c   :  { %1801 = vadd.xlane.f32.xlu0 %v1800_v44 }
0x1c9d   :  { %v1815_v33 = vmul.f32 1.442695, %v1814_v54 }
0x1c9f   :  { %2609 = vpow2.f32 %v1815_v33 }
0x1cac   :  { %v2610_v27 = vpop.eup %2609 }
0x1cad   :  { %v1820_v47 = vmul.f32 -0.5, %v2610_v27 }
0x1caf   :  { %v1821_v32 = vadd.f32 1.0, %v1820_v47 }
0x1cb1   :  { %v1822_v31 = vmul.f32 %v2610_v27, %v1821_v32 }
0x1cb2   :  { %1835 = vrot.lane.b32.xlu0 %v1833_v14, %s2643_s2 }
0x1cb6   :  { %2167 = vrot.lane.b32.xlu0 %v3401_v35, %s2673_s29  ;;  %v1817_v35 = vadd.f32 1.0, %v2610_v27 }
0x1cb8   :  { %2611 = vlog2.f32 %v1817_v35 }
0x1cba   :  { %2179 = vrot.lane.b32.xlu0 %v3404_v37, %s2674_s12 }
0x1cbe   :  { %2191 = vrot.lane.b32.xlu0 %v3407_v57, %s2675_s26  ;;  %v1823_v57 = vand.u32 2147483647, %v2610_v27 }
0x1cbf   :  { %1681 = vadd.xlane.f32.xlu1 %v1680_v56 }
0x1cc0   :  { %vm1824_vm10 = vcmp.lt.f32.partialorder %v1823_v57, 0.0004427343 }
0x1cc5   :  { %v2612_v3 = vpop.eup %2611 }
0x1cc6   :  { %v1819_v10 = vmul.f32 0.6931472, %v2612_v3 }
0x1cd0   :  { %2218 = vrot.lane.b32.xlu1 %v3462_v58, %s2646_s25  ;;  %v1825_v58 = vsel %vm1824_vm10, %v1822_v31, %v1819_v10 }
0x1cd1   :  { %v1826_v52 = vadd.f32 %v1825_v58, %v1810_v5 }
0x1cd3   :  { %v1827_v42 = vsel %vm1811_vm12, %v1809_v53, %v1826_v52 }
0x1cd5   :  { %v2137_v37 = vpop.permute.xlu1 %2136 }
0x1cd6   :  { %v2144_v29 = vrot.slane %v2137_v37, %v3304_v4 }
0x1cf8   :  { %v2140_v6 = vpop.permute.xlu0 %2139 }
0x1cf9   :  { %v2148_v13 = vrot.slane %v2140_v6, %v3304_v4 }
0x1cfb   :  { %v2149_v39 = vsel %vm501_vm11, %v2148_v13, %v2144_v29  ;;  %vm2249_vm11 = vcmask 515072  }
0x1cfc   :  { %v2151_v11 = vsel %vm1679_vm6, %v2149_v39, 0.0 }
0x1d07   :  { %v1868_v43 = vpop.xlane.xlu1 %1867 }
0x1d0b   :  { %v2162_v45 = vpop.permute.xlu1 %2161 }
0x1d0c   :  { %v2200_v1 = vsel %vm280_vm7, %v3386_v17, %v2162_v45  ;;  %vm2247_vm7 = vcmask 187392  }
0x1d0f   :  { %v2174_v22 = vpop.permute.xlu1 %2173 }
0x1d13   :  { %v2186_v16 = vpop.permute.xlu1 %2185 }
0x1d17   :  { %v2198_v60 = vpop.permute.xlu1 %2197 }
0x1d25   :  { %v1802_v36 = vpop.xlane.xlu0 %1801 }
0x1d29   :  { %v1836_v51 = vpop.permute.xlu0 %1835 }
0x1d2a   :  { %v1838_v2 = vmul.f32 %v1836_v51, %v1827_v42 }
0x1d2c   :  { %v1839_v8 = vadd.f32 %v1838_v2, %v1802_v36 }
0x1d2d   :  { %v2168_v34 = vpop.permute.xlu0 %2167 }
0x1d2e   :  { %v1869_v40 = vsub.f32 %v1868_v43, %v1839_v8  ;;  %v2202_v38 = vsel %vm2201_vm13, %v2200_v1, %v2168_v34 }
0x1d2f   :  { %v2204_v30 = vsel %vm2203_vm14, %v2202_v38, %v2174_v22 }
0x1d30   :  { %2214 = vrot.lane.b32.xlu0 %v1869_v40, %s2642_s11  ;;  %s2677_s11 = smov [#allocation4]  }
0x1d31   :  { %v2180_v18 = vpop.permute.xlu0 %2179  ;;  %s2258_s2 = sshll.u32 %s2677_s11, 4  ;;  %s2259_s2 = int_to_ptr.vmem [resolvable:$true] %s2258_s2 }
0x1d32   :  { %v2206_v12 = vsel %vm2205_vm15, %v2204_v30, %v2180_v18  ;;  %s2620_s25 = scalar_lea.vmem %s2259_s2, 32  ;;  %p2625_p1 = scmp.lt.s32.totalorder %s2259_s2, %s2259_s2 }
0x1d33   :  { %v2208_v0 = vsel %vm2207_vm0, %v2206_v12, %v2186_v16  ;;  %p2621_p0 = scmp.ne.s32.totalorder %s2259_s2, %s2620_s25  ;;  %p2626_p2 = scmp.lt.s32.totalorder %s2620_s25, %s2620_s25 }
0x1d35   :  { %v2192_v7 = vpop.permute.xlu0 %2191  ;;  %p2627_p3 = por %p2626_p2, %p2625_p1 }
0x1d36   :  { %v2210_v15 = vsel %vm2209_vm1, %v2208_v0, %v2192_v7 }
0x1d37   :  { %v2212_v17 = vsel %vm2211_vm2, %v2210_v15, %v2198_v60  ;;  %p2628_p4 = pnand %p2627_p3, %p2621_p0 }
0x1d38   :  { %2239 = vrot.lane.b32.xlu1 %v2212_v17, %s2676_s22 }
0x1d48   :  { %v1682_v63 = vpop.xlane.xlu1 %1681 }
0x1d4c   :  { %v2219_v19 = vpop.permute.xlu1 %2218 }
0x1d4f   :  { %2152 = vadd.xlane.f32.xlu0 %v2151_v11 }
0x1d65   :  { %2235 = vrot.lane.b32.xlu0 %v3365_v28, %s2670_s30 }
0x1da2   :  { %v2215_v49 = vpop.permute.xlu0 %2214 }
0x1daa   :  { %v2240_v48 = vpop.permute.xlu1 %2239 }
0x1dd8   :  { %v2153_v26 = vpop.xlane.xlu0 %2152 }
0x1dd9   :  { %v2242_v50 = vsel %vm272_vm3, %v2153_v26, %v2215_v49 }
0x1dda   :  { %v2243_v20 = vsel %vm274_vm4, %v2242_v50, %v1682_v63 }
0x1ddb   :  { %v2244_v21 = vsel %vm276_vm5, %v2243_v20, %v2219_v19 }
0x1ddc   :  { %v2245_v4 = vsel %vm284_vm9, %v2244_v21, %v3284_v61  ;;  %v2236_v41 = vpop.permute.xlu0 %2235 }
0x1ddd   :  { %v2246_v28 = vsel %vm2203_vm14, %v2245_v4, %v2236_v41 }
0x1dde   :  { %v2248_v62 = vsel %vm2247_vm7, %v2246_v28, %v2240_v48 }
0x1ddf   :  { %v2250_v55 = vsel %vm2249_vm11, %v2248_v62, 0.0 }
0x1de0   :  { %2251 = vst [vmem:[#allocation4] sm:$0x3] %v2250_v55 }
0x1de1   :  { %2631 = shalt.err (!%p2628_p4)
}
0x1de2   :  { %2261 = dma.vmem_to_hbm [thread:$0]  %s2259_s2, 32, %s3538_s18, [#allocation5]  }
0x1de3   :  { %2640 = dma.done.wait [#allocation5], 32  }
0x1de4   :  { %2641 = vsyncadd [#allocation5], 4294967264 }
0x1de5   :  { %2265 = vsyncpa [#allocation5], 1 }

</bundles_post_ra>
